<compile_context>
chip_gen: v5e
topology: v5e:2x2
jax: 0.10.0
libtpu: 0.0.40
codegen_flags: <defaults>
</compile_context>

<pallas_src>
import math
from functools import partial

import jax
import jax.numpy as jnp
from jax.experimental import pallas as pl
from jax.experimental.pallas import tpu as pltpu


def _encoder_stack_kernel(x_ref,
                          wqkv_ref, bqkv_ref, wo_ref, bo_ref,
                          w1_ref, b1_ref, w2_ref, b2_ref,
                          g1_ref, be1_ref, g2_ref, be2_ref,
                          out_ref, *, TN, L, E, H, eps, n_layers):
    """Full n_layers post-norm encoder stack on a (TN*L, E) activation tile."""
    Dh = E // H
    scale = 1.0 / math.sqrt(Dh)
    R = TN * L

    # Load weights once; they are resident in VMEM (constant index maps).
    wqkv = wqkv_ref[...]                                      # (E, 3E)
    bqkv = bqkv_ref[...]                                      # (1, 3E)
    wo_t = wo_ref[...]                                        # (E, E) pre-transposed
    bo = bo_ref[...]                                          # (1, E)
    w1 = w1_ref[...]                                          # (E, dff)
    b1 = b1_ref[...]                                          # (1, dff)
    w2 = w2_ref[...]                                          # (dff, E)
    b2 = b2_ref[...]                                          # (1, E)
    g1, be1 = g1_ref[...], be1_ref[...]
    g2, be2 = g2_ref[...], be2_ref[...]

    def layer_norm(t, gamma, beta):
        mu = jnp.mean(t, axis=-1, keepdims=True)
        var = jnp.mean((t - mu) ** 2, axis=-1, keepdims=True)
        return (t - mu) * jax.lax.rsqrt(var + eps) * gamma + beta

    def encoder_layer(x):
        # ---- fused QKV projection: single full-width MXU GEMM ----
        qkv = jnp.dot(x, wqkv,
                      preferred_element_type=jnp.float32) + bqkv       # (R, 3E)

        # ---- multi-head self-attention (attention axis = L) ----
        attn = jnp.zeros((R, E), jnp.float32)
        for h in range(H):                                    # static unroll over heads
            qh = qkv[:, h * Dh:(h + 1) * Dh].reshape(TN, L, Dh)
            kh = qkv[:, E + h * Dh:E + (h + 1) * Dh].reshape(TN, L, Dh)
            vh = qkv[:, 2 * E + h * Dh:2 * E + (h + 1) * Dh].reshape(TN, L, Dh)

            s = jnp.einsum('nld,nmd->nlm', qh, kh,
                           preferred_element_type=jnp.float32) * scale  # (TN,L,L)
            m = jnp.max(s, axis=-1, keepdims=True)
            p = jnp.exp(s - m)
            inv = 1.0 / jnp.sum(p, axis=-1, keepdims=True)    # one recip per row
            ctx = jnp.einsum('nlm,nmd->nld', p * inv, vh,
                             preferred_element_type=jnp.float32)        # (TN,L,Dh)

            # head-h out-proj contribution: full-lane-width GEMM with a
            # sublane-aligned row slice of the pre-transposed Wo.
            attn = attn + jnp.dot(ctx.reshape(R, Dh),
                                  wo_t[h * Dh:(h + 1) * Dh, :],
                                  preferred_element_type=jnp.float32)
        attn = attn + bo

        # post-norm residual blocks (norm_first=False)
        h1 = layer_norm(x + attn, g1, be1)                    # (R, E)

        ff = jnp.dot(h1, w1, preferred_element_type=jnp.float32) + b1
        ff = jnp.maximum(ff, 0.0)                             # ReLU
        ff = jnp.dot(ff, w2, preferred_element_type=jnp.float32) + b2

        return layer_norm(h1 + ff, g2, be2)

    x = x_ref[...].astype(jnp.float32)                        # (R, E)
    for _ in range(n_layers):                                 # deep-copied layers share weights
        x = encoder_layer(x)
    out_ref[...] = x.astype(out_ref.dtype)


def _choose_tn(N, L, max_rows):
    """Largest divisor TN of N with TN*L <= max_rows and (TN*L) % 8 == 0.
    Falls back to TN = N (full-extent block, always layout-legal)."""
    cands = [t for t in range(1, N + 1)
             if N % t == 0 and (t * L) % 8 == 0 and t * L <= max_rows]
    return max(cands) if cands else N


def encoder_stack_pallas(x, wp, *, L, H, n_layers, eps=1e-5, max_block_rows=512):
    """x: (N*L, E) activations, N = max_len positions (outer), L = batch (inner)."""
    R, E = x.shape
    N = R // L
    TN = _choose_tn(N, L, max_block_rows)
    rows = TN * L
    grid = (N // TN,)

    kernel = partial(_encoder_stack_kernel, TN=TN, L=L, E=E, H=H, eps=eps,
                     n_layers=n_layers)

    weights = (wp['wqkv'], wp['bqkv'], wp['wo_t'], wp['bo'],
               wp['w1_t'], wp['b1'], wp['w2_t'], wp['b2'],
               wp['g1'], wp['be1'], wp['g2'], wp['be2'])

    def full_spec(a):
        # Constant index map -> block never changes -> no re-DMA per grid step.
        return pl.BlockSpec(a.shape, lambda i, _nd=a.ndim: (0,) * _nd)

    act_spec = pl.BlockSpec((rows, E), lambda i: (i, 0))

    return pl.pallas_call(
        kernel,
        out_shape=jax.ShapeDtypeStruct((R, E), jnp.float32),
        grid=grid,
        in_specs=[act_spec] + [full_spec(w) for w in weights],
        out_specs=act_spec,
        input_output_aliases={0: 0},          # embedding slab is dead after the call
        compiler_params=pltpu.CompilerParams(
            dimension_semantics=("parallel",),        # shard tiles across v7x cores
            vmem_limit_bytes=48 * 1024 * 1024),       # safe on 64 MiB-VMEM v7x
    )(x, *weights)


def _prep_layer_weights(p):
    # Pre-transpose once so the kernel never does `w.T`.
    return dict(
        wqkv=jnp.transpose(p['in_proj_w']),    # (E, 3E)  packed [Wq | Wk | Wv]
        bqkv=p['in_proj_b'],                   # (1, 3E)
        wo_t=jnp.transpose(p['out_proj_w']),   # (E, E)
        bo=p['out_proj_b'],                    # (1, E)
        w1_t=jnp.transpose(p['lin1_w']),       # (E, dff)
        b1=p['lin1_b'],                        # (1, dff)
        w2_t=jnp.transpose(p['lin2_w']),       # (dff, E)
        b2=p['lin2_b'],                        # (1, E)
        g1=p['norm1_w'], be1=p['norm1_b'],
        g2=p['norm2_w'], be2=p['norm2_b'],
    )


def init_params(key, vocab_size, n_segments, max_len, E):
    dff = 4 * E
    ks = jax.random.split(key, 9)

    def uni(k, shape, bound):
        return jax.random.uniform(k, shape, jnp.float32, -bound, bound)

    xav = math.sqrt(3.0) * math.sqrt(2.0 / float(E + 3 * E))   # xavier for (3E, E)
    return dict(
        # CEmbedding.reset_parameters -> normal_(weight)
        tok_embed=jax.random.normal(ks[0], (vocab_size, E), jnp.float32),
        seg_embed=jax.random.normal(ks[1], (n_segments, E), jnp.float32),
        pos_embed=jax.random.normal(ks[2], (max_len, E), jnp.float32),
        # CMultiheadAttention: xavier-uniform in_proj, zero biases
        in_proj_w=uni(ks[3], (3 * E, E), xav),
        in_proj_b=jnp.zeros((1, 3 * E), jnp.float32),
        out_proj_w=uni(ks[4], (E, E), 1.0 / math.sqrt(E)),
        out_proj_b=jnp.zeros((1, E), jnp.float32),
        # Feed-forward linears (default nn.Linear-style uniform init)
        lin1_w=uni(ks[5], (dff, E), 1.0 / math.sqrt(E)),
        lin1_b=uni(ks[6], (1, dff), 1.0 / math.sqrt(E)),
        lin2_w=uni(ks[7], (E, dff), 1.0 / math.sqrt(dff)),
        lin2_b=uni(ks[8], (1, E), 1.0 / math.sqrt(dff)),
        # LayerNorms
        norm1_w=jnp.ones((1, E), jnp.float32),
        norm1_b=jnp.zeros((1, E), jnp.float32),
        norm2_w=jnp.ones((1, E), jnp.float32),
        norm2_b=jnp.zeros((1, E), jnp.float32),
    )


@partial(jax.jit, static_argnames=("n_layers", "H", "max_block_rows"))
def cbert_forward(seq, seg, params, *, n_layers, H, max_block_rows=512):
    # --- CBERTEmbedding (gathers are glue; done in plain JAX) ---
    S = seq.shape[1]
    emb = (params['tok_embed'][seq]
           + params['seg_embed'][seg]
           + params['pos_embed'][jnp.arange(S)])           # (batch, max_len, E)
    # TODO(synk): nn.Dropout is stochastic in training mode; treated as identity (eval semantics).

    B, S_, E = emb.shape
    # batch_first=False encoder: attention mixes along the batch axis per
    # position.  Flatten to a lane-dense (max_len*batch, E) slab, max_len outer.
    y = jnp.transpose(emb, (1, 0, 2)).reshape(S_ * B, E)

    wp = _prep_layer_weights(params)                       # transpose weights once
    # Whole encoder stack in ONE pallas_call; the activation stays in VMEM
    # across all layers (deep-copied layers share weights, attention is local
    # to each tile's batch axis).
    y = encoder_stack_pallas(y, wp, L=B, H=H, n_layers=n_layers,
                             max_block_rows=max_block_rows)
    return jnp.transpose(y.reshape(S_, B, E), (1, 0, 2))   # (batch, max_len, E)


# ---------------- pure-JAX reference (for correctness check) ----------------
def _ref_layer(y, p, H, eps=1e-5):
    N, L, E = y.shape
    Dh = E // H
    xf = y.reshape(N * L, E)
    win, bin_ = p['in_proj_w'], p['in_proj_b'][0]
    q = xf @ win[:E].T + bin_[:E]
    k = xf @ win[E:2 * E].T + bin_[E:2 * E]
    v = xf @ win[2 * E:].T + bin_[2 * E:]

    def heads(t):
        return jnp.transpose(t.reshape(N, L, H, Dh), (0, 2, 1, 3))  # (N,H,L,Dh)
    qh, kh, vh = heads(q), heads(k), heads(v)
    s = jnp.einsum('nhld,nhmd->nhlm', qh, kh) / math.sqrt(Dh)
    pmat = jax.nn.softmax(s, axis=-1)
    ctx = jnp.einsum('nhlm,nhmd->nhld', pmat, vh)
    ctx = jnp.transpose(ctx, (0, 2, 1, 3)).reshape(N * L, E)
    attn = ctx @ p['out_proj_w'].T + p['out_proj_b'][0]

    def ln(t, g, b):
        mu = t.mean(-1, keepdims=True)
        var = ((t - mu) ** 2).mean(-1, keepdims=True)
        return (t - mu) / jnp.sqrt(var + eps) * g + b

    h1 = ln(xf + attn, p['norm1_w'][0], p['norm1_b'][0])
    ff = jnp.maximum(h1 @ p['lin1_w'].T + p['lin1_b'][0], 0.0)
    ff = ff @ p['lin2_w'].T + p['lin2_b'][0]
    return ln(h1 + ff, p['norm2_w'][0], p['norm2_b'][0]).reshape(N, L, E)


def cbert_ref(seq, seg, params, *, n_layers, H):
    S = seq.shape[1]
    emb = (params['tok_embed'][seq]
           + params['seg_embed'][seg]
           + params['pos_embed'][jnp.arange(S)])
    y = jnp.transpose(emb, (1, 0, 2))
    for _ in range(n_layers):
        y = _ref_layer(y, params, H)
    return jnp.transpose(y, (1, 0, 2))


if __name__ == "__main__":
    # Small, forward-consistent shapes.
    vocab_size, n_segments, max_len = 50, 2, 8
    embed_dim, n_layers, attn_heads = 32, 2, 4
    batch = 2

    key = jax.random.PRNGKey(0)
    kp, ks, kg = jax.random.split(key, 3)
    params = init_params(kp, vocab_size, n_segments, max_len, embed_dim)
    seq = jax.random.randint(ks, (batch, max_len), 0, vocab_size, dtype=jnp.int32)
    seg = jax.random.randint(kg, (batch, max_len), 0, n_segments, dtype=jnp.int32)

    # max_block_rows=8 forces a 2-step grid over the max_len axis at these toy
    # shapes so the BlockSpec tiling / index_map / pipelining path is exercised.
    out = cbert_forward(seq, seg, params, n_layers=n_layers, H=attn_heads,
                        max_block_rows=8)
    out = jax.block_until_ready(out)
    assert out.shape == (batch, max_len, embed_dim)

    ref = jax.block_until_ready(cbert_ref(seq, seg, params,
                                          n_layers=n_layers, H=attn_heads))
    assert jnp.allclose(out, ref, rtol=1e-4, atol=1e-4), "mismatch vs reference"

    print("KERNEL_OK")
</pallas_src>

<mosaic_0001>
module attributes {stable_mosaic.version = 11 : i64} {
  func.func @_encoder_stack_kernel(%arg0: i32, %arg1: memref<8x32xf32, #tpu.memory_space<vmem>>, %arg2: memref<32x96xf32, #tpu.memory_space<vmem>>, %arg3: memref<1x96xf32, #tpu.memory_space<vmem>>, %arg4: memref<32x32xf32, #tpu.memory_space<vmem>>, %arg5: memref<1x32xf32, #tpu.memory_space<vmem>>, %arg6: memref<32x128xf32, #tpu.memory_space<vmem>>, %arg7: memref<1x128xf32, #tpu.memory_space<vmem>>, %arg8: memref<128x32xf32, #tpu.memory_space<vmem>>, %arg9: memref<1x32xf32, #tpu.memory_space<vmem>>, %arg10: memref<1x32xf32, #tpu.memory_space<vmem>>, %arg11: memref<1x32xf32, #tpu.memory_space<vmem>>, %arg12: memref<1x32xf32, #tpu.memory_space<vmem>>, %arg13: memref<1x32xf32, #tpu.memory_space<vmem>>, %arg14: memref<8x32xf32, #tpu.memory_space<vmem>>) attributes {dimension_semantics = [#tpu.dimension_semantics<parallel>], iteration_bounds = array<i64: 2>, scalar_prefetch = 0 : i64, scratch_operands = 0 : i64, tpu.core_type = #tpu.core_type<tc>, window_params = [{transform_indices = @transform_0, window_bounds = array<i64: 8, 32>}, {pipeline_mode = #tpu.pipeline_mode<synchronous>, transform_indices = @transform_1, window_bounds = array<i64: 32, 96>}, {pipeline_mode = #tpu.pipeline_mode<synchronous>, transform_indices = @transform_2, window_bounds = array<i64: 1, 96>}, {pipeline_mode = #tpu.pipeline_mode<synchronous>, transform_indices = @transform_3, window_bounds = array<i64: 32, 32>}, {pipeline_mode = #tpu.pipeline_mode<synchronous>, transform_indices = @transform_4, window_bounds = array<i64: 1, 32>}, {pipeline_mode = #tpu.pipeline_mode<synchronous>, transform_indices = @transform_5, window_bounds = array<i64: 32, 128>}, {pipeline_mode = #tpu.pipeline_mode<synchronous>, transform_indices = @transform_6, window_bounds = array<i64: 1, 128>}, {pipeline_mode = #tpu.pipeline_mode<synchronous>, transform_indices = @transform_7, window_bounds = array<i64: 128, 32>}, {pipeline_mode = #tpu.pipeline_mode<synchronous>, transform_indices = @transform_8, window_bounds = array<i64: 1, 32>}, {pipeline_mode = #tpu.pipeline_mode<synchronous>, transform_indices = @transform_9, window_bounds = array<i64: 1, 32>}, {pipeline_mode = #tpu.pipeline_mode<synchronous>, transform_indices = @transform_10, window_bounds = array<i64: 1, 32>}, {pipeline_mode = #tpu.pipeline_mode<synchronous>, transform_indices = @transform_11, window_bounds = array<i64: 1, 32>}, {pipeline_mode = #tpu.pipeline_mode<synchronous>, transform_indices = @transform_12, window_bounds = array<i64: 1, 32>}, {transform_indices = @transform_13, window_bounds = array<i64: 8, 32>}]} {
    %c0 = arith.constant 0 : index
    %c0_0 = arith.constant 0 : index
    %0 = vector.load %arg2[%c0, %c0_0] : memref<32x96xf32, #tpu.memory_space<vmem>>, vector<32x96xf32>
    %c0_1 = arith.constant 0 : index
    %c0_2 = arith.constant 0 : index
    %1 = vector.load %arg3[%c0_1, %c0_2] : memref<1x96xf32, #tpu.memory_space<vmem>>, vector<1x96xf32>
    %c0_3 = arith.constant 0 : index
    %c0_4 = arith.constant 0 : index
    %2 = vector.load %arg4[%c0_3, %c0_4] : memref<32x32xf32, #tpu.memory_space<vmem>>, vector<32x32xf32>
    %c0_5 = arith.constant 0 : index
    %c0_6 = arith.constant 0 : index
    %3 = vector.load %arg5[%c0_5, %c0_6] : memref<1x32xf32, #tpu.memory_space<vmem>>, vector<1x32xf32>
    %c0_7 = arith.constant 0 : index
    %c0_8 = arith.constant 0 : index
    %4 = vector.load %arg6[%c0_7, %c0_8] : memref<32x128xf32, #tpu.memory_space<vmem>>, vector<32x128xf32>
    %c0_9 = arith.constant 0 : index
    %c0_10 = arith.constant 0 : index
    %5 = vector.load %arg7[%c0_9, %c0_10] : memref<1x128xf32, #tpu.memory_space<vmem>>, vector<1x128xf32>
    %c0_11 = arith.constant 0 : index
    %c0_12 = arith.constant 0 : index
    %6 = vector.load %arg8[%c0_11, %c0_12] : memref<128x32xf32, #tpu.memory_space<vmem>>, vector<128x32xf32>
    %c0_13 = arith.constant 0 : index
    %c0_14 = arith.constant 0 : index
    %7 = vector.load %arg9[%c0_13, %c0_14] : memref<1x32xf32, #tpu.memory_space<vmem>>, vector<1x32xf32>
    %c0_15 = arith.constant 0 : index
    %c0_16 = arith.constant 0 : index
    %8 = vector.load %arg10[%c0_15, %c0_16] : memref<1x32xf32, #tpu.memory_space<vmem>>, vector<1x32xf32>
    %c0_17 = arith.constant 0 : index
    %c0_18 = arith.constant 0 : index
    %9 = vector.load %arg11[%c0_17, %c0_18] : memref<1x32xf32, #tpu.memory_space<vmem>>, vector<1x32xf32>
    %c0_19 = arith.constant 0 : index
    %c0_20 = arith.constant 0 : index
    %10 = vector.load %arg12[%c0_19, %c0_20] : memref<1x32xf32, #tpu.memory_space<vmem>>, vector<1x32xf32>
    %c0_21 = arith.constant 0 : index
    %c0_22 = arith.constant 0 : index
    %11 = vector.load %arg13[%c0_21, %c0_22] : memref<1x32xf32, #tpu.memory_space<vmem>>, vector<1x32xf32>
    %c0_23 = arith.constant 0 : index
    %c0_24 = arith.constant 0 : index
    %12 = vector.load %arg1[%c0_23, %c0_24] : memref<8x32xf32, #tpu.memory_space<vmem>>, vector<8x32xf32>
    %cst = arith.constant dense<0.000000e+00> : vector<8x96xf32>
    %13 = tpu.matmul %12, %0, %cst {dimension_numbers = #tpu.dot_dimension_numbers<[1], [0], [0], [1], [0, 0, 1, 1], [], []>} : vector<8x32xf32>, vector<32x96xf32>, vector<8x96xf32> -> vector<8x96xf32>
    %14 = vector.broadcast %1 : vector<1x96xf32> to vector<8x96xf32>
    %15 = arith.addf %13, %14 : vector<8x96xf32>
    %cst_25 = arith.constant 0.000000e+00 : f32
    %16 = vector.broadcast %cst_25 : f32 to vector<8x32xf32>
    %17 = vector.extract_strided_slice %15 {offsets = [0, 0], sizes = [8, 8], strides = [1, 1]} : vector<8x96xf32> to vector<8x8xf32>
    %18 = vector.shape_cast %17 : vector<8x8xf32> to vector<4x2x8xf32>
    %19 = vector.extract_strided_slice %15 {offsets = [0, 32], sizes = [8, 8], strides = [1, 1]} : vector<8x96xf32> to vector<8x8xf32>
    %20 = vector.shape_cast %19 : vector<8x8xf32> to vector<4x2x8xf32>
    %21 = vector.extract_strided_slice %15 {offsets = [0, 64], sizes = [8, 8], strides = [1, 1]} : vector<8x96xf32> to vector<8x8xf32>
    %22 = vector.shape_cast %21 : vector<8x8xf32> to vector<4x2x8xf32>
    "tpu.trace_start"() <{level = 10 : i32, message = "nld,nmd->nlm"}> : () -> ()
    %cst_26 = arith.constant dense<0.000000e+00> : vector<4x2x2xf32>
    %23 = tpu.matmul %18, %20, %cst_26 {dimension_numbers = #tpu.dot_dimension_numbers<[2], [2], [1], [1], [0, 0, 0, 1, 1, 1], [0], [0]>} : vector<4x2x8xf32>, vector<4x2x8xf32>, vector<4x2x2xf32> -> vector<4x2x2xf32>
    "tpu.trace_stop"() : () -> ()
    %cst_27 = arith.constant 0.353553385 : f32
    %24 = vector.broadcast %cst_27 : f32 to vector<4x2x2xf32>
    %25 = arith.mulf %23, %24 : vector<4x2x2xf32>
    %cst_28 = arith.constant dense<0xFF800000> : vector<4x2xf32>
    %26 = vector.multi_reduction <maximumf>, %25, %cst_28 [2] : vector<4x2x2xf32> to vector<4x2xf32>
    %27 = vector.shape_cast %26 : vector<4x2xf32> to vector<4x2x1xf32>
    %28 = vector.broadcast %27 : vector<4x2x1xf32> to vector<4x2x2xf32>
    %29 = arith.subf %25, %28 : vector<4x2x2xf32>
    %30 = math.exp %29 : vector<4x2x2xf32>
    %cst_29 = arith.constant dense<0.000000e+00> : vector<4x2xf32>
    %31 = vector.multi_reduction <add>, %30, %cst_29 [2] : vector<4x2x2xf32> to vector<4x2xf32>
    %32 = vector.shape_cast %31 : vector<4x2xf32> to vector<4x2x1xf32>
    %cst_30 = arith.constant 1.000000e+00 : f32
    %33 = vector.broadcast %cst_30 : f32 to vector<4x2x1xf32>
    %34 = arith.divf %33, %32 : vector<4x2x1xf32>
    %35 = vector.broadcast %34 : vector<4x2x1xf32> to vector<4x2x2xf32>
    %36 = arith.mulf %30, %35 : vector<4x2x2xf32>
    "tpu.trace_start"() <{level = 10 : i32, message = "nlm,nmd->nld"}> : () -> ()
    %cst_31 = arith.constant dense<0.000000e+00> : vector<4x2x8xf32>
    %37 = tpu.matmul %36, %22, %cst_31 {dimension_numbers = #tpu.dot_dimension_numbers<[2], [1], [1], [2], [0, 0, 0, 1, 1, 2], [0], [0]>} : vector<4x2x2xf32>, vector<4x2x8xf32>, vector<4x2x8xf32> -> vector<4x2x8xf32>
    "tpu.trace_stop"() : () -> ()
    %38 = vector.shape_cast %37 : vector<4x2x8xf32> to vector<8x8xf32>
    %39 = vector.extract_strided_slice %2 {offsets = [0, 0], sizes = [8, 32], strides = [1, 1]} : vector<32x32xf32> to vector<8x32xf32>
    %cst_32 = arith.constant dense<0.000000e+00> : vector<8x32xf32>
    %40 = tpu.matmul %38, %39, %cst_32 {dimension_numbers = #tpu.dot_dimension_numbers<[1], [0], [0], [1], [0, 0, 1, 1], [], []>} : vector<8x8xf32>, vector<8x32xf32>, vector<8x32xf32> -> vector<8x32xf32>
    %41 = arith.addf %16, %40 : vector<8x32xf32>
    %42 = vector.extract_strided_slice %15 {offsets = [0, 8], sizes = [8, 8], strides = [1, 1]} : vector<8x96xf32> to vector<8x8xf32>
    %43 = vector.shape_cast %42 : vector<8x8xf32> to vector<4x2x8xf32>
    %44 = vector.extract_strided_slice %15 {offsets = [0, 40], sizes = [8, 8], strides = [1, 1]} : vector<8x96xf32> to vector<8x8xf32>
    %45 = vector.shape_cast %44 : vector<8x8xf32> to vector<4x2x8xf32>
    %46 = vector.extract_strided_slice %15 {offsets = [0, 72], sizes = [8, 8], strides = [1, 1]} : vector<8x96xf32> to vector<8x8xf32>
    %47 = vector.shape_cast %46 : vector<8x8xf32> to vector<4x2x8xf32>
    "tpu.trace_start"() <{level = 10 : i32, message = "nld,nmd->nlm"}> : () -> ()
    %cst_33 = arith.constant dense<0.000000e+00> : vector<4x2x2xf32>
    %48 = tpu.matmul %43, %45, %cst_33 {dimension_numbers = #tpu.dot_dimension_numbers<[2], [2], [1], [1], [0, 0, 0, 1, 1, 1], [0], [0]>} : vector<4x2x8xf32>, vector<4x2x8xf32>, vector<4x2x2xf32> -> vector<4x2x2xf32>
    "tpu.trace_stop"() : () -> ()
    %cst_34 = arith.constant 0.353553385 : f32
    %49 = vector.broadcast %cst_34 : f32 to vector<4x2x2xf32>
    %50 = arith.mulf %48, %49 : vector<4x2x2xf32>
    %cst_35 = arith.constant dense<0xFF800000> : vector<4x2xf32>
    %51 = vector.multi_reduction <maximumf>, %50, %cst_35 [2] : vector<4x2x2xf32> to vector<4x2xf32>
    %52 = vector.shape_cast %51 : vector<4x2xf32> to vector<4x2x1xf32>
    %53 = vector.broadcast %52 : vector<4x2x1xf32> to vector<4x2x2xf32>
    %54 = arith.subf %50, %53 : vector<4x2x2xf32>
    %55 = math.exp %54 : vector<4x2x2xf32>
    %cst_36 = arith.constant dense<0.000000e+00> : vector<4x2xf32>
    %56 = vector.multi_reduction <add>, %55, %cst_36 [2] : vector<4x2x2xf32> to vector<4x2xf32>
    %57 = vector.shape_cast %56 : vector<4x2xf32> to vector<4x2x1xf32>
    %cst_37 = arith.constant 1.000000e+00 : f32
    %58 = vector.broadcast %cst_37 : f32 to vector<4x2x1xf32>
    %59 = arith.divf %58, %57 : vector<4x2x1xf32>
    %60 = vector.broadcast %59 : vector<4x2x1xf32> to vector<4x2x2xf32>
    %61 = arith.mulf %55, %60 : vector<4x2x2xf32>
    "tpu.trace_start"() <{level = 10 : i32, message = "nlm,nmd->nld"}> : () -> ()
    %cst_38 = arith.constant dense<0.000000e+00> : vector<4x2x8xf32>
    %62 = tpu.matmul %61, %47, %cst_38 {dimension_numbers = #tpu.dot_dimension_numbers<[2], [1], [1], [2], [0, 0, 0, 1, 1, 2], [0], [0]>} : vector<4x2x2xf32>, vector<4x2x8xf32>, vector<4x2x8xf32> -> vector<4x2x8xf32>
    "tpu.trace_stop"() : () -> ()
    %63 = vector.shape_cast %62 : vector<4x2x8xf32> to vector<8x8xf32>
    %64 = vector.extract_strided_slice %2 {offsets = [8, 0], sizes = [8, 32], strides = [1, 1]} : vector<32x32xf32> to vector<8x32xf32>
    %cst_39 = arith.constant dense<0.000000e+00> : vector<8x32xf32>
    %65 = tpu.matmul %63, %64, %cst_39 {dimension_numbers = #tpu.dot_dimension_numbers<[1], [0], [0], [1], [0, 0, 1, 1], [], []>} : vector<8x8xf32>, vector<8x32xf32>, vector<8x32xf32> -> vector<8x32xf32>
    %66 = arith.addf %41, %65 : vector<8x32xf32>
    %67 = vector.extract_strided_slice %15 {offsets = [0, 16], sizes = [8, 8], strides = [1, 1]} : vector<8x96xf32> to vector<8x8xf32>
    %68 = vector.shape_cast %67 : vector<8x8xf32> to vector<4x2x8xf32>
    %69 = vector.extract_strided_slice %15 {offsets = [0, 48], sizes = [8, 8], strides = [1, 1]} : vector<8x96xf32> to vector<8x8xf32>
    %70 = vector.shape_cast %69 : vector<8x8xf32> to vector<4x2x8xf32>
    %71 = vector.extract_strided_slice %15 {offsets = [0, 80], sizes = [8, 8], strides = [1, 1]} : vector<8x96xf32> to vector<8x8xf32>
    %72 = vector.shape_cast %71 : vector<8x8xf32> to vector<4x2x8xf32>
    "tpu.trace_start"() <{level = 10 : i32, message = "nld,nmd->nlm"}> : () -> ()
    %cst_40 = arith.constant dense<0.000000e+00> : vector<4x2x2xf32>
    %73 = tpu.matmul %68, %70, %cst_40 {dimension_numbers = #tpu.dot_dimension_numbers<[2], [2], [1], [1], [0, 0, 0, 1, 1, 1], [0], [0]>} : vector<4x2x8xf32>, vector<4x2x8xf32>, vector<4x2x2xf32> -> vector<4x2x2xf32>
    "tpu.trace_stop"() : () -> ()
    %cst_41 = arith.constant 0.353553385 : f32
    %74 = vector.broadcast %cst_41 : f32 to vector<4x2x2xf32>
    %75 = arith.mulf %73, %74 : vector<4x2x2xf32>
    %cst_42 = arith.constant dense<0xFF800000> : vector<4x2xf32>
    %76 = vector.multi_reduction <maximumf>, %75, %cst_42 [2] : vector<4x2x2xf32> to vector<4x2xf32>
    %77 = vector.shape_cast %76 : vector<4x2xf32> to vector<4x2x1xf32>
    %78 = vector.broadcast %77 : vector<4x2x1xf32> to vector<4x2x2xf32>
    %79 = arith.subf %75, %78 : vector<4x2x2xf32>
    %80 = math.exp %79 : vector<4x2x2xf32>
    %cst_43 = arith.constant dense<0.000000e+00> : vector<4x2xf32>
    %81 = vector.multi_reduction <add>, %80, %cst_43 [2] : vector<4x2x2xf32> to vector<4x2xf32>
    %82 = vector.shape_cast %81 : vector<4x2xf32> to vector<4x2x1xf32>
    %cst_44 = arith.constant 1.000000e+00 : f32
    %83 = vector.broadcast %cst_44 : f32 to vector<4x2x1xf32>
    %84 = arith.divf %83, %82 : vector<4x2x1xf32>
    %85 = vector.broadcast %84 : vector<4x2x1xf32> to vector<4x2x2xf32>
    %86 = arith.mulf %80, %85 : vector<4x2x2xf32>
    "tpu.trace_start"() <{level = 10 : i32, message = "nlm,nmd->nld"}> : () -> ()
    %cst_45 = arith.constant dense<0.000000e+00> : vector<4x2x8xf32>
    %87 = tpu.matmul %86, %72, %cst_45 {dimension_numbers = #tpu.dot_dimension_numbers<[2], [1], [1], [2], [0, 0, 0, 1, 1, 2], [0], [0]>} : vector<4x2x2xf32>, vector<4x2x8xf32>, vector<4x2x8xf32> -> vector<4x2x8xf32>
    "tpu.trace_stop"() : () -> ()
    %88 = vector.shape_cast %87 : vector<4x2x8xf32> to vector<8x8xf32>
    %89 = vector.extract_strided_slice %2 {offsets = [16, 0], sizes = [8, 32], strides = [1, 1]} : vector<32x32xf32> to vector<8x32xf32>
    %cst_46 = arith.constant dense<0.000000e+00> : vector<8x32xf32>
    %90 = tpu.matmul %88, %89, %cst_46 {dimension_numbers = #tpu.dot_dimension_numbers<[1], [0], [0], [1], [0, 0, 1, 1], [], []>} : vector<8x8xf32>, vector<8x32xf32>, vector<8x32xf32> -> vector<8x32xf32>
    %91 = arith.addf %66, %90 : vector<8x32xf32>
    %92 = vector.extract_strided_slice %15 {offsets = [0, 24], sizes = [8, 8], strides = [1, 1]} : vector<8x96xf32> to vector<8x8xf32>
    %93 = vector.shape_cast %92 : vector<8x8xf32> to vector<4x2x8xf32>
    %94 = vector.extract_strided_slice %15 {offsets = [0, 56], sizes = [8, 8], strides = [1, 1]} : vector<8x96xf32> to vector<8x8xf32>
    %95 = vector.shape_cast %94 : vector<8x8xf32> to vector<4x2x8xf32>
    %96 = vector.extract_strided_slice %15 {offsets = [0, 88], sizes = [8, 8], strides = [1, 1]} : vector<8x96xf32> to vector<8x8xf32>
    %97 = vector.shape_cast %96 : vector<8x8xf32> to vector<4x2x8xf32>
    "tpu.trace_start"() <{level = 10 : i32, message = "nld,nmd->nlm"}> : () -> ()
    %cst_47 = arith.constant dense<0.000000e+00> : vector<4x2x2xf32>
    %98 = tpu.matmul %93, %95, %cst_47 {dimension_numbers = #tpu.dot_dimension_numbers<[2], [2], [1], [1], [0, 0, 0, 1, 1, 1], [0], [0]>} : vector<4x2x8xf32>, vector<4x2x8xf32>, vector<4x2x2xf32> -> vector<4x2x2xf32>
    "tpu.trace_stop"() : () -> ()
    %cst_48 = arith.constant 0.353553385 : f32
    %99 = vector.broadcast %cst_48 : f32 to vector<4x2x2xf32>
    %100 = arith.mulf %98, %99 : vector<4x2x2xf32>
    %cst_49 = arith.constant dense<0xFF800000> : vector<4x2xf32>
    %101 = vector.multi_reduction <maximumf>, %100, %cst_49 [2] : vector<4x2x2xf32> to vector<4x2xf32>
    %102 = vector.shape_cast %101 : vector<4x2xf32> to vector<4x2x1xf32>
    %103 = vector.broadcast %102 : vector<4x2x1xf32> to vector<4x2x2xf32>
    %104 = arith.subf %100, %103 : vector<4x2x2xf32>
    %105 = math.exp %104 : vector<4x2x2xf32>
    %cst_50 = arith.constant dense<0.000000e+00> : vector<4x2xf32>
    %106 = vector.multi_reduction <add>, %105, %cst_50 [2] : vector<4x2x2xf32> to vector<4x2xf32>
    %107 = vector.shape_cast %106 : vector<4x2xf32> to vector<4x2x1xf32>
    %cst_51 = arith.constant 1.000000e+00 : f32
    %108 = vector.broadcast %cst_51 : f32 to vector<4x2x1xf32>
    %109 = arith.divf %108, %107 : vector<4x2x1xf32>
    %110 = vector.broadcast %109 : vector<4x2x1xf32> to vector<4x2x2xf32>
    %111 = arith.mulf %105, %110 : vector<4x2x2xf32>
    "tpu.trace_start"() <{level = 10 : i32, message = "nlm,nmd->nld"}> : () -> ()
    %cst_52 = arith.constant dense<0.000000e+00> : vector<4x2x8xf32>
    %112 = tpu.matmul %111, %97, %cst_52 {dimension_numbers = #tpu.dot_dimension_numbers<[2], [1], [1], [2], [0, 0, 0, 1, 1, 2], [0], [0]>} : vector<4x2x2xf32>, vector<4x2x8xf32>, vector<4x2x8xf32> -> vector<4x2x8xf32>
    "tpu.trace_stop"() : () -> ()
    %113 = vector.shape_cast %112 : vector<4x2x8xf32> to vector<8x8xf32>
    %114 = vector.extract_strided_slice %2 {offsets = [24, 0], sizes = [8, 32], strides = [1, 1]} : vector<32x32xf32> to vector<8x32xf32>
    %cst_53 = arith.constant dense<0.000000e+00> : vector<8x32xf32>
    %115 = tpu.matmul %113, %114, %cst_53 {dimension_numbers = #tpu.dot_dimension_numbers<[1], [0], [0], [1], [0, 0, 1, 1], [], []>} : vector<8x8xf32>, vector<8x32xf32>, vector<8x32xf32> -> vector<8x32xf32>
    %116 = arith.addf %91, %115 : vector<8x32xf32>
    %117 = vector.broadcast %3 : vector<1x32xf32> to vector<8x32xf32>
    %118 = arith.addf %116, %117 : vector<8x32xf32>
    %119 = arith.addf %12, %118 : vector<8x32xf32>
    %cst_54 = arith.constant dense<0.000000e+00> : vector<8xf32>
    %120 = vector.multi_reduction <add>, %119, %cst_54 [1] : vector<8x32xf32> to vector<8xf32>
    %121 = vector.shape_cast %120 : vector<8xf32> to vector<8x1xf32>
    %cst_55 = arith.constant 3.200000e+01 : f32
    %122 = vector.broadcast %cst_55 : f32 to vector<8x1xf32>
    %123 = arith.divf %121, %122 : vector<8x1xf32>
    %124 = vector.broadcast %123 : vector<8x1xf32> to vector<8x32xf32>
    %125 = arith.subf %119, %124 : vector<8x32xf32>
    %126 = arith.mulf %125, %125 : vector<8x32xf32>
    %cst_56 = arith.constant dense<0.000000e+00> : vector<8xf32>
    %127 = vector.multi_reduction <add>, %126, %cst_56 [1] : vector<8x32xf32> to vector<8xf32>
    %128 = vector.shape_cast %127 : vector<8xf32> to vector<8x1xf32>
    %cst_57 = arith.constant 3.200000e+01 : f32
    %129 = vector.broadcast %cst_57 : f32 to vector<8x1xf32>
    %130 = arith.divf %128, %129 : vector<8x1xf32>
    %131 = vector.broadcast %123 : vector<8x1xf32> to vector<8x32xf32>
    %132 = arith.subf %119, %131 : vector<8x32xf32>
    %cst_58 = arith.constant 9.99999974E-6 : f32
    %133 = vector.broadcast %cst_58 : f32 to vector<8x1xf32>
    %134 = arith.addf %130, %133 : vector<8x1xf32>
    %135 = math.rsqrt %134 : vector<8x1xf32>
    %136 = vector.broadcast %135 : vector<8x1xf32> to vector<8x32xf32>
    %137 = arith.mulf %132, %136 : vector<8x32xf32>
    %138 = vector.broadcast %8 : vector<1x32xf32> to vector<8x32xf32>
    %139 = arith.mulf %137, %138 : vector<8x32xf32>
    %140 = vector.broadcast %9 : vector<1x32xf32> to vector<8x32xf32>
    %141 = arith.addf %139, %140 : vector<8x32xf32>
    %cst_59 = arith.constant dense<0.000000e+00> : vector<8x128xf32>
    %142 = tpu.matmul %141, %4, %cst_59 {dimension_numbers = #tpu.dot_dimension_numbers<[1], [0], [0], [1], [0, 0, 1, 1], [], []>} : vector<8x32xf32>, vector<32x128xf32>, vector<8x128xf32> -> vector<8x128xf32>
    %143 = vector.broadcast %5 : vector<1x128xf32> to vector<8x128xf32>
    %144 = arith.addf %142, %143 : vector<8x128xf32>
    %cst_60 = arith.constant 0.000000e+00 : f32
    %145 = vector.broadcast %cst_60 : f32 to vector<8x128xf32>
    %146 = arith.maximumf %144, %145 : vector<8x128xf32>
    %cst_61 = arith.constant dense<0.000000e+00> : vector<8x32xf32>
    %147 = tpu.matmul %146, %6, %cst_61 {dimension_numbers = #tpu.dot_dimension_numbers<[1], [0], [0], [1], [0, 0, 1, 1], [], []>} : vector<8x128xf32>, vector<128x32xf32>, vector<8x32xf32> -> vector<8x32xf32>
    %148 = vector.broadcast %7 : vector<1x32xf32> to vector<8x32xf32>
    %149 = arith.addf %147, %148 : vector<8x32xf32>
    %150 = arith.addf %141, %149 : vector<8x32xf32>
    %cst_62 = arith.constant dense<0.000000e+00> : vector<8xf32>
    %151 = vector.multi_reduction <add>, %150, %cst_62 [1] : vector<8x32xf32> to vector<8xf32>
    %152 = vector.shape_cast %151 : vector<8xf32> to vector<8x1xf32>
    %cst_63 = arith.constant 3.200000e+01 : f32
    %153 = vector.broadcast %cst_63 : f32 to vector<8x1xf32>
    %154 = arith.divf %152, %153 : vector<8x1xf32>
    %155 = vector.broadcast %154 : vector<8x1xf32> to vector<8x32xf32>
    %156 = arith.subf %150, %155 : vector<8x32xf32>
    %157 = arith.mulf %156, %156 : vector<8x32xf32>
    %cst_64 = arith.constant dense<0.000000e+00> : vector<8xf32>
    %158 = vector.multi_reduction <add>, %157, %cst_64 [1] : vector<8x32xf32> to vector<8xf32>
    %159 = vector.shape_cast %158 : vector<8xf32> to vector<8x1xf32>
    %cst_65 = arith.constant 3.200000e+01 : f32
    %160 = vector.broadcast %cst_65 : f32 to vector<8x1xf32>
    %161 = arith.divf %159, %160 : vector<8x1xf32>
    %162 = vector.broadcast %154 : vector<8x1xf32> to vector<8x32xf32>
    %163 = arith.subf %150, %162 : vector<8x32xf32>
    %cst_66 = arith.constant 9.99999974E-6 : f32
    %164 = vector.broadcast %cst_66 : f32 to vector<8x1xf32>
    %165 = arith.addf %161, %164 : vector<8x1xf32>
    %166 = math.rsqrt %165 : vector<8x1xf32>
    %167 = vector.broadcast %166 : vector<8x1xf32> to vector<8x32xf32>
    %168 = arith.mulf %163, %167 : vector<8x32xf32>
    %169 = vector.broadcast %10 : vector<1x32xf32> to vector<8x32xf32>
    %170 = arith.mulf %168, %169 : vector<8x32xf32>
    %171 = vector.broadcast %11 : vector<1x32xf32> to vector<8x32xf32>
    %172 = arith.addf %170, %171 : vector<8x32xf32>
    %cst_67 = arith.constant dense<0.000000e+00> : vector<8x96xf32>
    %173 = tpu.matmul %172, %0, %cst_67 {dimension_numbers = #tpu.dot_dimension_numbers<[1], [0], [0], [1], [0, 0, 1, 1], [], []>} : vector<8x32xf32>, vector<32x96xf32>, vector<8x96xf32> -> vector<8x96xf32>
    %174 = vector.broadcast %1 : vector<1x96xf32> to vector<8x96xf32>
    %175 = arith.addf %173, %174 : vector<8x96xf32>
    %cst_68 = arith.constant 0.000000e+00 : f32
    %176 = vector.broadcast %cst_68 : f32 to vector<8x32xf32>
    %177 = vector.extract_strided_slice %175 {offsets = [0, 0], sizes = [8, 8], strides = [1, 1]} : vector<8x96xf32> to vector<8x8xf32>
    %178 = vector.shape_cast %177 : vector<8x8xf32> to vector<4x2x8xf32>
    %179 = vector.extract_strided_slice %175 {offsets = [0, 32], sizes = [8, 8], strides = [1, 1]} : vector<8x96xf32> to vector<8x8xf32>
    %180 = vector.shape_cast %179 : vector<8x8xf32> to vector<4x2x8xf32>
    %181 = vector.extract_strided_slice %175 {offsets = [0, 64], sizes = [8, 8], strides = [1, 1]} : vector<8x96xf32> to vector<8x8xf32>
    %182 = vector.shape_cast %181 : vector<8x8xf32> to vector<4x2x8xf32>
    "tpu.trace_start"() <{level = 10 : i32, message = "nld,nmd->nlm"}> : () -> ()
    %cst_69 = arith.constant dense<0.000000e+00> : vector<4x2x2xf32>
    %183 = tpu.matmul %178, %180, %cst_69 {dimension_numbers = #tpu.dot_dimension_numbers<[2], [2], [1], [1], [0, 0, 0, 1, 1, 1], [0], [0]>} : vector<4x2x8xf32>, vector<4x2x8xf32>, vector<4x2x2xf32> -> vector<4x2x2xf32>
    "tpu.trace_stop"() : () -> ()
    %cst_70 = arith.constant 0.353553385 : f32
    %184 = vector.broadcast %cst_70 : f32 to vector<4x2x2xf32>
    %185 = arith.mulf %183, %184 : vector<4x2x2xf32>
    %cst_71 = arith.constant dense<0xFF800000> : vector<4x2xf32>
    %186 = vector.multi_reduction <maximumf>, %185, %cst_71 [2] : vector<4x2x2xf32> to vector<4x2xf32>
    %187 = vector.shape_cast %186 : vector<4x2xf32> to vector<4x2x1xf32>
    %188 = vector.broadcast %187 : vector<4x2x1xf32> to vector<4x2x2xf32>
    %189 = arith.subf %185, %188 : vector<4x2x2xf32>
    %190 = math.exp %189 : vector<4x2x2xf32>
    %cst_72 = arith.constant dense<0.000000e+00> : vector<4x2xf32>
    %191 = vector.multi_reduction <add>, %190, %cst_72 [2] : vector<4x2x2xf32> to vector<4x2xf32>
    %192 = vector.shape_cast %191 : vector<4x2xf32> to vector<4x2x1xf32>
    %cst_73 = arith.constant 1.000000e+00 : f32
    %193 = vector.broadcast %cst_73 : f32 to vector<4x2x1xf32>
    %194 = arith.divf %193, %192 : vector<4x2x1xf32>
    %195 = vector.broadcast %194 : vector<4x2x1xf32> to vector<4x2x2xf32>
    %196 = arith.mulf %190, %195 : vector<4x2x2xf32>
    "tpu.trace_start"() <{level = 10 : i32, message = "nlm,nmd->nld"}> : () -> ()
    %cst_74 = arith.constant dense<0.000000e+00> : vector<4x2x8xf32>
    %197 = tpu.matmul %196, %182, %cst_74 {dimension_numbers = #tpu.dot_dimension_numbers<[2], [1], [1], [2], [0, 0, 0, 1, 1, 2], [0], [0]>} : vector<4x2x2xf32>, vector<4x2x8xf32>, vector<4x2x8xf32> -> vector<4x2x8xf32>
    "tpu.trace_stop"() : () -> ()
    %198 = vector.shape_cast %197 : vector<4x2x8xf32> to vector<8x8xf32>
    %199 = vector.extract_strided_slice %2 {offsets = [0, 0], sizes = [8, 32], strides = [1, 1]} : vector<32x32xf32> to vector<8x32xf32>
    %cst_75 = arith.constant dense<0.000000e+00> : vector<8x32xf32>
    %200 = tpu.matmul %198, %199, %cst_75 {dimension_numbers = #tpu.dot_dimension_numbers<[1], [0], [0], [1], [0, 0, 1, 1], [], []>} : vector<8x8xf32>, vector<8x32xf32>, vector<8x32xf32> -> vector<8x32xf32>
    %201 = arith.addf %176, %200 : vector<8x32xf32>
    %202 = vector.extract_strided_slice %175 {offsets = [0, 8], sizes = [8, 8], strides = [1, 1]} : vector<8x96xf32> to vector<8x8xf32>
    %203 = vector.shape_cast %202 : vector<8x8xf32> to vector<4x2x8xf32>
    %204 = vector.extract_strided_slice %175 {offsets = [0, 40], sizes = [8, 8], strides = [1, 1]} : vector<8x96xf32> to vector<8x8xf32>
    %205 = vector.shape_cast %204 : vector<8x8xf32> to vector<4x2x8xf32>
    %206 = vector.extract_strided_slice %175 {offsets = [0, 72], sizes = [8, 8], strides = [1, 1]} : vector<8x96xf32> to vector<8x8xf32>
    %207 = vector.shape_cast %206 : vector<8x8xf32> to vector<4x2x8xf32>
    "tpu.trace_start"() <{level = 10 : i32, message = "nld,nmd->nlm"}> : () -> ()
    %cst_76 = arith.constant dense<0.000000e+00> : vector<4x2x2xf32>
    %208 = tpu.matmul %203, %205, %cst_76 {dimension_numbers = #tpu.dot_dimension_numbers<[2], [2], [1], [1], [0, 0, 0, 1, 1, 1], [0], [0]>} : vector<4x2x8xf32>, vector<4x2x8xf32>, vector<4x2x2xf32> -> vector<4x2x2xf32>
    "tpu.trace_stop"() : () -> ()
    %cst_77 = arith.constant 0.353553385 : f32
    %209 = vector.broadcast %cst_77 : f32 to vector<4x2x2xf32>
    %210 = arith.mulf %208, %209 : vector<4x2x2xf32>
    %cst_78 = arith.constant dense<0xFF800000> : vector<4x2xf32>
    %211 = vector.multi_reduction <maximumf>, %210, %cst_78 [2] : vector<4x2x2xf32> to vector<4x2xf32>
    %212 = vector.shape_cast %211 : vector<4x2xf32> to vector<4x2x1xf32>
    %213 = vector.broadcast %212 : vector<4x2x1xf32> to vector<4x2x2xf32>
    %214 = arith.subf %210, %213 : vector<4x2x2xf32>
    %215 = math.exp %214 : vector<4x2x2xf32>
    %cst_79 = arith.constant dense<0.000000e+00> : vector<4x2xf32>
    %216 = vector.multi_reduction <add>, %215, %cst_79 [2] : vector<4x2x2xf32> to vector<4x2xf32>
    %217 = vector.shape_cast %216 : vector<4x2xf32> to vector<4x2x1xf32>
    %cst_80 = arith.constant 1.000000e+00 : f32
    %218 = vector.broadcast %cst_80 : f32 to vector<4x2x1xf32>
    %219 = arith.divf %218, %217 : vector<4x2x1xf32>
    %220 = vector.broadcast %219 : vector<4x2x1xf32> to vector<4x2x2xf32>
    %221 = arith.mulf %215, %220 : vector<4x2x2xf32>
    "tpu.trace_start"() <{level = 10 : i32, message = "nlm,nmd->nld"}> : () -> ()
    %cst_81 = arith.constant dense<0.000000e+00> : vector<4x2x8xf32>
    %222 = tpu.matmul %221, %207, %cst_81 {dimension_numbers = #tpu.dot_dimension_numbers<[2], [1], [1], [2], [0, 0, 0, 1, 1, 2], [0], [0]>} : vector<4x2x2xf32>, vector<4x2x8xf32>, vector<4x2x8xf32> -> vector<4x2x8xf32>
    "tpu.trace_stop"() : () -> ()
    %223 = vector.shape_cast %222 : vector<4x2x8xf32> to vector<8x8xf32>
    %224 = vector.extract_strided_slice %2 {offsets = [8, 0], sizes = [8, 32], strides = [1, 1]} : vector<32x32xf32> to vector<8x32xf32>
    %cst_82 = arith.constant dense<0.000000e+00> : vector<8x32xf32>
    %225 = tpu.matmul %223, %224, %cst_82 {dimension_numbers = #tpu.dot_dimension_numbers<[1], [0], [0], [1], [0, 0, 1, 1], [], []>} : vector<8x8xf32>, vector<8x32xf32>, vector<8x32xf32> -> vector<8x32xf32>
    %226 = arith.addf %201, %225 : vector<8x32xf32>
    %227 = vector.extract_strided_slice %175 {offsets = [0, 16], sizes = [8, 8], strides = [1, 1]} : vector<8x96xf32> to vector<8x8xf32>
    %228 = vector.shape_cast %227 : vector<8x8xf32> to vector<4x2x8xf32>
    %229 = vector.extract_strided_slice %175 {offsets = [0, 48], sizes = [8, 8], strides = [1, 1]} : vector<8x96xf32> to vector<8x8xf32>
    %230 = vector.shape_cast %229 : vector<8x8xf32> to vector<4x2x8xf32>
    %231 = vector.extract_strided_slice %175 {offsets = [0, 80], sizes = [8, 8], strides = [1, 1]} : vector<8x96xf32> to vector<8x8xf32>
    %232 = vector.shape_cast %231 : vector<8x8xf32> to vector<4x2x8xf32>
    "tpu.trace_start"() <{level = 10 : i32, message = "nld,nmd->nlm"}> : () -> ()
    %cst_83 = arith.constant dense<0.000000e+00> : vector<4x2x2xf32>
    %233 = tpu.matmul %228, %230, %cst_83 {dimension_numbers = #tpu.dot_dimension_numbers<[2], [2], [1], [1], [0, 0, 0, 1, 1, 1], [0], [0]>} : vector<4x2x8xf32>, vector<4x2x8xf32>, vector<4x2x2xf32> -> vector<4x2x2xf32>
    "tpu.trace_stop"() : () -> ()
    %cst_84 = arith.constant 0.353553385 : f32
    %234 = vector.broadcast %cst_84 : f32 to vector<4x2x2xf32>
    %235 = arith.mulf %233, %234 : vector<4x2x2xf32>
    %cst_85 = arith.constant dense<0xFF800000> : vector<4x2xf32>
    %236 = vector.multi_reduction <maximumf>, %235, %cst_85 [2] : vector<4x2x2xf32> to vector<4x2xf32>
    %237 = vector.shape_cast %236 : vector<4x2xf32> to vector<4x2x1xf32>
    %238 = vector.broadcast %237 : vector<4x2x1xf32> to vector<4x2x2xf32>
    %239 = arith.subf %235, %238 : vector<4x2x2xf32>
    %240 = math.exp %239 : vector<4x2x2xf32>
    %cst_86 = arith.constant dense<0.000000e+00> : vector<4x2xf32>
    %241 = vector.multi_reduction <add>, %240, %cst_86 [2] : vector<4x2x2xf32> to vector<4x2xf32>
    %242 = vector.shape_cast %241 : vector<4x2xf32> to vector<4x2x1xf32>
    %cst_87 = arith.constant 1.000000e+00 : f32
    %243 = vector.broadcast %cst_87 : f32 to vector<4x2x1xf32>
    %244 = arith.divf %243, %242 : vector<4x2x1xf32>
    %245 = vector.broadcast %244 : vector<4x2x1xf32> to vector<4x2x2xf32>
    %246 = arith.mulf %240, %245 : vector<4x2x2xf32>
    "tpu.trace_start"() <{level = 10 : i32, message = "nlm,nmd->nld"}> : () -> ()
    %cst_88 = arith.constant dense<0.000000e+00> : vector<4x2x8xf32>
    %247 = tpu.matmul %246, %232, %cst_88 {dimension_numbers = #tpu.dot_dimension_numbers<[2], [1], [1], [2], [0, 0, 0, 1, 1, 2], [0], [0]>} : vector<4x2x2xf32>, vector<4x2x8xf32>, vector<4x2x8xf32> -> vector<4x2x8xf32>
    "tpu.trace_stop"() : () -> ()
    %248 = vector.shape_cast %247 : vector<4x2x8xf32> to vector<8x8xf32>
    %249 = vector.extract_strided_slice %2 {offsets = [16, 0], sizes = [8, 32], strides = [1, 1]} : vector<32x32xf32> to vector<8x32xf32>
    %cst_89 = arith.constant dense<0.000000e+00> : vector<8x32xf32>
    %250 = tpu.matmul %248, %249, %cst_89 {dimension_numbers = #tpu.dot_dimension_numbers<[1], [0], [0], [1], [0, 0, 1, 1], [], []>} : vector<8x8xf32>, vector<8x32xf32>, vector<8x32xf32> -> vector<8x32xf32>
    %251 = arith.addf %226, %250 : vector<8x32xf32>
    %252 = vector.extract_strided_slice %175 {offsets = [0, 24], sizes = [8, 8], strides = [1, 1]} : vector<8x96xf32> to vector<8x8xf32>
    %253 = vector.shape_cast %252 : vector<8x8xf32> to vector<4x2x8xf32>
    %254 = vector.extract_strided_slice %175 {offsets = [0, 56], sizes = [8, 8], strides = [1, 1]} : vector<8x96xf32> to vector<8x8xf32>
    %255 = vector.shape_cast %254 : vector<8x8xf32> to vector<4x2x8xf32>
    %256 = vector.extract_strided_slice %175 {offsets = [0, 88], sizes = [8, 8], strides = [1, 1]} : vector<8x96xf32> to vector<8x8xf32>
    %257 = vector.shape_cast %256 : vector<8x8xf32> to vector<4x2x8xf32>
    "tpu.trace_start"() <{level = 10 : i32, message = "nld,nmd->nlm"}> : () -> ()
    %cst_90 = arith.constant dense<0.000000e+00> : vector<4x2x2xf32>
    %258 = tpu.matmul %253, %255, %cst_90 {dimension_numbers = #tpu.dot_dimension_numbers<[2], [2], [1], [1], [0, 0, 0, 1, 1, 1], [0], [0]>} : vector<4x2x8xf32>, vector<4x2x8xf32>, vector<4x2x2xf32> -> vector<4x2x2xf32>
    "tpu.trace_stop"() : () -> ()
    %cst_91 = arith.constant 0.353553385 : f32
    %259 = vector.broadcast %cst_91 : f32 to vector<4x2x2xf32>
    %260 = arith.mulf %258, %259 : vector<4x2x2xf32>
    %cst_92 = arith.constant dense<0xFF800000> : vector<4x2xf32>
    %261 = vector.multi_reduction <maximumf>, %260, %cst_92 [2] : vector<4x2x2xf32> to vector<4x2xf32>
    %262 = vector.shape_cast %261 : vector<4x2xf32> to vector<4x2x1xf32>
    %263 = vector.broadcast %262 : vector<4x2x1xf32> to vector<4x2x2xf32>
    %264 = arith.subf %260, %263 : vector<4x2x2xf32>
    %265 = math.exp %264 : vector<4x2x2xf32>
    %cst_93 = arith.constant dense<0.000000e+00> : vector<4x2xf32>
    %266 = vector.multi_reduction <add>, %265, %cst_93 [2] : vector<4x2x2xf32> to vector<4x2xf32>
    %267 = vector.shape_cast %266 : vector<4x2xf32> to vector<4x2x1xf32>
    %cst_94 = arith.constant 1.000000e+00 : f32
    %268 = vector.broadcast %cst_94 : f32 to vector<4x2x1xf32>
    %269 = arith.divf %268, %267 : vector<4x2x1xf32>
    %270 = vector.broadcast %269 : vector<4x2x1xf32> to vector<4x2x2xf32>
    %271 = arith.mulf %265, %270 : vector<4x2x2xf32>
    "tpu.trace_start"() <{level = 10 : i32, message = "nlm,nmd->nld"}> : () -> ()
    %cst_95 = arith.constant dense<0.000000e+00> : vector<4x2x8xf32>
    %272 = tpu.matmul %271, %257, %cst_95 {dimension_numbers = #tpu.dot_dimension_numbers<[2], [1], [1], [2], [0, 0, 0, 1, 1, 2], [0], [0]>} : vector<4x2x2xf32>, vector<4x2x8xf32>, vector<4x2x8xf32> -> vector<4x2x8xf32>
    "tpu.trace_stop"() : () -> ()
    %273 = vector.shape_cast %272 : vector<4x2x8xf32> to vector<8x8xf32>
    %274 = vector.extract_strided_slice %2 {offsets = [24, 0], sizes = [8, 32], strides = [1, 1]} : vector<32x32xf32> to vector<8x32xf32>
    %cst_96 = arith.constant dense<0.000000e+00> : vector<8x32xf32>
    %275 = tpu.matmul %273, %274, %cst_96 {dimension_numbers = #tpu.dot_dimension_numbers<[1], [0], [0], [1], [0, 0, 1, 1], [], []>} : vector<8x8xf32>, vector<8x32xf32>, vector<8x32xf32> -> vector<8x32xf32>
    %276 = arith.addf %251, %275 : vector<8x32xf32>
    %277 = vector.broadcast %3 : vector<1x32xf32> to vector<8x32xf32>
    %278 = arith.addf %276, %277 : vector<8x32xf32>
    %279 = arith.addf %172, %278 : vector<8x32xf32>
    %cst_97 = arith.constant dense<0.000000e+00> : vector<8xf32>
    %280 = vector.multi_reduction <add>, %279, %cst_97 [1] : vector<8x32xf32> to vector<8xf32>
    %281 = vector.shape_cast %280 : vector<8xf32> to vector<8x1xf32>
    %cst_98 = arith.constant 3.200000e+01 : f32
    %282 = vector.broadcast %cst_98 : f32 to vector<8x1xf32>
    %283 = arith.divf %281, %282 : vector<8x1xf32>
    %284 = vector.broadcast %283 : vector<8x1xf32> to vector<8x32xf32>
    %285 = arith.subf %279, %284 : vector<8x32xf32>
    %286 = arith.mulf %285, %285 : vector<8x32xf32>
    %cst_99 = arith.constant dense<0.000000e+00> : vector<8xf32>
    %287 = vector.multi_reduction <add>, %286, %cst_99 [1] : vector<8x32xf32> to vector<8xf32>
    %288 = vector.shape_cast %287 : vector<8xf32> to vector<8x1xf32>
    %cst_100 = arith.constant 3.200000e+01 : f32
    %289 = vector.broadcast %cst_100 : f32 to vector<8x1xf32>
    %290 = arith.divf %288, %289 : vector<8x1xf32>
    %291 = vector.broadcast %283 : vector<8x1xf32> to vector<8x32xf32>
    %292 = arith.subf %279, %291 : vector<8x32xf32>
    %cst_101 = arith.constant 9.99999974E-6 : f32
    %293 = vector.broadcast %cst_101 : f32 to vector<8x1xf32>
    %294 = arith.addf %290, %293 : vector<8x1xf32>
    %295 = math.rsqrt %294 : vector<8x1xf32>
    %296 = vector.broadcast %295 : vector<8x1xf32> to vector<8x32xf32>
    %297 = arith.mulf %292, %296 : vector<8x32xf32>
    %298 = vector.broadcast %8 : vector<1x32xf32> to vector<8x32xf32>
    %299 = arith.mulf %297, %298 : vector<8x32xf32>
    %300 = vector.broadcast %9 : vector<1x32xf32> to vector<8x32xf32>
    %301 = arith.addf %299, %300 : vector<8x32xf32>
    %cst_102 = arith.constant dense<0.000000e+00> : vector<8x128xf32>
    %302 = tpu.matmul %301, %4, %cst_102 {dimension_numbers = #tpu.dot_dimension_numbers<[1], [0], [0], [1], [0, 0, 1, 1], [], []>} : vector<8x32xf32>, vector<32x128xf32>, vector<8x128xf32> -> vector<8x128xf32>
    %303 = vector.broadcast %5 : vector<1x128xf32> to vector<8x128xf32>
    %304 = arith.addf %302, %303 : vector<8x128xf32>
    %cst_103 = arith.constant 0.000000e+00 : f32
    %305 = vector.broadcast %cst_103 : f32 to vector<8x128xf32>
    %306 = arith.maximumf %304, %305 : vector<8x128xf32>
    %cst_104 = arith.constant dense<0.000000e+00> : vector<8x32xf32>
    %307 = tpu.matmul %306, %6, %cst_104 {dimension_numbers = #tpu.dot_dimension_numbers<[1], [0], [0], [1], [0, 0, 1, 1], [], []>} : vector<8x128xf32>, vector<128x32xf32>, vector<8x32xf32> -> vector<8x32xf32>
    %308 = vector.broadcast %7 : vector<1x32xf32> to vector<8x32xf32>
    %309 = arith.addf %307, %308 : vector<8x32xf32>
    %310 = arith.addf %301, %309 : vector<8x32xf32>
    %cst_105 = arith.constant dense<0.000000e+00> : vector<8xf32>
    %311 = vector.multi_reduction <add>, %310, %cst_105 [1] : vector<8x32xf32> to vector<8xf32>
    %312 = vector.shape_cast %311 : vector<8xf32> to vector<8x1xf32>
    %cst_106 = arith.constant 3.200000e+01 : f32
    %313 = vector.broadcast %cst_106 : f32 to vector<8x1xf32>
    %314 = arith.divf %312, %313 : vector<8x1xf32>
    %315 = vector.broadcast %314 : vector<8x1xf32> to vector<8x32xf32>
    %316 = arith.subf %310, %315 : vector<8x32xf32>
    %317 = arith.mulf %316, %316 : vector<8x32xf32>
    %cst_107 = arith.constant dense<0.000000e+00> : vector<8xf32>
    %318 = vector.multi_reduction <add>, %317, %cst_107 [1] : vector<8x32xf32> to vector<8xf32>
    %319 = vector.shape_cast %318 : vector<8xf32> to vector<8x1xf32>
    %cst_108 = arith.constant 3.200000e+01 : f32
    %320 = vector.broadcast %cst_108 : f32 to vector<8x1xf32>
    %321 = arith.divf %319, %320 : vector<8x1xf32>
    %322 = vector.broadcast %314 : vector<8x1xf32> to vector<8x32xf32>
    %323 = arith.subf %310, %322 : vector<8x32xf32>
    %cst_109 = arith.constant 9.99999974E-6 : f32
    %324 = vector.broadcast %cst_109 : f32 to vector<8x1xf32>
    %325 = arith.addf %321, %324 : vector<8x1xf32>
    %326 = math.rsqrt %325 : vector<8x1xf32>
    %327 = vector.broadcast %326 : vector<8x1xf32> to vector<8x32xf32>
    %328 = arith.mulf %323, %327 : vector<8x32xf32>
    %329 = vector.broadcast %10 : vector<1x32xf32> to vector<8x32xf32>
    %330 = arith.mulf %328, %329 : vector<8x32xf32>
    %331 = vector.broadcast %11 : vector<1x32xf32> to vector<8x32xf32>
    %332 = arith.addf %330, %331 : vector<8x32xf32>
    %c0_110 = arith.constant 0 : index
    %c0_111 = arith.constant 0 : index
    %333 = vector.load %arg14[%c0_110, %c0_111] : memref<8x32xf32, #tpu.memory_space<vmem>>, vector<8x32xf32>
    tpu.vector_store %arg14[%c0_110, %c0_111], %332 {strides = array<i32>} : memref<8x32xf32, #tpu.memory_space<vmem>>, vector<8x32xf32>,
    return
  }
  func.func @transform_0(%arg0: i32) -> (i32, i32) {
    %c0_i32 = arith.constant 0 : i32
    %c0_i32_0 = arith.constant 0 : i32
    return %arg0, %c0_i32 : i32, i32
  }
  func.func @transform_1(%arg0: i32) -> (i32, i32) {
    %c0_i32 = arith.constant 0 : i32
    %c0_i32_0 = arith.constant 0 : i32
    %c0_i32_1 = arith.constant 0 : i32
    return %c0_i32, %c0_i32_0 : i32, i32
  }
  func.func @transform_2(%arg0: i32) -> (i32, i32) {
    %c0_i32 = arith.constant 0 : i32
    %c0_i32_0 = arith.constant 0 : i32
    %c0_i32_1 = arith.constant 0 : i32
    return %c0_i32, %c0_i32_0 : i32, i32
  }
  func.func @transform_3(%arg0: i32) -> (i32, i32) {
    %c0_i32 = arith.constant 0 : i32
    %c0_i32_0 = arith.constant 0 : i32
    %c0_i32_1 = arith.constant 0 : i32
    return %c0_i32, %c0_i32_0 : i32, i32
  }
  func.func @transform_4(%arg0: i32) -> (i32, i32) {
    %c0_i32 = arith.constant 0 : i32
    %c0_i32_0 = arith.constant 0 : i32
    %c0_i32_1 = arith.constant 0 : i32
    return %c0_i32, %c0_i32_0 : i32, i32
  }
  func.func @transform_5(%arg0: i32) -> (i32, i32) {
    %c0_i32 = arith.constant 0 : i32
    %c0_i32_0 = arith.constant 0 : i32
    %c0_i32_1 = arith.constant 0 : i32
    return %c0_i32, %c0_i32_0 : i32, i32
  }
  func.func @transform_6(%arg0: i32) -> (i32, i32) {
    %c0_i32 = arith.constant 0 : i32
    %c0_i32_0 = arith.constant 0 : i32
    %c0_i32_1 = arith.constant 0 : i32
    return %c0_i32, %c0_i32_0 : i32, i32
  }
  func.func @transform_7(%arg0: i32) -> (i32, i32) {
    %c0_i32 = arith.constant 0 : i32
    %c0_i32_0 = arith.constant 0 : i32
    %c0_i32_1 = arith.constant 0 : i32
    return %c0_i32, %c0_i32_0 : i32, i32
  }
  func.func @transform_8(%arg0: i32) -> (i32, i32) {
    %c0_i32 = arith.constant 0 : i32
    %c0_i32_0 = arith.constant 0 : i32
    %c0_i32_1 = arith.constant 0 : i32
    return %c0_i32, %c0_i32_0 : i32, i32
  }
  func.func @transform_9(%arg0: i32) -> (i32, i32) {
    %c0_i32 = arith.constant 0 : i32
    %c0_i32_0 = arith.constant 0 : i32
    %c0_i32_1 = arith.constant 0 : i32
    return %c0_i32, %c0_i32_0 : i32, i32
  }
  func.func @transform_10(%arg0: i32) -> (i32, i32) {
    %c0_i32 = arith.constant 0 : i32
    %c0_i32_0 = arith.constant 0 : i32
    %c0_i32_1 = arith.constant 0 : i32
    return %c0_i32, %c0_i32_0 : i32, i32
  }
  func.func @transform_11(%arg0: i32) -> (i32, i32) {
    %c0_i32 = arith.constant 0 : i32
    %c0_i32_0 = arith.constant 0 : i32
    %c0_i32_1 = arith.constant 0 : i32
    return %c0_i32, %c0_i32_0 : i32, i32
  }
  func.func @transform_12(%arg0: i32) -> (i32, i32) {
    %c0_i32 = arith.constant 0 : i32
    %c0_i32_0 = arith.constant 0 : i32
    %c0_i32_1 = arith.constant 0 : i32
    return %c0_i32, %c0_i32_0 : i32, i32
  }
  func.func @transform_13(%arg0: i32) -> (i32, i32) {
    %c0_i32 = arith.constant 0 : i32
    %c0_i32_0 = arith.constant 0 : i32
    return %arg0, %c0_i32 : i32, i32
  }
}

</mosaic_0001>

<bundles_post_ra>
// kernel: cbert_forward.1
= control target key start
LH: loop header
LB: loop body
LE: loop exit
PB: predicated region body
PF: predicated region fallthrough
CT: control target
= control target key end

     0   :  { %s4277_s25 = smov 0   ;;  %s5203_s0 = inlined_call_operand.vmem [shape: f32[16,32], index: 0, kind: input, shape index: {}, may-alias: {0,13}]   ;;  %s5204_s1 = inlined_call_operand.vmem [shape: f32[32,96], index: 1, kind: input, shape index: {}]   ;;  %s5205_s2 = inlined_call_operand.vmem [shape: f32[1,96], index: 2, kind: input, shape index: {}]   ;;  %s5206_s3 = inlined_call_operand.vmem [shape: f32[32,32], index: 3, kind: input, shape index: {}]   ;;  %s5207_s4 = inlined_call_operand.vmem [shape: f32[1,32], index: 4, kind: input, shape index: {}]   ;;  %s5208_s5 = inlined_call_operand.vmem [shape: f32[32,128], index: 5, kind: input, shape index: {}]   ;;  %s5209_s6 = inlined_call_operand.vmem [shape: f32[1,128], index: 6, kind: input, shape index: {}]   ;;  %s5210_s7 = inlined_call_operand.vmem [shape: f32[128,32], index: 7, kind: input, shape index: {}]   ;;  %s5211_s8 = inlined_call_operand.vmem [shape: f32[1,32], index: 8, kind: input, shape index: {}]   ;;  %s5212_s9 = inlined_call_operand.vmem [shape: f32[1,32], index: 9, kind: input, shape index: {}]   ;;  %s5213_s10 = inlined_call_operand.vmem [shape: f32[1,32], index: 10, kind: input, shape index: {}]   ;;  %s5214_s11 = inlined_call_operand.vmem [shape: f32[1,32], index: 11, kind: input, shape index: {}]   ;;  %s5215_s12 = inlined_call_operand.vmem [shape: f32[1,32], index: 12, kind: input, shape index: {}]   ;;  %s5216_s13 = inlined_call_operand.vmem [shape: f32[16,32], index: 13, kind: output, shape index: {}, may-alias: {0,13}]  }
   0x1 LB: > { %s3835_s26 = sadd.s32 4294967295, %s4193_s25   ;;  %p3839_p0 = scmp.ge.s32.totalorder %s4193_s25, 1  ;;  %s4193_s25 = sphi %s4277_s25, %s23_s25  }
   0x2   : > { %p386_p1 = scmp.lt.s32.totalorder %s4193_s25, 3 }
   0x4   : > { %p387_p2 = pnand %p3839_p0, %p386_p1 }
   0x5   : > { %p428_p3 = scmp.lt.s32.totalorder (!%p387_p2), %s3835_s26, 1  ;;  %s4195_s24 = smov (!%p387_p2), 96  }
   0x6   : > { %390 = sbr.rel (%p387_p2) target bundleno = 7225 (0x1c39), region = 72  ;;  %s4196_s27 = smov (!%p387_p2), 64  }
   0x7   : > { %s4197_s28 = smov (!%p387_p2), 88   ;;  %s4198_s29 = smov (!%p387_p2), 120  }
   0x8   : > { %s4199_s30 = smov (!%p387_p2), 56   ;;  %s5228_s19 = smov (!%p387_p2), 112  }
   0x9   : > { %s5226_s20 = smov (!%p387_p2), 80   ;;  %s5224_s22 = smov (!%p387_p2), 48  }
   0xa   : > { %s5220_s15 = smov (!%p387_p2), 104   ;;  %s5222_s16 = smov (!%p387_p2), 72  }
   0xb   : > { %v439_v0 = vld [vmem:[%s5204_s1 + $0x18] sm:$0xff]  ;;  %v438_v1 = vld [vmem:[%s5204_s1 + $0x10] sm:$0xff]  ;;  %v437_v2 = vld [vmem:[%s5204_s1 + $0x8] sm:$0xff]  ;;  %s5240_s26 = smov (!%p428_p3, %s3835_s26), 1  ;;  %vm476_vm0 = vcmask 261120   ;;  %vm508_vm1 = vcmask 64512  }
   0xc   : > { %492 = vmatpush.msra.mxu0 %v439_v0  ;;  %v436_v3 = vld [vmem:[%s5204_s1] sm:$0xff]  ;;  %s5217_s18 = sshll.u32 %s5240_s26, 3  ;;  %vm621_vm2 = vcmask 9216   ;;  %vm730_vm3 = vcmask 1041408   ;;  %vm726_vm8 = vcmask 15360   ;;  %s5218_s17 = smov 40  }
   0xd   : > { %s4305_s21 = scalar_lea.vmem %s5203_s0, %s5217_s18  ;;  %v4004_v5 = vld [vmem:[%s5205_s2] ss:$0 sm:$0xff] }
   0xe   : > { %493 = vmatpush.msra.mxu0 %v438_v1  ;;  %v472_v4 = vld [vmem:[%s4305_s21] sm:$0xff] }
  0x10   : > { %494 = vmatpush.msra.mxu0 %v437_v2 }
  0x12   : > { %495 = vmatpush.msra.mxu0 %v436_v3 }
  0x13   : > { %3842 = vmatmul.msk.f32.vlgmr.msra.gmra.mxu0 %vm476_vm0, %v472_v4 }
  0x90   : > { %v497_v6 = vpop.f32.mrf.mxu0 }
  0x91   : > { %v4312_v7 = vadd.f32 %v4004_v5, %v497_v6 }
  0x93   : > { %504 = vst [vmem:[#allocation1] ss:$4 sm:$0xff] %v4312_v7  ;;  %v4316_v8 = vrot.slane %v4312_v7, 2  ;;  %v4321_v10 = vrot.slane %v4312_v7, 4  ;;  %v4326_v12 = vrot.slane %v4312_v7, 6 }
  0x9a   : > { %v505_v9 = vld.sshfl [vmem:[#allocation1] sm:$0xff pattern:$0x73625140] }
  0x9b   : > { %533 = vst [vmem:[#allocation1] ss:$4 sm:$0xff] %v4316_v8  ;;  %506 = vrot.lane.b32.xlu0 %v505_v9, %s4195_s24 }
  0xa2   : > { %v534_v11 = vld.sshfl [vmem:[#allocation1] sm:$0xff pattern:$0x73625140] }
  0xa3   : > { %561 = vst [vmem:[#allocation1] ss:$4 sm:$0xff] %v4321_v10  ;;  %535 = vrot.lane.b32.xlu0 %v534_v11, %s4195_s24 }
  0xaa   : > { %v562_v13 = vld.sshfl [vmem:[#allocation1] sm:$0xff pattern:$0x73625140] }
  0xab   : > { %589 = vst [vmem:[#allocation1] ss:$4 sm:$0xff] %v4326_v12  ;;  %563 = vrot.lane.b32.xlu1 %v562_v13, %s4195_s24 }
  0xb2   : > { %v590_v14 = vld.sshfl [vmem:[#allocation1] sm:$0xff pattern:$0x73625140] }
  0xb3   : > { %722 = vst [vmem:[#allocation1] ss:$4 sm:$0xff] %v4312_v7  ;;  %591 = vrot.lane.b32.xlu1 %v590_v14, %s4195_s24 }
  0xba   : > { %v723_v15 = vld.sshfl [vmem:[#allocation1] sm:$0xff pattern:$0x73625140] }
  0xbb   : > { %753 = vst [vmem:[#allocation1] ss:$4 sm:$0xff] %v4316_v8 }
  0xc2   : > { %v754_v16 = vld.sshfl [vmem:[#allocation1] sm:$0xff pattern:$0x73625140] }
  0xc3   : > { %782 = vst [vmem:[#allocation1] ss:$4 sm:$0xff] %v4321_v10 }
  0xca   : > { %v4334_v17 = vld.sshfl [vmem:[#allocation1] sm:$0xff pattern:$0x73625140] }
  0xcb   : > { %811 = vst [vmem:[#allocation1] ss:$4 sm:$0xff] %v4326_v12 }
  0xd2   : > { %v812_v18 = vld.sshfl [vmem:[#allocation1] sm:$0xff pattern:$0x73625140] }
  0xd3   : > { %840 = vst [vmem:[#allocation1] ss:$4 sm:$0xff] %v4312_v7 }
  0xda   : > { %v841_v19 = vld.sshfl [vmem:[#allocation1] sm:$0xff pattern:$0x73625140] }
  0xdb   : > { %844 = vst [vmem:[#allocation1] ss:$4 sm:$0xff] %v4312_v7 }
  0xe2   : > { %v845_v20 = vld.sshfl [vmem:[#allocation1] sm:$0xff pattern:$0x73625140] }
  0xe3   : > { %872 = vst [vmem:[#allocation1] ss:$4 sm:$0xff] %v4316_v8 }
  0xea   : > { %v873_v21 = vld.sshfl [vmem:[#allocation1] sm:$0xff pattern:$0x73625140] }
  0xeb   : > { %876 = vst [vmem:[#allocation1] ss:$4 sm:$0xff] %v4316_v8 }
  0xf2   : > { %v877_v22 = vld.sshfl [vmem:[#allocation1] sm:$0xff pattern:$0x73625140] }
  0xf3   : > { %904 = vst [vmem:[#allocation1] ss:$4 sm:$0xff] %v4321_v10 }
  0xfa   : > { %v905_v23 = vld.sshfl [vmem:[#allocation1] sm:$0xff pattern:$0x73625140] }
  0xfb   : > { %908 = vst [vmem:[#allocation1] ss:$4 sm:$0xff] %v4321_v10 }
 0x102   : > { %v909_v24 = vld.sshfl [vmem:[#allocation1] sm:$0xff pattern:$0x73625140] }
 0x103   : > { %936 = vst [vmem:[#allocation1] ss:$4 sm:$0xff] %v4326_v12 }
 0x10a   : > { %v4344_v25 = vld.sshfl [vmem:[#allocation1] sm:$0xff pattern:$0x73625140] }
 0x10b   : > { %940 = vst [vmem:[#allocation1] ss:$4 sm:$0xff] %v4326_v12 }
 0x10d   : > { %v507_v26 = vpop.permute.xlu0 %506 }
 0x10e   : > { %3843 = vmatpush.xpose.msk.msra.mxu2 %vm508_vm1, %v507_v26 }
 0x111   : > { %3844 = vmatmul.msk.f32.vlgmr.msra.gmra.mxu2 %vm508_vm1, %v4312_v7 }
 0x112   : > { %v941_v27 = vld.sshfl [vmem:[#allocation1] sm:$0xff pattern:$0x73625140] }
 0x113   : > { %1072 = vst [vmem:[#allocation1] ss:$4 sm:$0xff] %v4312_v7 }
 0x115   : > { %v536_v28 = vpop.permute.xlu0 %535 }
 0x116   : > { %3845 = vmatpush.xpose.msk.msrb.mxu2 %vm508_vm1, %v536_v28 }
 0x119   : > { %3846 = vmatmul.msk.f32.vlgmr.msrb.gmra.mxu2 %vm508_vm1, %v4316_v8 }
 0x11a   : > { %v4354_v29 = vld.sshfl [vmem:[#allocation1] sm:$0xff pattern:$0x73625140] }
 0x11b   : > { %1101 = vst [vmem:[#allocation1] ss:$4 sm:$0xff] %v4316_v8 }
 0x11d   : > { %v564_v30 = vpop.permute.xlu1 %563 }
 0x11e   : > { %3847 = vmatpush.xpose.msk.msra.mxu3 %vm508_vm1, %v564_v30 }
 0x121   : > { %3848 = vmatmul.msk.f32.vlgmr.msra.gmra.mxu3 %vm508_vm1, %v4321_v10 }
 0x122   : > { %v4360_v31 = vld.sshfl [vmem:[#allocation1] sm:$0xff pattern:$0x73625140] }
 0x123   : > { %1130 = vst [vmem:[#allocation1] ss:$4 sm:$0xff] %v4321_v10 }
 0x125   : > { %v592_v32 = vpop.permute.xlu1 %591 }
 0x126   : > { %3849 = vmatpush.xpose.msk.msrb.mxu3 %vm508_vm1, %v592_v32 }
 0x129   : > { %3850 = vmatmul.msk.f32.vlgmr.msrb.gmra.mxu3 %vm508_vm1, %v4326_v12 }
 0x12a   : > { %v4366_v33 = vld.sshfl [vmem:[#allocation1] sm:$0xff pattern:$0x73625140] }
 0x12b   : > { %1159 = vst [vmem:[#allocation1] ss:$4 sm:$0xff] %v4326_v12 }
 0x194   : > { %v530_v34 = vpop.f32.mrf.mxu2 }
 0x195   : > { %v617_v35 = vmul.f32 0.35355338, %v530_v34 }
 0x197   : > { %v622_v36 = vsel %vm621_vm2, %v617_v35, -inf }
 0x198   : > { %623 = vmax.xlane.f32.xlu2 %v622_v36 }
 0x19c   : > { %v558_v37 = vpop.f32.mrf.mxu2 }
 0x19d   : > { %v618_v38 = vmul.f32 0.35355338, %v558_v37 }
 0x19f   : > { %v625_v39 = vsel %vm621_vm2, %v618_v38, -inf }
 0x1a0   : > { %626 = vmax.xlane.f32.xlu2 %v625_v39 }
 0x1a4   : > { %v586_v40 = vpop.f32.mrf.mxu3 }
 0x1a5   : > { %v619_v41 = vmul.f32 0.35355338, %v586_v40 }
 0x1a7   : > { %v628_v42 = vsel %vm621_vm2, %v619_v41, -inf }
 0x1a8   : > { %629 = vmax.xlane.f32.xlu0 %v628_v42 }
 0x1ac   : > { %v614_v43 = vpop.f32.mrf.mxu3 }
 0x1ad   : > { %v620_v44 = vmul.f32 0.35355338, %v614_v43 }
 0x1af   : > { %v631_v45 = vsel %vm621_vm2, %v620_v44, -inf }
 0x1b0   : > { %632 = vmax.xlane.f32.xlu1 %v631_v45 }
 0x1b8   : > { %724 = vrot.lane.b32.xlu2 %v723_v15, %s4196_s27 }
 0x1bc   : > { %755 = vrot.lane.b32.xlu0 %v754_v16, %s4196_s27 }
 0x1c0   : > { %846 = vrot.lane.b32.xlu2 %v845_v20, %s4197_s28 }
 0x1c4   : > { %878 = vrot.lane.b32.xlu0 %v877_v22, %s4197_s28 }
 0x1c8   : > { %842 = vrot.lane.b32.xlu2 %v841_v19, %s4198_s29 }
 0x1c9   : > { %784 = vrot.lane.b32.xlu1 %v4334_v17, %s4196_s27 }
 0x1cc   : > { %813 = vrot.lane.b32.xlu0 %v812_v18, %s4196_s27 }
 0x1d0   : > { %910 = vrot.lane.b32.xlu2 %v909_v24, %s4197_s28 }
 0x1d1   : > { %874 = vrot.lane.b32.xlu1 %v873_v21, %s4198_s29 }
 0x1d4   : > { %906 = vrot.lane.b32.xlu0 %v905_v23, %s4198_s29 }
 0x1d9   : > { %942 = vrot.lane.b32.xlu1 %v941_v27, %s4197_s28 }
 0x20b   : > { %v624_v46 = vpop.xlane.xlu2 %623 }
 0x20c   : > { %v634_v47 = vsub.f32 %v617_v35, %v624_v46 }
 0x20e   : > { %v638_v48 = vmul.f32 1.442695, %v634_v47 }
 0x210   : > { %4012 = vpow2.f32 %v638_v48 }
 0x213   : > { %v627_v49 = vpop.xlane.xlu2 %626 }
 0x214   : > { %v635_v50 = vsub.f32 %v618_v38, %v627_v49 }
 0x216   : > { %v4385_v51 = vpop.eup %4012  ;;  %v640_v52 = vmul.f32 1.442695, %v635_v50 }
 0x217   : > { %v646_v53 = vsel %vm621_vm2, %v4385_v51, 0.0 }
 0x218   : > { %4014 = vpow2.f32 %v640_v52  ;;  %647 = vadd.xlane.f32.xlu2 %v646_v53 }
 0x21b   : > { %v630_v54 = vpop.xlane.xlu0 %629  ;;  %v725_v55 = vpop.permute.xlu2 %724 }
 0x21c   : > { %v636_v56 = vsub.f32 %v619_v41, %v630_v54  ;;  %3851 = vmatpush.msk.msra.mxu2 %vm730_vm3, %v725_v55 }
 0x21e   : > { %v4390_v57 = vpop.eup %4014  ;;  %v642_v58 = vmul.f32 1.442695, %v636_v56 }
 0x21f   : > { %v649_v59 = vsel %vm621_vm2, %v4390_v57, 0.0 }
 0x220   : > { %4016 = vpow2.f32 %v642_v58  ;;  %650 = vadd.xlane.f32.xlu2 %v649_v59 }
 0x223   : > { %v633_v60 = vpop.xlane.xlu1 %632  ;;  %v847_v61 = vpop.permute.xlu2 %846 }
 0x224   : > { %v637_v62 = vsub.f32 %v620_v44, %v633_v60  ;;  %3859 = vmatpush.xpose.msk.msrb.mxu2 %vm508_vm1, %v847_v61 }
 0x226   : > { %v4395_v63 = vpop.eup %4016  ;;  %v644_v0 = vmul.f32 1.442695, %v637_v62 }
 0x227   : > { %v652_v1 = vsel %vm621_vm2, %v4395_v63, 0.0 }
 0x228   : > { %4018 = vpow2.f32 %v644_v0  ;;  %653 = vadd.xlane.f32.xlu2 %v652_v1 }
 0x22b   : > { %v843_v14 = vpop.permute.xlu2 %842 }
 0x22e   : > { %v4399_v2 = vpop.eup %4018  ;;  %v756_v3 = vpop.permute.xlu0 %755 }
 0x22f   : > { %3853 = vmatpush.msk.msra.mxu3 %vm730_vm3, %v756_v3  ;;  %v655_v4 = vsel %vm621_vm2, %v4399_v2, 0.0 }
 0x230   : > { %656 = vadd.xlane.f32.xlu2 %v655_v4 }
 0x233   : > { %v4412_v15 = vpop.permute.xlu2 %910 }
 0x236   : > { %v879_v5 = vpop.permute.xlu0 %878 }
 0x237   : > { %3861 = vmatpush.xpose.msk.msrb.mxu3 %vm508_vm1, %v879_v5 }
 0x23b   : > { %v785_v6 = vpop.permute.xlu1 %784 }
 0x23c   : > { %3855 = vmatpush.msk.msrb.mxu0 %vm730_vm3, %v785_v6 }
 0x23e   : > { %v814_v9 = vpop.permute.xlu0 %813 }
 0x23f   : > { %3857 = vmatpush.msk.msra.mxu0 %vm730_vm3, %v814_v9 }
 0x243   : > { %v4407_v11 = vpop.permute.xlu1 %874 }
 0x246   : > { %v907_v5 = vpop.permute.xlu0 %906 }
 0x248   : > { %938 = vrot.lane.b32.xlu2 %v4344_v25, %s4198_s29 }
 0x24b   : > { %v943_v13 = vpop.permute.xlu1 %942 }
 0x24c   : > { %3865 = vmatpush.xpose.msk.msra.mxu1 %vm508_vm1, %v943_v13 }
 0x28b   : > { %v648_v16 = vpop.xlane.xlu2 %647 }
 0x28c   : > { %4020 = vrcp.f32 %v648_v16  ;;  %v669_v22 = vand.u32 2147483648, %v648_v16  ;;  %v667_v23 = vand.u32 2147483647, %v648_v16  ;;  %vm663_vm5 = vweird.f32 %v648_v16 }
 0x28e   : > { %v670_v27 = vor.u32 1.1754944e-38, %v669_v22  ;;  %vm668_vm7 = vcmp.eq.f32.partialorder %v667_v23, 8.507059e+37 }
 0x292   : > { %v4021_v17 = vpop.eup %4020 }
 0x293   : > { %v659_v18 = vmul.f32 %v4021_v17, %v648_v16  ;;  %v651_v19 = vpop.xlane.xlu2 %650  ;;  %vm664_vm4 = vweird.f32 %v4021_v17 }
 0x294   : > { %4022 = vrcp.f32 %v651_v19  ;;  %vm665_vm6 = vmor %vm663_vm5, %vm664_vm4  ;;  %v684_v35 = vand.u32 2147483648, %v651_v19  ;;  %v682_v38 = vand.u32 2147483647, %v651_v19  ;;  %vm678_vm10 = vweird.f32 %v651_v19 }
 0x295   : > { %v660_v20 = vsub.f32 1.0, %v659_v18 }
 0x296   : > { %v685_v41 = vor.u32 1.1754944e-38, %v684_v35  ;;  %vm683_vm12 = vcmp.eq.f32.partialorder %v682_v38, 8.507059e+37 }
 0x297   : > { %v661_v21 = vmul.f32 %v4021_v17, %v660_v20 }
 0x299   : > { %v662_v24 = vadd.f32 %v4021_v17, %v661_v21 }
 0x29a   : > { %v4023_v25 = vpop.eup %4022 }
 0x29b   : > { %v666_v26 = vsel %vm665_vm6, %v4021_v17, %v662_v24  ;;  %v674_v28 = vmul.f32 %v4023_v25, %v651_v19  ;;  %v654_v30 = vpop.xlane.xlu2 %653  ;;  %vm679_vm9 = vweird.f32 %v4023_v25 }
 0x29c   : > { %4024 = vrcp.f32 %v654_v30  ;;  %v671_v34 = vsel %vm668_vm7, %v670_v27, %v666_v26  ;;  %vm680_vm11 = vmor %vm678_vm10, %vm679_vm9  ;;  %v699_v48 = vand.u32 2147483648, %v654_v30  ;;  %v697_v50 = vand.u32 2147483647, %v654_v30 }
 0x29d   : > { %v675_v32 = vsub.f32 1.0, %v674_v28  ;;  %v718_v36 = vmul.f32 %v4385_v51, %v671_v34  ;;  %vm693_vm14 = vweird.f32 %v654_v30 }
 0x29e   : > { %v700_v53 = vor.u32 1.1754944e-38, %v699_v48  ;;  %vm698_vm4 = vcmp.eq.f32.partialorder %v697_v50, 8.507059e+37  ;;  %v1160_v48 = vld.sshfl [vmem:[#allocation1] sm:$0xff pattern:$0x73625140] }
 0x29f   : > { %v676_v37 = vmul.f32 %v4023_v25, %v675_v32  ;;  %3852 = vmatmul.msk.f32.vlgmr.msra.gmra.mxu2 %vm726_vm8, %v718_v36 }
 0x2a1   : > { %v677_v39 = vadd.f32 %v4023_v25, %v676_v37 }
 0x2a2   : > { %v4025_v40 = vpop.eup %4024 }
 0x2a3   : > { %v681_v42 = vsel %vm680_vm11, %v4023_v25, %v677_v39  ;;  %v689_v43 = vmul.f32 %v4025_v40, %v654_v30  ;;  %v657_v44 = vpop.xlane.xlu2 %656  ;;  %vm694_vm13 = vweird.f32 %v4025_v40 }
 0x2a4   : > { %v686_v45 = vsel %vm683_vm12, %v685_v41, %v681_v42  ;;  %4026 = vrcp.f32 %v657_v44  ;;  %vm695_vm15 = vmor %vm693_vm14, %vm694_vm13  ;;  %v714_v60 = vand.u32 2147483648, %v657_v44  ;;  %v712_v62 = vand.u32 2147483647, %v657_v44 }
 0x2a5   : > { %v690_v46 = vsub.f32 1.0, %v689_v43  ;;  %v719_v47 = vmul.f32 %v4390_v57, %v686_v45  ;;  %vm708_vm6 = vweird.f32 %v657_v44 }
 0x2a6   : > { %v715_v1 = vor.u32 1.1754944e-38, %v714_v60  ;;  %vm713_vm9 = vcmp.eq.f32.partialorder %v712_v62, 8.507059e+37 }
 0x2a7   : > { %v691_v49 = vmul.f32 %v4025_v40, %v690_v46  ;;  %3854 = vmatmul.msk.f32.vlgmr.msra.gmra.mxu3 %vm726_vm8, %v719_v47  ;;  %3860 = vmatmul.msk.f32.vlgmr.msrb.gmra.mxu2 %vm508_vm1, %v843_v14 }
 0x2a9   : > { %v692_v51 = vadd.f32 %v4025_v40, %v691_v49 }
 0x2aa   : > { %v4027_v52 = vpop.eup %4026 }
 0x2ab   : > { %v704_v54 = vmul.f32 %v4027_v52, %v657_v44  ;;  %v939_v55 = vpop.permute.xlu2 %938  ;;  %v696_v56 = vsel %vm695_vm15, %v4025_v40, %v692_v51  ;;  %vm709_vm5 = vweird.f32 %v4027_v52 }
 0x2ac   : > { %3866 = vmatmul.msk.f32.vlgmr.msra.gmra.mxu1 %vm508_vm1, %v939_v55  ;;  %v701_v57 = vsel %vm698_vm4, %v700_v53, %v696_v56  ;;  %vm710_vm7 = vmor %vm708_vm6, %vm709_vm5 }
 0x2ad   : > { %v705_v58 = vsub.f32 1.0, %v704_v54  ;;  %v720_v59 = vmul.f32 %v4395_v63, %v701_v57 }
 0x2af   : > { %v706_v61 = vmul.f32 %v4027_v52, %v705_v58  ;;  %3856 = vmatmul.msk.f32.vlgmr.msrb.gmra.mxu0 %vm726_vm8, %v720_v59  ;;  %3862 = vmatmul.msk.f32.vlgmr.msrb.gmra.mxu3 %vm508_vm1, %v4407_v11 }
 0x2b0   : > { %3863 = vmatpush.xpose.msk.msrb.mxu0 %vm508_vm1, %v4412_v15 }
 0x2b1   : > { %v707_v0 = vadd.f32 %v4027_v52, %v706_v61 }
 0x2b3   : > { %v711_v3 = vsel %vm710_vm7, %v4027_v52, %v707_v0 }
 0x2b4   : > { %v716_v4 = vsel %vm713_vm9, %v715_v1, %v711_v3 }
 0x2b5   : > { %v721_v63 = vmul.f32 %v4399_v2, %v716_v4 }
 0x2b7   : > { %3858 = vmatmul.msk.f32.vlgmr.msra.gmra.mxu0 %vm726_vm8, %v721_v63 }
 0x2bf   : > { %3864 = vmatmul.msk.f32.vlgmr.msrb.gmra.mxu0 %vm508_vm1, %v907_v5 }
 0x322   : > { %v4429_v6 = vpop.f32.mrf.mxu2 }
 0x329   : > { %v965_v16 = vpop.f32.mrf.mxu1 }
 0x32a   : > { %v4431_v9 = vpop.f32.mrf.mxu3  ;;  %v869_v11 = vpop.f32.mrf.mxu2  ;;  %v971_v17 = vmul.f32 0.35355338, %v965_v16 }
 0x32b   : > { %v968_v13 = vmul.f32 0.35355338, %v869_v11 }
 0x32c   : > { %v4433_v14 = vpop.f32.mrf.mxu0  ;;  %v981_v21 = vsel %vm621_vm2, %v971_v17, -inf }
 0x32d   : > { %v972_v15 = vsel %vm621_vm2, %v968_v13, -inf }
 0x32e   : > { %973 = vmax.xlane.f32.xlu1 %v972_v15 }
 0x332   : > { %v901_v18 = vpop.f32.mrf.mxu3 }
 0x333   : > { %v969_v2 = vmul.f32 0.35355338, %v901_v18 }
 0x334   : > { %v4436_v19 = vpop.f32.mrf.mxu0 }
 0x335   : > { %v975_v20 = vsel %vm621_vm2, %v969_v2, -inf }
 0x336   : > { %976 = vmax.xlane.f32.xlu0 %v975_v20  ;;  %982 = vmax.xlane.f32.xlu1 %v981_v21 }
 0x33c   : > { %v933_v22 = vpop.f32.mrf.mxu0 }
 0x33d   : > { %v970_v23 = vmul.f32 0.35355338, %v933_v22 }
 0x33f   : > { %v978_v24 = vsel %vm621_vm2, %v970_v23, -inf }
 0x340   : > { %979 = vmax.xlane.f32.xlu2 %v978_v24 }
 0x358   : > { %1074 = vrot.lane.b32.xlu2 %v4354_v29, %s4199_s30 }
 0x3a1   : > { %v974_v25 = vpop.xlane.xlu1 %973 }
 0x3a2   : > { %v984_v34 = vsub.f32 %v968_v13, %v974_v25 }
 0x3a4   : > { %v988_v36 = vmul.f32 1.442695, %v984_v34 }
 0x3a9   : > { %v977_v26 = vpop.xlane.xlu0 %976  ;;  %v983_v28 = vpop.xlane.xlu1 %982 }
 0x3aa   : > { %v985_v27 = vsub.f32 %v969_v2, %v977_v26  ;;  %v987_v30 = vsub.f32 %v971_v17, %v983_v28 }
 0x3ac   : > { %v990_v32 = vmul.f32 1.442695, %v985_v27  ;;  %v994_v35 = vmul.f32 1.442695, %v987_v30 }
 0x3ae   : > { %4028 = vpow2.f32 %v990_v32 }
 0x3af   : > { %4030 = vpow2.f32 %v994_v35 }
 0x3b0   : > { %4032 = vpow2.f32 %v988_v36 }
 0x3b3   : > { %v980_v37 = vpop.xlane.xlu2 %979 }
 0x3b4   : > { %v4443_v38 = vpop.eup %4028  ;;  %v986_v39 = vsub.f32 %v970_v23, %v980_v37 }
 0x3b5   : > { %v4031_v40 = vpop.eup %4030  ;;  %v999_v29 = vsel %vm621_vm2, %v4443_v38, 0.0 }
 0x3b6   : > { %v992_v41 = vmul.f32 1.442695, %v986_v39  ;;  %v1005_v42 = vsel %vm621_vm2, %v4031_v40, 0.0  ;;  %1000 = vadd.xlane.f32.xlu2 %v999_v29  ;;  %v4448_v43 = vpop.eup %4032 }
 0x3b7   : > { %1006 = vadd.xlane.f32.xlu0 %v1005_v42  ;;  %v996_v46 = vsel %vm621_vm2, %v4448_v43, 0.0 }
 0x3b8   : > { %4034 = vpow2.f32 %v992_v41 }
 0x3bb   : > { %v1075_v44 = vpop.permute.xlu2 %1074 }
 0x3bc   : > { %3867 = vmatpush.msk.msra.mxu2 %vm730_vm3, %v1075_v44 }
 0x3be   : > { %v4451_v45 = vpop.eup %4034 }
 0x3bf   : > { %997 = vadd.xlane.f32.xlu0 %v996_v46  ;;  %v1002_v47 = vsel %vm621_vm2, %v4451_v45, 0.0 }
 0x3c0   : > { %1003 = vadd.xlane.f32.xlu1 %v1002_v47  ;;  %v441_v47 = vld [vmem:[%s5206_s3] sm:$0xff] }
 0x3ce   : > { %1161 = vrot.lane.b32.xlu2 %v1160_v48, %s4199_s30 }
 0x3d3   : > { %1132 = vrot.lane.b32.xlu0 %v4366_v33, %s4199_s30 }
 0x3d9   : > { %1103 = vrot.lane.b32.xlu1 %v4360_v31, %s4199_s30 }
 0x429   : > { %v4462_v49 = vpop.xlane.xlu2 %1000 }
 0x42a   : > { %v1007_v50 = vpop.xlane.xlu0 %1006  ;;  %vm1028_vm4 = vweird.f32 %v4462_v49  ;;  %v1034_v27 = vand.u32 2147483648, %v4462_v49  ;;  %v1032_v32 = vand.u32 2147483647, %v4462_v49 }
 0x42b   : > { %4036 = vrcp.f32 %v1007_v50  ;;  %v1064_v57 = vand.u32 2147483648, %v1007_v50  ;;  %v1062_v59 = vand.u32 2147483647, %v1007_v50  ;;  %vm1058_vm11 = vweird.f32 %v1007_v50 }
 0x42c   : > { %4038 = vrcp.f32 %v4462_v49  ;;  %v1035_v41 = vor.u32 1.1754944e-38, %v1034_v27 }
 0x42d   : > { %v1065_v62 = vor.u32 1.1754944e-38, %v1064_v57  ;;  %vm1063_vm13 = vcmp.eq.f32.partialorder %v1062_v59, 8.507059e+37 }
 0x431   : > { %v4037_v51 = vpop.eup %4036  ;;  %v1162_v52 = vpop.permute.xlu2 %1161 }
 0x432   : > { %v4465_v53 = vpop.eup %4038  ;;  %v1054_v54 = vmul.f32 %v4037_v51, %v1007_v50  ;;  %v998_v55 = vpop.xlane.xlu0 %997  ;;  %3873 = vmatpush.msk.msrb.mxu1 %vm730_vm3, %v1162_v52  ;;  %vm1059_vm10 = vweird.f32 %v4037_v51 }
 0x433   : > { %4040 = vrcp.f32 %v998_v55  ;;  %v1004_v56 = vpop.xlane.xlu1 %1003  ;;  %v1024_v31 = vmul.f32 %v4465_v53, %v4462_v49  ;;  %vm1060_vm12 = vmor %vm1058_vm11, %vm1059_vm10  ;;  %v1019_v16 = vand.u32 2147483648, %v998_v55  ;;  %v1017_v2 = vand.u32 2147483647, %v998_v55 }
 0x434   : > { %v1055_v33 = vsub.f32 1.0, %v1054_v54  ;;  %4042 = vrcp.f32 %v1004_v56  ;;  %v1049_v20 = vand.u32 2147483648, %v1004_v56  ;;  %v1047_v22 = vand.u32 2147483647, %v1004_v56 }
 0x435   : > { %v1025_v0 = vsub.f32 1.0, %v1024_v31  ;;  %vm1029_vm5 = vweird.f32 %v4465_v53  ;;  %vm1013_vm6 = vweird.f32 %v998_v55  ;;  %v1020_v25 = vor.u32 1.1754944e-38, %v1019_v16 }
 0x436   : > { %v1056_v58 = vmul.f32 %v4037_v51, %v1055_v33  ;;  %vm1043_vm9 = vweird.f32 %v1004_v56  ;;  %vm1018_vm10 = vcmp.eq.f32.partialorder %v1017_v2, 8.507059e+37  ;;  %v1050_v30 = vor.u32 1.1754944e-38, %v1049_v20 }
 0x437   : > { %v1026_v15 = vmul.f32 %v4465_v53, %v1025_v0 }
 0x438   : > { %v1057_v60 = vadd.f32 %v4037_v51, %v1056_v58 }
 0x439   : > { %v4041_v61 = vpop.eup %4040  ;;  %v1027_v24 = vadd.f32 %v4465_v53, %v1026_v15 }
 0x43a   : > { %v4043_v1 = vpop.eup %4042  ;;  %v1009_v3 = vmul.f32 %v4041_v61, %v998_v55  ;;  %v1061_v4 = vsel %vm1060_vm12, %v4037_v51, %v1057_v60  ;;  %vm1014_vm14 = vweird.f32 %v4041_v61  ;;  %vm1048_vm12 = vcmp.eq.f32.partialorder %v1047_v22, 8.507059e+37 }
 0x43b   : > { %v1039_v63 = vmul.f32 %v4043_v1, %v1004_v56  ;;  %v1066_v5 = vsel %vm1063_vm13, %v1065_v62, %v1061_v4  ;;  %vm1044_vm15 = vweird.f32 %v4043_v1  ;;  %vm1015_vm7 = vmor %vm1013_vm6, %vm1014_vm14  ;;  %vm1033_vm14 = vcmp.eq.f32.partialorder %v1032_v32, 8.507059e+37 }
 0x43c   : > { %v1010_v11 = vsub.f32 1.0, %v1009_v3  ;;  %v1071_v13 = vmul.f32 %v4031_v40, %v1066_v5  ;;  %vm1045_vm11 = vmor %vm1043_vm9, %vm1044_vm15 }
 0x43d   : > { %v1040_v17 = vsub.f32 1.0, %v1039_v63  ;;  %vm1030_vm13 = vmor %vm1028_vm4, %vm1029_vm5 }
 0x43e   : > { %v1011_v18 = vmul.f32 %v4041_v61, %v1010_v11  ;;  %3874 = vmatmul.msk.f32.vlgmr.msrb.gmra.mxu1 %vm726_vm8, %v1071_v13  ;;  %v1031_v39 = vsel %vm1030_vm13, %v4465_v53, %v1027_v24 }
 0x43f   : > { %v1041_v21 = vmul.f32 %v4043_v1, %v1040_v17  ;;  %v1036_v42 = vsel %vm1033_vm14, %v1035_v41, %v1031_v39 }
 0x440   : > { %v1012_v23 = vadd.f32 %v4041_v61, %v1011_v18  ;;  %v1069_v46 = vmul.f32 %v4443_v38, %v1036_v42 }
 0x441   : > { %v1042_v26 = vadd.f32 %v4043_v1, %v1041_v21 }
 0x442   : > { %v1016_v28 = vsel %vm1015_vm7, %v4041_v61, %v1012_v23 }
 0x443   : > { %v1021_v34 = vsel %vm1018_vm10, %v1020_v25, %v1016_v28  ;;  %v1046_v35 = vsel %vm1045_vm11, %v4043_v1, %v1042_v26 }
 0x444   : > { %v1051_v36 = vsel %vm1048_vm12, %v1050_v30, %v1046_v35  ;;  %v1068_v37 = vmul.f32 %v4448_v43, %v1021_v34  ;;  %v442_v43 = vld [vmem:[%s5206_s3 + $0x8] sm:$0xff] }
 0x445   : > { %v1133_v40 = vpop.permute.xlu0 %1132  ;;  %v1070_v29 = vmul.f32 %v4451_v45, %v1051_v36  ;;  %1217 = vmatpush.msrb.mxu2 %v442_v43 }
 0x446   : > { %3868 = vmatmul.msk.f32.vlgmr.msra.gmra.mxu2 %vm726_vm8, %v1068_v37  ;;  %3871 = vmatpush.msk.msra.mxu0 %vm730_vm3, %v1133_v40 }
 0x447   : > { %3872 = vmatmul.msk.f32.vlgmr.msra.gmra.mxu0 %vm726_vm8, %v1070_v29 }
 0x44b   : > { %v1104_v44 = vpop.permute.xlu1 %1103 }
 0x44c   : > { %3869 = vmatpush.msk.msra.mxu3 %vm730_vm3, %v1104_v44 }
 0x44d   : > { %3870 = vmatmul.msk.f32.vlgmr.msra.gmra.mxu3 %vm726_vm8, %v1069_v46 }
 0x44e   : > { %1251 = vmatpush.msrb.mxu3 %v441_v47 }
 0x4bb   : > { %v1185_v45 = vpop.f32.mrf.mxu1 }
 0x4bc   : > { %1198 = vst [vmem:[#allocation1 + $0x3] ss:$4 sm:$0xff] %v1185_v45 }
 0x4c4   : > { %v1156_v48 = vpop.f32.mrf.mxu0 }
 0x4c5   : > { %1196 = vst [vmem:[#allocation1 + $0x2] ss:$4 sm:$0xff] %v1156_v48 }
 0x4c9   : > { %v1098_v49 = vpop.f32.mrf.mxu2 }
 0x4ca   : > { %1192 = vst [vmem:[#allocation1] ss:$4 sm:$0xff] %v1098_v49 }
 0x4d0   : > { %v1127_v38 = vpop.f32.mrf.mxu3 }
 0x4d1   : > { %1194 = vst [vmem:[#allocation1 + $0x1] ss:$4 sm:$0xff] %v1127_v38 }
 0x4d8   : > { %v1199_v50 = vld.sshfl [vmem:[#allocation1] sm:$0xff pattern:$0x73625140] }
 0x4d9   : > { %1226 = vst [vmem:[#allocation1] ss:$4 sm:$0xff] %v4429_v6  ;;  %3875 = vmatmul.msk.f32.vlgmr.msrb.gmra.mxu2 %vm508_vm1, %v1199_v50 }
 0x4da   : > { %1228 = vst [vmem:[#allocation1 + $0x1] ss:$4 sm:$0xff] %v4431_v9 }
 0x4db   : > { %1230 = vst [vmem:[#allocation1 + $0x2] ss:$4 sm:$0xff] %v4433_v14 }
 0x4dc   : > { %1232 = vst [vmem:[#allocation1 + $0x3] ss:$4 sm:$0xff] %v4436_v19 }
 0x4e3   : > { %v1233_v51 = vld.sshfl [vmem:[#allocation1] sm:$0xff pattern:$0x73625140] }
 0x4e4   : > { %1256 = vst [vmem:[#allocation1] ss:$4 sm:$0xff] %v4312_v7  ;;  %3876 = vmatmul.msk.f32.vlgmr.msrb.gmra.mxu3 %vm508_vm1, %v1233_v51 }
 0x4eb   : > { %v1257_v52 = vld.sshfl [vmem:[#allocation1] sm:$0xff pattern:$0x73625140] }
 0x4ec   : > { %1260 = vst [vmem:[#allocation1] ss:$4 sm:$0xff] %v4312_v7 }
 0x4f3   : > { %v1261_v53 = vld.sshfl [vmem:[#allocation1] sm:$0xff pattern:$0x73625140] }
 0x4f4   : > { %1288 = vst [vmem:[#allocation1] ss:$4 sm:$0xff] %v4316_v8 }
 0x4fb   : > { %v1289_v6 = vld.sshfl [vmem:[#allocation1] sm:$0xff pattern:$0x73625140] }
 0x4fc   : > { %1292 = vst [vmem:[#allocation1] ss:$4 sm:$0xff] %v4316_v8 }
 0x503   : > { %v1293_v54 = vld.sshfl [vmem:[#allocation1] sm:$0xff pattern:$0x73625140] }
 0x504   : > { %1320 = vst [vmem:[#allocation1] ss:$4 sm:$0xff] %v4321_v10 }
 0x50b   : > { %v1321_v9 = vld.sshfl [vmem:[#allocation1] sm:$0xff pattern:$0x73625140] }
 0x50c   : > { %1324 = vst [vmem:[#allocation1] ss:$4 sm:$0xff] %v4321_v10  ;;  %1322 = vrot.lane.b32.xlu2 %v1321_v9, %s5228_s19 }
 0x513   : > { %v1325_v14 = vld.sshfl [vmem:[#allocation1] sm:$0xff pattern:$0x73625140] }
 0x514   : > { %1352 = vst [vmem:[#allocation1] ss:$4 sm:$0xff] %v4326_v12  ;;  %1294 = vrot.lane.b32.xlu2 %v1293_v54, %s5226_s20  ;;  %1326 = vrot.lane.b32.xlu0 %v1325_v14, %s5226_s20 }
 0x51b   : > { %v1353_v19 = vld.sshfl [vmem:[#allocation1] sm:$0xff pattern:$0x73625140] }
 0x51c   : > { %1356 = vst [vmem:[#allocation1] ss:$4 sm:$0xff] %v4326_v12  ;;  %1354 = vrot.lane.b32.xlu0 %v1353_v19, %s5228_s19 }
 0x523   : > { %v1357_v55 = vld.sshfl [vmem:[#allocation1] sm:$0xff pattern:$0x73625140] }
 0x524   : > { %1488 = vst [vmem:[#allocation1] ss:$4 sm:$0xff] %v4312_v7  ;;  %1258 = vrot.lane.b32.xlu0 %v1257_v52, %s5228_s19  ;;  %1358 = vrot.lane.b32.xlu1 %v1357_v55, %s5226_s20 }
 0x52b   : > { %v4517_v56 = vld.sshfl [vmem:[#allocation1] sm:$0xff pattern:$0x73625140] }
 0x52c   : > { %1517 = vst [vmem:[#allocation1] ss:$4 sm:$0xff] %v4316_v8  ;;  %1262 = vrot.lane.b32.xlu1 %v1261_v53, %s5226_s20 }
 0x533   : > { %v4521_v33 = vld.sshfl [vmem:[#allocation1] sm:$0xff pattern:$0x73625140] }
 0x534   : > { %1546 = vst [vmem:[#allocation1] ss:$4 sm:$0xff] %v4321_v10  ;;  %1290 = vrot.lane.b32.xlu1 %v1289_v6, %s5228_s19 }
 0x53b   : > { %v1547_v57 = vld.sshfl [vmem:[#allocation1] sm:$0xff pattern:$0x73625140] }
 0x53c   : > { %1575 = vst [vmem:[#allocation1] ss:$4 sm:$0xff] %v4326_v12 }
 0x543   : > { %v1576_v47 = vld.sshfl [vmem:[#allocation1] sm:$0xff pattern:$0x73625140] }
 0x55c   : > { %v4534_v3 = vpop.f32.mrf.mxu2 }
 0x566   : > { %v1323_v31 = vpop.permute.xlu2 %1322 }
 0x567   : > { %v4537_v11 = vpop.f32.mrf.mxu3 }
 0x56e   : > { %v1295_v58 = vpop.permute.xlu2 %1294 }
 0x56f   : > { %3879 = vmatpush.xpose.msk.msra.mxu1 %vm508_vm1, %v1295_v58 }
 0x586   : > { %v1327_v59 = vpop.permute.xlu0 %1326 }
 0x587   : > { %3881 = vmatpush.xpose.msk.msra.mxu2 %vm508_vm1, %v1327_v59 }
 0x58a   : > { %3882 = vmatmul.msk.f32.vlgmr.msra.gmra.mxu2 %vm508_vm1, %v1323_v31 }
 0x58e   : > { %v1355_v61 = vpop.permute.xlu0 %1354 }
 0x596   : > { %v1359_v60 = vpop.permute.xlu1 %1358  ;;  %v1259_v0 = vpop.permute.xlu0 %1258 }
 0x597   : > { %3883 = vmatpush.xpose.msk.msra.mxu3 %vm508_vm1, %v1359_v60 }
 0x59a   : > { %3884 = vmatmul.msk.f32.vlgmr.msra.gmra.mxu3 %vm508_vm1, %v1355_v61 }
 0x59e   : > { %v1263_v62 = vpop.permute.xlu1 %1262 }
 0x59f   : > { %3877 = vmatpush.xpose.msk.msrb.mxu0 %vm508_vm1, %v1263_v62 }
 0x5a2   : > { %3878 = vmatmul.msk.f32.vlgmr.msrb.gmra.mxu0 %vm508_vm1, %v1259_v0 }
 0x5a6   : > { %v1291_v1 = vpop.permute.xlu1 %1290 }
 0x5a7   : > { %3880 = vmatmul.msk.f32.vlgmr.msra.gmra.mxu1 %vm508_vm1, %v1291_v1 }
 0x60d   : > { %v1349_v4 = vpop.f32.mrf.mxu2 }
 0x60e   : > { %v1386_v63 = vmul.f32 0.35355338, %v1349_v4 }
 0x610   : > { %v1394_v5 = vsel %vm621_vm2, %v1386_v63, -inf }
 0x611   : > { %1395 = vmax.xlane.f32.xlu2 %v1394_v5 }
 0x61d   : > { %v1381_v13 = vpop.f32.mrf.mxu3 }
 0x61e   : > { %v1387_v15 = vmul.f32 0.35355338, %v1381_v13 }
 0x61f   : > { %v1285_v16 = vpop.f32.mrf.mxu0 }
 0x620   : > { %v1384_v17 = vmul.f32 0.35355338, %v1285_v16  ;;  %v1397_v18 = vsel %vm621_vm2, %v1387_v15, -inf }
 0x621   : > { %1398 = vmax.xlane.f32.xlu0 %v1397_v18 }
 0x622   : > { %v1388_v2 = vsel %vm621_vm2, %v1384_v17, -inf }
 0x623   : > { %1389 = vmax.xlane.f32.xlu1 %v1388_v2 }
 0x624   : > { %v1317_v20 = vpop.f32.mrf.mxu1 }
 0x625   : > { %v1385_v21 = vmul.f32 0.35355338, %v1317_v20 }
 0x627   : > { %v1391_v22 = vsel %vm621_vm2, %v1385_v21, -inf }
 0x628   : > { %1392 = vmax.xlane.f32.xlu2 %v1391_v22 }
 0x63c   : > { %1548 = vrot.lane.b32.xlu1 %v1547_v57, %s5224_s22 }
 0x684   : > { %v1396_v23 = vpop.xlane.xlu2 %1395 }
 0x685   : > { %v1402_v35 = vsub.f32 %v1386_v63, %v1396_v23 }
 0x687   : > { %v1408_v29 = vmul.f32 1.442695, %v1402_v35 }
 0x694   : > { %v1399_v24 = vpop.xlane.xlu0 %1398 }
 0x695   : > { %v1403_v25 = vsub.f32 %v1387_v15, %v1399_v24 }
 0x696   : > { %v1390_v26 = vpop.xlane.xlu1 %1389 }
 0x697   : > { %v1410_v27 = vmul.f32 1.442695, %v1403_v25  ;;  %v1400_v28 = vsub.f32 %v1384_v17, %v1390_v26 }
 0x699   : > { %4044 = vpow2.f32 %v1410_v27  ;;  %v1404_v30 = vmul.f32 1.442695, %v1400_v28 }
 0x69b   : > { %4046 = vpow2.f32 %v1404_v30  ;;  %v1393_v32 = vpop.xlane.xlu2 %1392 }
 0x69c   : > { %v1401_v34 = vsub.f32 %v1385_v21, %v1393_v32 }
 0x69e   : > { %v1406_v36 = vmul.f32 1.442695, %v1401_v34 }
 0x69f   : > { %v4045_v37 = vpop.eup %4044 }
 0x6a0   : > { %4048 = vpow2.f32 %v1406_v36  ;;  %v1421_v39 = vsel %vm621_vm2, %v4045_v37, 0.0 }
 0x6a1   : > { %v4544_v40 = vpop.eup %4046  ;;  %1422 = vadd.xlane.f32.xlu1 %v1421_v39  ;;  %4050 = vpow2.f32 %v1408_v29 }
 0x6a2   : > { %v1412_v41 = vsel %vm621_vm2, %v4544_v40, 0.0 }
 0x6a3   : > { %1413 = vadd.xlane.f32.xlu2 %v1412_v41 }
 0x6a6   : > { %v4548_v42 = vpop.eup %4048 }
 0x6a7   : > { %v1415_v44 = vsel %vm621_vm2, %v4548_v42, 0.0  ;;  %v4552_v46 = vpop.eup %4050 }
 0x6a8   : > { %1416 = vadd.xlane.f32.xlu0 %v1415_v44  ;;  %v1418_v45 = vsel %vm621_vm2, %v4552_v46, 0.0 }
 0x6ae   : > { %v1549_v43 = vpop.permute.xlu1 %1548 }
 0x6af   : > { %3889 = vmatpush.msk.msrb.mxu2 %vm730_vm3, %v1549_v43 }
 0x6b0   : > { %1419 = vadd.xlane.f32.xlu0 %v1418_v45 }
 0x6ba   : > { %1519 = vrot.lane.b32.xlu1 %v4521_v33, %s5224_s22 }
 0x6bb   : > { %1577 = vrot.lane.b32.xlu2 %v1576_v47, %s5224_s22 }
 0x6c4   : > { %1490 = vrot.lane.b32.xlu0 %v4517_v56, %s5224_s22  ;;  %s5233_s22 = smov 80  }
 0x714   : > { %v1423_v48 = vpop.xlane.xlu1 %1422 }
 0x715   : > { %4052 = vrcp.f32 %v1423_v48  ;;  %v1480_v54 = vand.u32 2147483648, %v1423_v48  ;;  %v1478_v14 = vand.u32 2147483647, %v1423_v48  ;;  %vm1474_vm4 = vweird.f32 %v1423_v48 }
 0x716   : > { %v4562_v49 = vpop.xlane.xlu2 %1413 }
 0x717   : > { %4054 = vrcp.f32 %v4562_v49  ;;  %v1481_v33 = vor.u32 1.1754944e-38, %v1480_v54  ;;  %vm1479_vm6 = vcmp.eq.f32.partialorder %v1478_v14, 8.507059e+37  ;;  %v1435_v21 = vand.u32 2147483648, %v4562_v49 }
 0x718   : > { %vm1429_vm13 = vweird.f32 %v4562_v49  ;;  %v1433_v24 = vand.u32 2147483647, %v4562_v49 }
 0x719   : > { %v1436_v30 = vor.u32 1.1754944e-38, %v1435_v21 }
 0x71b   : > { %v4053_v38 = vpop.eup %4052  ;;  %v1417_v50 = vpop.xlane.xlu0 %1416 }
 0x71c   : > { %v1470_v51 = vmul.f32 %v4053_v38, %v1423_v48  ;;  %4056 = vrcp.f32 %v1417_v50  ;;  %vm1475_vm15 = vweird.f32 %v4053_v38  ;;  %v1450_v62 = vand.u32 2147483648, %v1417_v50 }
 0x71d   : > { %v4055_v52 = vpop.eup %4054  ;;  %vm1476_vm5 = vmor %vm1474_vm4, %vm1475_vm15  ;;  %v1448_v4 = vand.u32 2147483647, %v1417_v50  ;;  %vm1444_vm9 = vweird.f32 %v1417_v50 }
 0x71e   : > { %v1471_v53 = vsub.f32 1.0, %v1470_v51  ;;  %v1578_v6 = vpop.permute.xlu2 %1577  ;;  %v1425_v19 = vmul.f32 %v4055_v52, %v4562_v49  ;;  %v1451_v15 = vor.u32 1.1754944e-38, %v1450_v62  ;;  %vm1430_vm12 = vweird.f32 %v4055_v52 }
 0x71f   : > { %3891 = vmatpush.msk.msrb.mxu3 %vm730_vm3, %v1578_v6  ;;  %vm1449_vm11 = vcmp.eq.f32.partialorder %v1448_v4, 8.507059e+37  ;;  %vm1431_vm14 = vmor %vm1429_vm13, %vm1430_vm12 }
 0x720   : > { %v1472_v9 = vmul.f32 %v4053_v38, %v1471_v53  ;;  %v1426_v59 = vsub.f32 1.0, %v1425_v19 }
 0x722   : > { %v4057_v55 = vpop.eup %4056  ;;  %v1473_v56 = vadd.f32 %v4053_v38, %v1472_v9  ;;  %v1427_v63 = vmul.f32 %v4055_v52, %v1426_v59 }
 0x723   : > { %v1440_v57 = vmul.f32 %v4057_v55, %v1417_v50  ;;  %v1420_v31 = vpop.xlane.xlu0 %1419  ;;  %vm1445_vm7 = vweird.f32 %v4057_v55 }
 0x724   : > { %v1477_v58 = vsel %vm1476_vm5, %v4053_v38, %v1473_v56  ;;  %4058 = vrcp.f32 %v1420_v31  ;;  %vm1446_vm10 = vmor %vm1444_vm9, %vm1445_vm7  ;;  %v1428_v18 = vadd.f32 %v4055_v52, %v1427_v63  ;;  %v1465_v25 = vand.u32 2147483648, %v1420_v31 }
 0x725   : > { %v1482_v60 = vsel %vm1479_vm6, %v1481_v33, %v1477_v58  ;;  %v1441_v61 = vsub.f32 1.0, %v1440_v57  ;;  %v1463_v27 = vand.u32 2147483647, %v1420_v31  ;;  %vm1459_vm4 = vweird.f32 %v1420_v31 }
 0x726   : > { %v1487_v0 = vmul.f32 %v4045_v37, %v1482_v60  ;;  %v1432_v28 = vsel %vm1431_vm14, %v4055_v52, %v1428_v18  ;;  %vm1434_vm5 = vcmp.eq.f32.partialorder %v1433_v24, 8.507059e+37  ;;  %v1466_v34 = vor.u32 1.1754944e-38, %v1465_v25 }
 0x727   : > { %v1442_v1 = vmul.f32 %v4057_v55, %v1441_v61  ;;  %v1437_v35 = vsel %vm1434_vm5, %v1436_v30, %v1432_v28  ;;  %vm1464_vm7 = vcmp.eq.f32.partialorder %v1463_v27, 8.507059e+37 }
 0x728   : > { %3892 = vmatmul.msk.f32.vlgmr.msrb.gmra.mxu3 %vm726_vm8, %v1487_v0  ;;  %v1484_v41 = vmul.f32 %v4544_v40, %v1437_v35 }
 0x729   : > { %v1443_v5 = vadd.f32 %v4057_v55, %v1442_v1 }
 0x72a   : > { %v4059_v13 = vpop.eup %4058 }
 0x72b   : > { %v1447_v16 = vsel %vm1446_vm10, %v4057_v55, %v1443_v5  ;;  %v1455_v17 = vmul.f32 %v4059_v13, %v1420_v31  ;;  %vm1460_vm15 = vweird.f32 %v4059_v13 }
 0x72c   : > { %v1452_v2 = vsel %vm1449_vm11, %v1451_v15, %v1447_v16  ;;  %v1520_v20 = vpop.permute.xlu1 %1519  ;;  %vm1461_vm6 = vmor %vm1459_vm4, %vm1460_vm15 }
 0x72d   : > { %v1456_v22 = vsub.f32 1.0, %v1455_v17  ;;  %3887 = vmatpush.msk.msrb.mxu1 %vm730_vm3, %v1520_v20  ;;  %v1485_v23 = vmul.f32 %v4548_v42, %v1452_v2  ;;  %v443_v42 = vld [vmem:[%s5206_s3 + $0x10] sm:$0xff] }
 0x72f   : > { %v1457_v26 = vmul.f32 %v4059_v13, %v1456_v22  ;;  %3888 = vmatmul.msk.f32.vlgmr.msrb.gmra.mxu1 %vm726_vm8, %v1485_v23 }
 0x731   : > { %v1458_v32 = vadd.f32 %v4059_v13, %v1457_v26 }
 0x733   : > { %v1462_v36 = vsel %vm1461_vm6, %v4059_v13, %v1458_v32 }
 0x734   : > { %v1467_v37 = vsel %vm1464_vm7, %v1466_v34, %v1462_v36 }
 0x735   : > { %v1486_v39 = vmul.f32 %v4552_v46, %v1467_v37 }
 0x736   : > { %v1491_v29 = vpop.permute.xlu0 %1490 }
 0x737   : > { %3885 = vmatpush.msk.msra.mxu0 %vm730_vm3, %v1491_v29  ;;  %3890 = vmatmul.msk.f32.vlgmr.msrb.gmra.mxu2 %vm726_vm8, %v1486_v39 }
 0x738   : > { %3886 = vmatmul.msk.f32.vlgmr.msra.gmra.mxu0 %vm726_vm8, %v1484_v41 }
 0x739   : > { %1633 = vmatpush.msrb.mxu0 %v443_v42 }
 0x7ab   : > { %v1601_v44 = vpop.f32.mrf.mxu3 }
 0x7ac   : > { %1614 = vst [vmem:[#allocation1 + $0x3] ss:$4 sm:$0xff] %v1601_v44  ;;  %v1543_v43 = vpop.f32.mrf.mxu1 }
 0x7ad   : > { %1610 = vst [vmem:[#allocation1 + $0x1] ss:$4 sm:$0xff] %v1543_v43 }
 0x7b5   : > { %v1514_v45 = vpop.f32.mrf.mxu0 }
 0x7b6   : > { %1608 = vst [vmem:[#allocation1] ss:$4 sm:$0xff] %v1514_v45 }
 0x7ba   : > { %v1572_v46 = vpop.f32.mrf.mxu2 }
 0x7bb   : > { %1612 = vst [vmem:[#allocation1 + $0x2] ss:$4 sm:$0xff] %v1572_v46 }
 0x7c2   : > { %v1615_v40 = vld.sshfl [vmem:[#allocation1] sm:$0xff pattern:$0x73625140] }
 0x7c3   : > { %1639 = vst [vmem:[#allocation1] ss:$4 sm:$0xff] %v4312_v7  ;;  %3893 = vmatmul.msk.f32.vlgmr.msrb.gmra.mxu0 %vm508_vm1, %v1615_v40 }
 0x7ca   : > { %v1640_v47 = vld.sshfl [vmem:[#allocation1] sm:$0xff pattern:$0x73625140] }
 0x7cb   : > { %1643 = vst [vmem:[#allocation1] ss:$4 sm:$0xff] %v4312_v7 }
 0x7d2   : > { %v1644_v48 = vld.sshfl [vmem:[#allocation1] sm:$0xff pattern:$0x73625140] }
 0x7d3   : > { %1671 = vst [vmem:[#allocation1] ss:$4 sm:$0xff] %v4316_v8 }
 0x7da   : > { %v1672_v49 = vld.sshfl [vmem:[#allocation1] sm:$0xff pattern:$0x73625140] }
 0x7db   : > { %1675 = vst [vmem:[#allocation1] ss:$4 sm:$0xff] %v4316_v8  ;;  %1673 = vrot.lane.b32.xlu1 %v1672_v49, %s5220_s15 }
 0x7e2   : > { %v1676_v38 = vld.sshfl [vmem:[#allocation1] sm:$0xff pattern:$0x73625140] }
 0x7e3   : > { %1703 = vst [vmem:[#allocation1] ss:$4 sm:$0xff] %v4321_v10  ;;  %1677 = vrot.lane.b32.xlu0 %v1676_v38, %s5222_s16 }
 0x7ea   : > { %v1704_v50 = vld.sshfl [vmem:[#allocation1] sm:$0xff pattern:$0x73625140] }
 0x7eb   : > { %1707 = vst [vmem:[#allocation1] ss:$4 sm:$0xff] %v4321_v10  ;;  %1705 = vrot.lane.b32.xlu0 %v1704_v50, %s5220_s15 }
 0x7f2   : > { %v1708_v51 = vld.sshfl [vmem:[#allocation1] sm:$0xff pattern:$0x73625140] }
 0x7f3   : > { %1735 = vst [vmem:[#allocation1] ss:$4 sm:$0xff] %v4326_v12  ;;  %1641 = vrot.lane.b32.xlu0 %v1640_v47, %s5220_s15  ;;  %1709 = vrot.lane.b32.xlu2 %v1708_v51, %s5222_s16 }
 0x7fa   : > { %v1736_v52 = vld.sshfl [vmem:[#allocation1] sm:$0xff pattern:$0x73625140] }
 0x7fb   : > { %1739 = vst [vmem:[#allocation1] ss:$4 sm:$0xff] %v4326_v12  ;;  %1645 = vrot.lane.b32.xlu2 %v1644_v48, %s5222_s16 }
 0x802   : > { %v1740_v53 = vld.sshfl [vmem:[#allocation1] sm:$0xff pattern:$0x73625140] }
 0x803   : > { %1871 = vst [vmem:[#allocation1] ss:$4 sm:$0xff] %v4312_v7  ;;  %1737 = vrot.lane.b32.xlu2 %v1736_v52, %s5220_s15  ;;  %1741 = vrot.lane.b32.xlu1 %v1740_v53, %s5222_s16  ;;  %s5234_s15 = smov 48   ;;  %s5235_s16 = smov 72  }
 0x80a   : > { %v4600_v6 = vld.sshfl [vmem:[#allocation1] sm:$0xff pattern:$0x73625140] }
 0x80b   : > { %1900 = vst [vmem:[#allocation1] ss:$4 sm:$0xff] %v4316_v8 }
 0x812   : > { %v1901_v54 = vld.sshfl [vmem:[#allocation1] sm:$0xff pattern:$0x73625140] }
 0x813   : > { %1929 = vst [vmem:[#allocation1] ss:$4 sm:$0xff] %v4321_v10 }
 0x81a   : > { %v4604_v9 = vld.sshfl [vmem:[#allocation1] sm:$0xff pattern:$0x73625140] }
 0x81b   : > { %1958 = vst [vmem:[#allocation1] ss:$4 sm:$0xff] %v4326_v12 }
 0x822   : > { %v1959_v37 = vld.sshfl [vmem:[#allocation1] sm:$0xff pattern:$0x73625140] }
 0x840   : > { %v4618_v1 = vpop.f32.mrf.mxu0 }
 0x84d   : > { %v1710_v14 = vpop.permute.xlu2 %1709  ;;  %v1674_v55 = vpop.permute.xlu1 %1673 }
 0x84e   : > { %3898 = vmatpush.xpose.msk.msra.mxu3 %vm508_vm1, %v1710_v14 }
 0x855   : > { %v1678_v19 = vpop.permute.xlu0 %1677  ;;  %v1646_v7 = vpop.permute.xlu2 %1645 }
 0x856   : > { %3894 = vmatpush.xpose.msk.msra.mxu1 %vm508_vm1, %v1646_v7  ;;  %3896 = vmatpush.xpose.msk.msra.mxu2 %vm508_vm1, %v1678_v19 }
 0x859   : > { %3897 = vmatmul.msk.f32.vlgmr.msra.gmra.mxu2 %vm508_vm1, %v1674_v55 }
 0x85d   : > { %v1706_v8 = vpop.permute.xlu0 %1705  ;;  %v1738_v12 = vpop.permute.xlu2 %1737 }
 0x85e   : > { %3899 = vmatmul.msk.f32.vlgmr.msra.gmra.mxu3 %vm508_vm1, %v1706_v8 }
 0x865   : > { %v1642_v10 = vpop.permute.xlu0 %1641 }
 0x866   : > { %3895 = vmatmul.msk.f32.vlgmr.msra.gmra.mxu1 %vm508_vm1, %v1642_v10 }
 0x875   : > { %v1742_v56 = vpop.permute.xlu1 %1741 }
 0x876   : > { %3900 = vmatpush.xpose.msk.msra.mxu0 %vm508_vm1, %v1742_v56  ;;  %v464_v56 = vld [vmem:[%s5210_s7 + $0x68] sm:$0xff] }
 0x879   : > { %3901 = vmatmul.msk.f32.vlgmr.msra.gmra.mxu0 %vm508_vm1, %v1738_v12 }
 0x8dc   : > { %v1700_v33 = vpop.f32.mrf.mxu2 }
 0x8dd   : > { %v1768_v57 = vmul.f32 0.35355338, %v1700_v33 }
 0x8df   : > { %v1774_v31 = vsel %vm621_vm2, %v1768_v57, -inf }
 0x8e0   : > { %1775 = vmax.xlane.f32.xlu1 %v1774_v31 }
 0x8e1   : > { %v1732_v58 = vpop.f32.mrf.mxu3 }
 0x8e2   : > { %v1769_v59 = vmul.f32 0.35355338, %v1732_v58 }
 0x8e3   : > { %v1668_v60 = vpop.f32.mrf.mxu1 }
 0x8e4   : > { %v1767_v61 = vmul.f32 0.35355338, %v1668_v60  ;;  %v1777_v62 = vsel %vm621_vm2, %v1769_v59, -inf }
 0x8e5   : > { %1778 = vmax.xlane.f32.xlu0 %v1777_v62 }
 0x8e6   : > { %v1771_v0 = vsel %vm621_vm2, %v1767_v61, -inf }
 0x8e7   : > { %1772 = vmax.xlane.f32.xlu2 %v1771_v0 }
 0x8f6   : > { %v1764_v4 = vpop.f32.mrf.mxu0 }
 0x8f7   : > { %v1770_v63 = vmul.f32 0.35355338, %v1764_v4  ;;  %v4151_v4 = vld [vmem:[%s5204_s1 + $0x10] sm:$0xff] }
 0x8f9   : > { %1902 = vrot.lane.b32.xlu0 %v1901_v54, %s5218_s17  ;;  %v1780_v5 = vsel %vm621_vm2, %v1770_v63, -inf }
 0x8fa   : > { %1781 = vmax.xlane.f32.xlu1 %v1780_v5  ;;  %v4152_v5 = vld [vmem:[%s5204_s1 + $0x8] sm:$0xff] }
 0x953   : > { %v1776_v13 = vpop.xlane.xlu1 %1775 }
 0x954   : > { %v1784_v15 = vsub.f32 %v1768_v57, %v1776_v13 }
 0x956   : > { %v1789_v16 = vmul.f32 1.442695, %v1784_v15 }
 0x958   : > { %4060 = vpow2.f32 %v1789_v16  ;;  %v1779_v17 = vpop.xlane.xlu0 %1778 }
 0x959   : > { %v1785_v18 = vsub.f32 %v1769_v59, %v1779_v17  ;;  %v4153_v17 = vld [vmem:[%s5204_s1] sm:$0xff] }
 0x95a   : > { %v1773_v2 = vpop.xlane.xlu2 %1772 }
 0x95b   : > { %v1791_v20 = vmul.f32 1.442695, %v1785_v18  ;;  %v1783_v21 = vsub.f32 %v1767_v61, %v1773_v2  ;;  %v4150_v61 = vld [vmem:[%s5204_s1 + $0x18] sm:$0xff] }
 0x95d   : > { %4062 = vpow2.f32 %v1791_v20  ;;  %v1787_v22 = vmul.f32 1.442695, %v1783_v21 }
 0x95e   : > { %v4061_v23 = vpop.eup %4060 }
 0x95f   : > { %4064 = vpow2.f32 %v1787_v22  ;;  %v1798_v24 = vsel %vm621_vm2, %v4061_v23, 0.0 }
 0x960   : > { %1799 = vadd.xlane.f32.xlu2 %v1798_v24 }
 0x963   : > { %v4623_v25 = vpop.eup %4062 }
 0x964   : > { %v1801_v26 = vsel %vm621_vm2, %v4623_v25, 0.0 }
 0x965   : > { %v4627_v27 = vpop.eup %4064  ;;  %1802 = vadd.xlane.f32.xlu0 %v1801_v26 }
 0x966   : > { %v1795_v28 = vsel %vm621_vm2, %v4627_v27, 0.0 }
 0x967   : > { %1796 = vadd.xlane.f32.xlu1 %v1795_v28 }
 0x96b   : > { %v1903_v30 = vpop.permute.xlu0 %1902 }
 0x96c   : > { %3904 = vmatpush.msk.msrb.mxu2 %vm730_vm3, %v1903_v30 }
 0x96d   : > { %v1782_v32 = vpop.xlane.xlu1 %1781 }
 0x96e   : > { %v1786_v34 = vsub.f32 %v1770_v63, %v1782_v32 }
 0x970   : > { %v1793_v35 = vmul.f32 1.442695, %v1786_v34 }
 0x972   : > { %4066 = vpow2.f32 %v1793_v35 }
 0x978   : > { %v4632_v36 = vpop.eup %4066 }
 0x979   : > { %1960 = vrot.lane.b32.xlu0 %v1959_v37, %s5218_s17  ;;  %v1804_v39 = vsel %vm621_vm2, %v4632_v36, 0.0 }
 0x97a   : > { %1805 = vadd.xlane.f32.xlu2 %v1804_v39 }
 0x980   : > { %1931 = vrot.lane.b32.xlu1 %v4604_v9, %s5218_s17 }
 0x992   : > { %1873 = vrot.lane.b32.xlu2 %v4600_v6, %s5218_s17  ;;  %s5236_s17 = smov 104  }
 0x9d3   : > { %v1800_v29 = vpop.xlane.xlu2 %1799 }
 0x9d4   : > { %4068 = vrcp.f32 %v1800_v29  ;;  %v1833_v46 = vand.u32 2147483648, %v1800_v29  ;;  %v1831_v48 = vand.u32 2147483647, %v1800_v29  ;;  %vm1827_vm10 = vweird.f32 %v1800_v29 }
 0x9d6   : > { %v1834_v51 = vor.u32 1.1754944e-38, %v1833_v46  ;;  %vm1832_vm12 = vcmp.eq.f32.partialorder %v1831_v48, 8.507059e+37 }
 0x9d8   : > { %v1803_v41 = vpop.xlane.xlu0 %1802 }
 0x9d9   : > { %4070 = vrcp.f32 %v1803_v41  ;;  %v1848_v8 = vand.u32 2147483648, %v1803_v41  ;;  %vm1842_vm14 = vweird.f32 %v1803_v41  ;;  %v1846_v10 = vand.u32 2147483647, %v1803_v41 }
 0x9da   : > { %v4069_v42 = vpop.eup %4068  ;;  %v1797_v44 = vpop.xlane.xlu1 %1796 }
 0x9db   : > { %v1823_v43 = vmul.f32 %v4069_v42, %v1800_v29  ;;  %4072 = vrcp.f32 %v1797_v44  ;;  %vm1828_vm9 = vweird.f32 %v4069_v42  ;;  %v1818_v31 = vand.u32 2147483648, %v1797_v44 }
 0x9dc   : > { %vm1829_vm11 = vmor %vm1827_vm10, %vm1828_vm9  ;;  %v1849_v58 = vor.u32 1.1754944e-38, %v1848_v8  ;;  %vm1812_vm5 = vweird.f32 %v1797_v44  ;;  %v1816_v59 = vand.u32 2147483647, %v1797_v44  ;;  %vm1847_vm6 = vcmp.eq.f32.partialorder %v1846_v10, 8.507059e+37  ;;  %v466_v8 = vld [vmem:[%s5210_s7 + $0x78] sm:$0xff]  ;;  %v465_v10 = vld [vmem:[%s5210_s7 + $0x70] sm:$0xff] }
 0x9dd   : > { %v1824_v45 = vsub.f32 1.0, %v1823_v43  ;;  %v1819_v63 = vor.u32 1.1754944e-38, %v1818_v31 }
 0x9de   : > { %vm1817_vm9 = vcmp.eq.f32.partialorder %v1816_v59, 8.507059e+37  ;;  %v461_v59 = vld [vmem:[%s5210_s7 + $0x50] sm:$0xff] }
 0x9df   : > { %v4071_v40 = vpop.eup %4070  ;;  %v1825_v47 = vmul.f32 %v4069_v42, %v1824_v45 }
 0x9e0   : > { %v1838_v49 = vmul.f32 %v4071_v40, %v1803_v41  ;;  %vm1843_vm13 = vweird.f32 %v4071_v40 }
 0x9e1   : > { %v1826_v38 = vadd.f32 %v4069_v42, %v1825_v47  ;;  %v4073_v50 = vpop.eup %4072  ;;  %vm4642_vm15 = vmor %vm1842_vm14, %vm1843_vm13 }
 0x9e2   : > { %v1839_v52 = vsub.f32 1.0, %v1838_v49  ;;  %v1808_v6 = vmul.f32 %v4073_v50, %v1797_v44  ;;  %vm1813_vm4 = vweird.f32 %v4073_v50  ;;  %v4005_v44 = vld [vmem:[%s5207_s4] ss:$0 sm:$0xff]  ;;  %v4206_v49 = vmov 32.0  }
 0x9e3   : > { %v1830_v53 = vsel %vm1829_vm11, %v4069_v42, %v1826_v38  ;;  %vm1814_vm7 = vmor %vm1812_vm5, %vm1813_vm4 }
 0x9e4   : > { %v1835_v54 = vsel %vm1832_vm12, %v1834_v51, %v1830_v53  ;;  %v1840_v9 = vmul.f32 %v4071_v40, %v1839_v52  ;;  %v1809_v14 = vsub.f32 1.0, %v1808_v6 }
 0x9e5   : > { %v1868_v19 = vmul.f32 %v4061_v23, %v1835_v54 }
 0x9e6   : > { %v1810_v7 = vmul.f32 %v4073_v50, %v1809_v14  ;;  %v1841_v55 = vadd.f32 %v4071_v40, %v1840_v9  ;;  %v449_v14 = vld [vmem:[%s5208_s5 + $0x18] sm:$0xff] }
 0x9e7   : > { %3905 = vmatmul.msk.f32.vlgmr.msrb.gmra.mxu2 %vm726_vm8, %v1868_v19  ;;  %v448_v19 = vld [vmem:[%s5208_s5 + $0x10] sm:$0xff] }
 0x9e8   : > { %v1811_v12 = vadd.f32 %v4073_v50, %v1810_v7  ;;  %v1845_v57 = vsel %vm4642_vm15, %v4071_v40, %v1841_v55  ;;  %v4154_v40 = vld [vmem:[%s4305_s21] sm:$0xff]  ;;  %2082 = vmatpush.msra.mxu2 %v449_v14  ;;  %v447_v7 = vld [vmem:[%s5208_s5 + $0x8] sm:$0xff]  ;;  %s5237_s21 = smov 40  }
 0x9e9   : > { %v1850_v62 = vsel %vm1847_vm6, %v1849_v58, %v1845_v57  ;;  %v446_v55 = vld [vmem:[%s5208_s5] sm:$0xff]  ;;  %v462_v58 = vld [vmem:[%s5210_s7 + $0x58] sm:$0xff] }
 0x9ea   : > { %v1815_v0 = vsel %vm1814_vm7, %v4073_v50, %v1811_v12  ;;  %v1869_v16 = vmul.f32 %v4623_v25, %v1850_v62  ;;  %2083 = vmatpush.msra.mxu2 %v448_v19  ;;  %v463_v57 = vld [vmem:[%s5210_s7 + $0x60] sm:$0xff] }
 0x9eb   : > { %v1961_v33 = vpop.permute.xlu0 %1960  ;;  %v1820_v13 = vsel %vm1817_vm9, %v1819_v63, %v1815_v0  ;;  %v458_v0 = vld [vmem:[%s5210_s7 + $0x38] sm:$0xff]  ;;  %v457_v63 = vld [vmem:[%s5210_s7 + $0x30] sm:$0xff] }
 0x9ec   : > { %3908 = vmatpush.msk.msrb.mxu0 %vm730_vm3, %v1961_v33  ;;  %v1867_v21 = vmul.f32 %v4627_v27, %v1820_v13  ;;  %v444_v27 = vld [vmem:[%s5206_s3 + $0x18] sm:$0xff]  ;;  %2084 = vmatpush.msra.mxu2 %v447_v7  ;;  %v456_v13 = vld [vmem:[%s5210_s7 + $0x28] sm:$0xff]  ;;  %v4155_v7 = vld [vmem:[%s5205_s2] ss:$0 sm:$0xff] }
 0x9ed   : > { %v1806_v60 = vpop.xlane.xlu2 %1805 }
 0x9ee   : > { %2160 = vmatpush.msra.mxu0 %v4150_v61  ;;  %4074 = vrcp.f32 %v1806_v60  ;;  %v1863_v23 = vand.u32 2147483648, %v1806_v60  ;;  %v1861_v25 = vand.u32 2147483647, %v1806_v60  ;;  %vm1857_vm11 = vweird.f32 %v1806_v60  ;;  %2085 = vmatpush.msra.mxu2 %v446_v55  ;;  %v459_v61 = vld [vmem:[%s5210_s7 + $0x40] sm:$0xff] }
 0x9ef   : > { %4076 = vrcp.f32 %v4206_v49 }
 0x9f0   : > { %2161 = vmatpush.msra.mxu0 %v4151_v4  ;;  %v1864_v28 = vor.u32 1.1754944e-38, %v1863_v23  ;;  %vm1862_vm13 = vcmp.eq.f32.partialorder %v1861_v25, 8.507059e+37  ;;  %v4007_v23 = vld [vmem:[%s5213_s10] ss:$0 sm:$0xff] }
 0x9f2   : > { %2162 = vmatpush.msra.mxu0 %v4152_v5  ;;  %v1932_v15 = vpop.permute.xlu1 %1931 }
 0x9f3   : > { %3906 = vmatpush.msk.msrb.mxu3 %vm730_vm3, %v1932_v15 }
 0x9f4   : > { %2163 = vmatpush.msra.mxu0 %v4153_v17  ;;  %v4075_v18 = vpop.eup %4074  ;;  %3907 = vmatmul.msk.f32.vlgmr.msrb.gmra.mxu3 %vm726_vm8, %v1869_v16  ;;  %v455_v16 = vld [vmem:[%s5210_s7 + $0x20] sm:$0xff] }
 0x9f5   : > { %v1853_v2 = vmul.f32 %v4075_v18, %v1806_v60  ;;  %v1874_v20 = vpop.permute.xlu2 %1873  ;;  %vm1858_vm10 = vweird.f32 %v4075_v18  ;;  %v4077_v38 = vpop.eup %4076  ;;  %2094 = vmatpush.msra.mxu3 %v466_v8  ;;  %v460_v60 = vld [vmem:[%s5210_s7 + $0x48] sm:$0xff] }
 0x9f6   : > { %3902 = vmatpush.msk.msrb.mxu1 %vm730_vm3, %v1874_v20  ;;  %vm1859_vm12 = vmor %vm1857_vm11, %vm1858_vm10  ;;  %v2031_v50 = vmul.f32 32.0, %v4077_v38  ;;  %vm2035_vm14 = vweird.f32 %v4077_v38  ;;  %v4006_v20 = vld [vmem:[%s5212_s9] ss:$0 sm:$0xff] }
 0x9f7   : > { %v1854_v22 = vsub.f32 1.0, %v1853_v2  ;;  %3903 = vmatmul.msk.f32.vlgmr.msrb.gmra.mxu1 %vm726_vm8, %v1867_v21  ;;  %2095 = vmatpush.msra.mxu3 %v465_v10 }
 0x9f8   : > { %2016 = vmatpush.msra.mxu1 %v444_v27  ;;  %v2032_v51 = vsub.f32 1.0, %v2031_v50 }
 0x9f9   : > { %v1855_v24 = vmul.f32 %v4075_v18, %v1854_v22  ;;  %2096 = vmatpush.msra.mxu3 %v464_v56 }
 0x9fb   : > { %v1856_v26 = vadd.f32 %v4075_v18, %v1855_v24  ;;  %2097 = vmatpush.msra.mxu3 %v463_v57 }
 0x9fd   : > { %v1860_v30 = vsel %vm1859_vm12, %v4075_v18, %v1856_v26  ;;  %2098 = vmatpush.msra.mxu3 %v462_v58  ;;  %v454_v18 = vld [vmem:[%s5210_s7 + $0x18] sm:$0xff]  ;;  %v453_v26 = vld [vmem:[%s5210_s7 + $0x10] sm:$0xff] }
 0x9fe   : > { %v1865_v32 = vsel %vm1862_vm13, %v1864_v28, %v1860_v30  ;;  %v452_v28 = vld [vmem:[%s5210_s7 + $0x8] sm:$0xff]  ;;  %v451_v30 = vld [vmem:[%s5210_s7] sm:$0xff] }
 0x9ff   : > { %v1870_v34 = vmul.f32 %v4632_v36, %v1865_v32  ;;  %v1254_v36 = vadd.f32 %v4537_v11, %v4534_v3  ;;  %v2033_v3 = vmul.f32 %v4077_v38, %v2032_v51  ;;  %2099 = vmatpush.msra.mxu3 %v461_v59  ;;  %v4008_v32 = vld [vmem:[%s5209_s6] ss:$0 sm:$0xff] }
 0xa01   : > { %3909 = vmatmul.msk.f32.vlgmr.msrb.gmra.mxu0 %vm726_vm8, %v1870_v34  ;;  %v1638_v42 = vadd.f32 %v4618_v1, %v1254_v36  ;;  %v2034_v11 = vadd.f32 %v4077_v38, %v2033_v3  ;;  %2100 = vmatpush.msra.mxu3 %v460_v60 }
 0xa03   : > { %v4681_v1 = vsel %vm2035_vm14, %v4077_v38, %v2034_v11  ;;  %2101 = vmatpush.msra.mxu3 %v459_v61 }
 0xa05   : > { %2102 = vmatpush.msra.mxu3 %v458_v0 }
 0xa07   : > { %2103 = vmatpush.msra.mxu3 %v457_v63 }
 0xa09   : > { %2104 = vmatpush.msra.mxu3 %v456_v13 }
 0xa0b   : > { %2105 = vmatpush.msra.mxu3 %v455_v16 }
 0xa0d   : > { %2106 = vmatpush.msra.mxu3 %v454_v18 }
 0xa0f   : > { %2107 = vmatpush.msra.mxu3 %v453_v26 }
 0xa11   : > { %2108 = vmatpush.msra.mxu3 %v452_v28 }
 0xa13   : > { %2109 = vmatpush.msra.mxu3 %v451_v30 }
 0xa6a   : > { %v1926_v35 = vpop.f32.mrf.mxu2 }
 0xa6b   : > { %1993 = vst [vmem:[#allocation1 + $0x1] ss:$4 sm:$0xff] %v1926_v35 }
 0xa74   : > { %v1897_v37 = vpop.f32.mrf.mxu1 }
 0xa75   : > { %1991 = vst [vmem:[#allocation1] ss:$4 sm:$0xff] %v1897_v37  ;;  %v4009_v37 = vld [vmem:[%s5211_s8] ss:$0 sm:$0xff] }
 0xa77   : > { %v1955_v39 = vpop.f32.mrf.mxu3 }
 0xa78   : > { %1995 = vst [vmem:[#allocation1 + $0x2] ss:$4 sm:$0xff] %v1955_v39 }
 0xa7e   : > { %v1984_v29 = vpop.f32.mrf.mxu0 }
 0xa7f   : > { %1997 = vst [vmem:[#allocation1 + $0x3] ss:$4 sm:$0xff] %v1984_v29 }
 0xa86   : > { %v1998_v41 = vld.sshfl [vmem:[#allocation1] sm:$0xff pattern:$0x73625140] }
 0xa87   : > { %3910 = vmatmul.msk.f32.vlgmr.msra.gmra.mxu1 %vm508_vm1, %v1998_v41 }
 0xb04   : > { %v2018_v43 = vpop.f32.mrf.mxu1 }
 0xb05   : > { %v2021_v45 = vadd.f32 %v2018_v43, %v1638_v42 }
 0xb07   : > { %v2025_v46 = vadd.f32 %v4005_v44, %v2021_v45 }
 0xb09   : > { %v2026_v47 = vadd.f32 %v4154_v40, %v2025_v46 }
 0xb0b   : > { %v2027_v48 = vsel %vm476_vm0, %v2026_v47, 0.0 }
 0xb0c   : > { %2028 = vadd.xlane.f32.xlu0 %v2027_v48 }
 0xb7f   : > { %v2029_v52 = vpop.xlane.xlu0 %2028 }
 0xb80   : > { %v2037_v53 = vmul.f32 %v4681_v1, %v2029_v52  ;;  %v4010_v52 = vld [vmem:[%s5214_s11] ss:$0 sm:$0xff] }
 0xb82   : > { %v2038_v6 = vsub.f32 %v2026_v47, %v2037_v53 }
 0xb84   : > { %v2039_v54 = vmul.f32 %v2038_v6, %v2038_v6 }
 0xb86   : > { %v2040_v9 = vsel %vm476_vm0, %v2039_v54, 0.0  ;;  %v4011_v54 = vld [vmem:[%s5215_s12] ss:$0 sm:$0xff] }
 0xb87   : > { %2041 = vadd.xlane.f32.xlu2 %v2040_v9 }
 0xbfa   : > { %v2042_v12 = vpop.xlane.xlu2 %2041 }
 0xbfb   : > { %v2043_v33 = vmul.f32 %v2042_v12, %v4681_v1 }
 0xbfd   : > { %v2044_v31 = vadd.f32 1e-05, %v2043_v33 }
 0xbff   : > { %4078 = vrsqrt.f32 %v2044_v31  ;;  %vm2051_vm4 = vweird.f32 %v2044_v31 }
 0xc05   : > { %v4079_v62 = vpop.eup %4078 }
 0xc06   : > { %v2046_v4 = vmul.f32 %v4079_v62, %v2044_v31  ;;  %vm2052_vm15 = vweird.f32 %v4079_v62 }
 0xc07   : > { %vm2053_vm5 = vmor %vm2051_vm4, %vm2052_vm15 }
 0xc08   : > { %v2047_v5 = vmul.f32 %v4079_v62, %v2046_v4 }
 0xc0a   : > { %v2048_v15 = vmul.f32 0.5, %v2047_v5 }
 0xc0c   : > { %v2049_v17 = vsub.f32 1.5, %v2048_v15 }
 0xc0e   : > { %v2050_v2 = vmul.f32 %v4079_v62, %v2049_v17 }
 0xc10   : > { %v2054_v21 = vsel %vm2053_vm5, %v4079_v62, %v2050_v2 }
 0xc11   : > { %v2055_v22 = vmul.f32 %v2054_v21, %v2038_v6 }
 0xc13   : > { %v2059_v24 = vmul.f32 %v4006_v20, %v2055_v22 }
 0xc15   : > { %v2063_v25 = vadd.f32 %v4007_v23, %v2059_v24 }
 0xc17   : > { %3911 = vmatmul.msk.f32.vlgmr.msra.gmra.mxu2 %vm476_vm0, %v2063_v25 }
 0xc9a   : > { %v2087_v34 = vpop.f32.mrf.mxu2 }
 0xc9b   : > { %v2088_v27 = vadd.f32 %v4008_v32, %v2087_v34 }
 0xc9d   : > { %v2090_v35 = vmax.f32 %v2088_v27, 0.0 }
 0xc9f   : > { %2110 = vmatmul.f32.vlgmr.msra.gmra.mxu3 %v2090_v35 }
 0xd22   : > { %v2111_v39 = vpop.f32.mrf.mxu3 }
 0xd23   : > { %v2112_v29 = vadd.f32 %v4009_v37, %v2111_v39 }
 0xd25   : > { %v2114_v41 = vadd.f32 %v2112_v29, %v2063_v25 }
 0xd27   : > { %v2115_v36 = vsel %vm476_vm0, %v2114_v41, 0.0 }
 0xd28   : > { %2116 = vadd.xlane.f32.xlu1 %v2115_v36 }
 0xd9b   : > { %v2117_v42 = vpop.xlane.xlu1 %2116 }
 0xd9c   : > { %v2118_v44 = vmul.f32 %v2117_v42, %v4681_v1 }
 0xd9e   : > { %v2119_v43 = vsub.f32 %v2114_v41, %v2118_v44 }
 0xda0   : > { %v2120_v45 = vmul.f32 %v2119_v43, %v2119_v43 }
 0xda2   : > { %v2121_v46 = vsel %vm476_vm0, %v2120_v45, 0.0 }
 0xda3   : > { %2122 = vadd.xlane.f32.xlu0 %v2121_v46 }
 0xe16   : > { %v2123_v40 = vpop.xlane.xlu0 %2122 }
 0xe17   : > { %v2124_v47 = vmul.f32 %v2123_v40, %v4681_v1 }
 0xe19   : > { %v2125_v48 = vadd.f32 1e-05, %v2124_v47 }
 0xe1b   : > { %4080 = vrsqrt.f32 %v2125_v48  ;;  %vm2132_vm7 = vweird.f32 %v2125_v48 }
 0xe21   : > { %v4081_v49 = vpop.eup %4080 }
 0xe22   : > { %v2127_v38 = vmul.f32 %v4081_v49, %v2125_v48  ;;  %vm2133_vm6 = vweird.f32 %v4081_v49 }
 0xe23   : > { %vm2134_vm9 = vmor %vm2132_vm7, %vm2133_vm6 }
 0xe24   : > { %v2128_v50 = vmul.f32 %v4081_v49, %v2127_v38 }
 0xe26   : > { %v2129_v51 = vmul.f32 0.5, %v2128_v50 }
 0xe28   : > { %v2130_v3 = vsub.f32 1.5, %v2129_v51 }
 0xe2a   : > { %v2131_v11 = vmul.f32 %v4081_v49, %v2130_v3 }
 0xe2c   : > { %v2135_v53 = vsel %vm2134_vm9, %v4081_v49, %v2131_v11 }
 0xe2d   : > { %v2136_v6 = vmul.f32 %v2135_v53, %v2119_v43 }
 0xe2f   : > { %v2140_v9 = vmul.f32 %v4010_v52, %v2136_v6 }
 0xe31   : > { %v4769_v14 = vadd.f32 %v4011_v54, %v2140_v9 }
 0xe33   : > { %3912 = vmatmul.msk.f32.vlgmr.msra.gmra.mxu0 %vm476_vm0, %v4769_v14 }
 0xeb0   : > { %v2165_v19 = vpop.f32.mrf.mxu0 }
 0xeb1   : > { %v4776_v55 = vadd.f32 %v4155_v7, %v2165_v19 }
 0xeb3   : > { %2172 = vst [vmem:[#allocation1] ss:$4 sm:$0xff] %v4776_v55  ;;  %v4780_v8 = vrot.slane %v4776_v55, 2  ;;  %v4785_v56 = vrot.slane %v4776_v55, 4  ;;  %v4790_v33 = vrot.slane %v4776_v55, 6 }
 0xeba   : > { %v2173_v10 = vld.sshfl [vmem:[#allocation1] sm:$0xff pattern:$0x73625140] }
 0xebb   : > { %2174 = vrot.lane.b32.xlu2 %v2173_v10, %s4195_s24  ;;  %2200 = vst [vmem:[#allocation1] ss:$4 sm:$0xff] %v4780_v8 }
 0xec2   : > { %v2201_v12 = vld.sshfl [vmem:[#allocation1] sm:$0xff pattern:$0x73625140] }
 0xec3   : > { %2202 = vrot.lane.b32.xlu0 %v2201_v12, %s4195_s24  ;;  %2228 = vst [vmem:[#allocation1] ss:$4 sm:$0xff] %v4785_v56 }
 0xeca   : > { %v2229_v57 = vld.sshfl [vmem:[#allocation1] sm:$0xff pattern:$0x73625140] }
 0xecb   : > { %2230 = vrot.lane.b32.xlu2 %v2229_v57, %s4195_s24  ;;  %2256 = vst [vmem:[#allocation1] ss:$4 sm:$0xff] %v4790_v33 }
 0xed2   : > { %v2257_v31 = vld.sshfl [vmem:[#allocation1] sm:$0xff pattern:$0x73625140] }
 0xed3   : > { %2258 = vrot.lane.b32.xlu1 %v2257_v31, %s4195_s24  ;;  %2388 = vst [vmem:[#allocation1] ss:$4 sm:$0xff] %v4776_v55 }
 0xeda   : > { %v2389_v58 = vld.sshfl [vmem:[#allocation1] sm:$0xff pattern:$0x73625140] }
 0xedb   : > { %2417 = vst [vmem:[#allocation1] ss:$4 sm:$0xff] %v4780_v8 }
 0xee2   : > { %v2418_v59 = vld.sshfl [vmem:[#allocation1] sm:$0xff pattern:$0x73625140] }
 0xee3   : > { %2446 = vst [vmem:[#allocation1] ss:$4 sm:$0xff] %v4785_v56 }
 0xeea   : > { %v2447_v60 = vld.sshfl [vmem:[#allocation1] sm:$0xff pattern:$0x73625140] }
 0xeeb   : > { %2475 = vst [vmem:[#allocation1] ss:$4 sm:$0xff] %v4790_v33 }
 0xef2   : > { %v2476_v61 = vld.sshfl [vmem:[#allocation1] sm:$0xff pattern:$0x73625140] }
 0xef3   : > { %2477 = vrot.lane.b32.xlu1 %v2476_v61, %s4196_s27  ;;  %2504 = vst [vmem:[#allocation1] ss:$4 sm:$0xff] %v4776_v55 }
 0xefa   : > { %v4801_v62 = vld.sshfl [vmem:[#allocation1] sm:$0xff pattern:$0x73625140] }
 0xefb   : > { %2508 = vst [vmem:[#allocation1] ss:$4 sm:$0xff] %v4776_v55 }
 0xf02   : > { %v2509_v0 = vld.sshfl [vmem:[#allocation1] sm:$0xff pattern:$0x73625140] }
 0xf03   : > { %2536 = vst [vmem:[#allocation1] ss:$4 sm:$0xff] %v4780_v8 }
 0xf0a   : > { %v4805_v4 = vld.sshfl [vmem:[#allocation1] sm:$0xff pattern:$0x73625140] }
 0xf0b   : > { %2540 = vst [vmem:[#allocation1] ss:$4 sm:$0xff] %v4780_v8 }
 0xf12   : > { %v2541_v63 = vld.sshfl [vmem:[#allocation1] sm:$0xff pattern:$0x73625140] }
 0xf13   : > { %2568 = vst [vmem:[#allocation1] ss:$4 sm:$0xff] %v4785_v56 }
 0xf15   : > { %v2175_v5 = vpop.permute.xlu2 %2174 }
 0xf16   : > { %3913 = vmatpush.xpose.msk.msrb.mxu1 %vm508_vm1, %v2175_v5 }
 0xf19   : > { %3914 = vmatmul.msk.f32.vlgmr.msrb.gmra.mxu1 %vm508_vm1, %v4776_v55 }
 0xf1a   : > { %v2569_v13 = vld.sshfl [vmem:[#allocation1] sm:$0xff pattern:$0x73625140] }
 0xf1b   : > { %2572 = vst [vmem:[#allocation1] ss:$4 sm:$0xff] %v4785_v56 }
 0xf22   : > { %v2573_v15 = vld.sshfl [vmem:[#allocation1] sm:$0xff pattern:$0x73625140] }
 0xf23   : > { %2600 = vst [vmem:[#allocation1] ss:$4 sm:$0xff] %v4790_v33 }
 0xf25   : > { %v2231_v16 = vpop.permute.xlu2 %2230 }
 0xf26   : > { %3917 = vmatpush.xpose.msk.msrb.mxu0 %vm508_vm1, %v2231_v16 }
 0xf29   : > { %3918 = vmatmul.msk.f32.vlgmr.msrb.gmra.mxu0 %vm508_vm1, %v4785_v56 }
 0xf2a   : > { %v2601_v17 = vld.sshfl [vmem:[#allocation1] sm:$0xff pattern:$0x73625140] }
 0xf2b   : > { %2602 = vrot.lane.b32.xlu1 %v2601_v17, %s4198_s29  ;;  %2604 = vst [vmem:[#allocation1] ss:$4 sm:$0xff] %v4790_v33 }
 0xf32   : > { %v2605_v18 = vld.sshfl [vmem:[#allocation1] sm:$0xff pattern:$0x73625140] }
 0xf33   : > { %2736 = vst [vmem:[#allocation1] ss:$4 sm:$0xff] %v4776_v55 }
 0xf35   : > { %v2203_v2 = vpop.permute.xlu0 %2202 }
 0xf36   : > { %3915 = vmatpush.xpose.msk.msrb.mxu2 %vm508_vm1, %v2203_v2 }
 0xf39   : > { %3916 = vmatmul.msk.f32.vlgmr.msrb.gmra.mxu2 %vm508_vm1, %v4780_v8 }
 0xf3a   : > { %v4823_v20 = vld.sshfl [vmem:[#allocation1] sm:$0xff pattern:$0x73625140] }
 0xf3b   : > { %2765 = vst [vmem:[#allocation1] ss:$4 sm:$0xff] %v4780_v8 }
 0xf42   : > { %v4826_v21 = vld.sshfl [vmem:[#allocation1] sm:$0xff pattern:$0x73625140] }
 0xf43   : > { %2794 = vst [vmem:[#allocation1] ss:$4 sm:$0xff] %v4785_v56 }
 0xf45   : > { %v2259_v22 = vpop.permute.xlu1 %2258 }
 0xf46   : > { %3919 = vmatpush.xpose.msk.msra.mxu1 %vm508_vm1, %v2259_v22 }
 0xf49   : > { %3920 = vmatmul.msk.f32.vlgmr.msra.gmra.mxu1 %vm508_vm1, %v4790_v33 }
 0xf4a   : > { %v4832_v23 = vld.sshfl [vmem:[#allocation1] sm:$0xff pattern:$0x73625140] }
 0xf4b   : > { %2823 = vst [vmem:[#allocation1] ss:$4 sm:$0xff] %v4790_v33 }
 0xf65   : > { %v2478_v49 = vpop.permute.xlu1 %2477 }
 0xf96   : > { %v2197_v24 = vpop.f32.mrf.mxu1 }
 0xf97   : > { %v2284_v25 = vmul.f32 0.35355338, %v2197_v24 }
 0xf99   : > { %v2288_v26 = vsel %vm621_vm2, %v2284_v25, -inf }
 0xf9a   : > { %2289 = vmax.xlane.f32.xlu0 %v2288_v26 }
 0xf9d   : > { %v2603_v3 = vpop.permute.xlu1 %2602 }
 0xfa6   : > { %v2253_v28 = vpop.f32.mrf.mxu0 }
 0xfa7   : > { %v2286_v30 = vmul.f32 0.35355338, %v2253_v28 }
 0xfa9   : > { %v2294_v32 = vsel %vm621_vm2, %v2286_v30, -inf }
 0xfaa   : > { %2295 = vmax.xlane.f32.xlu0 %v2294_v32 }
 0xfbc   : > { %v2225_v34 = vpop.f32.mrf.mxu2 }
 0xfbd   : > { %v2285_v27 = vmul.f32 0.35355338, %v2225_v34 }
 0xfbe   : > { %2390 = vrot.lane.b32.xlu0 %v2389_v58, %s4196_s27 }
 0xfbf   : > { %v2291_v35 = vsel %vm621_vm2, %v2285_v27, -inf }
 0xfc0   : > { %2292 = vmax.xlane.f32.xlu2 %v2291_v35 }
 0xfc6   : > { %v2281_v37 = vpop.f32.mrf.mxu1  ;;  %2606 = vrot.lane.b32.xlu0 %v2605_v18, %s4197_s28 }
 0xfc7   : > { %v2287_v39 = vmul.f32 0.35355338, %v2281_v37 }
 0xfc9   : > { %v2297_v29 = vsel %vm621_vm2, %v2287_v39, -inf }
 0xfca   : > { %2298 = vmax.xlane.f32.xlu1 %v2297_v29 }
 0xfce   : > { %2570 = vrot.lane.b32.xlu0 %v2569_v13, %s4198_s29 }
 0xfd6   : > { %2419 = vrot.lane.b32.xlu0 %v2418_v59, %s4196_s27 }
 0xfd8   : > { %2574 = vrot.lane.b32.xlu2 %v2573_v15, %s4197_s28 }
 0xfde   : > { %2542 = vrot.lane.b32.xlu0 %v2541_v63, %s4197_s28 }
 0xfe0   : > { %2448 = vrot.lane.b32.xlu2 %v2447_v60, %s4196_s27 }
 0xfe3   : > { %2510 = vrot.lane.b32.xlu1 %v2509_v0, %s4197_s28 }
0x100d   : > { %v2290_v41 = vpop.xlane.xlu0 %2289 }
0x100e   : > { %v2300_v36 = vsub.f32 %v2284_v25, %v2290_v41 }
0x1010   : > { %v2304_v42 = vmul.f32 1.442695, %v2300_v36 }
0x1012   : > { %4082 = vpow2.f32 %v2304_v42 }
0x1018   : > { %v4083_v44 = vpop.eup %4082 }
0x1019   : > { %v2312_v43 = vsel %vm621_vm2, %v4083_v44, 0.0 }
0x101a   : > { %2313 = vadd.xlane.f32.xlu1 %v2312_v43 }
0x101d   : > { %v2296_v45 = vpop.xlane.xlu0 %2295 }
0x101e   : > { %v2302_v46 = vsub.f32 %v2286_v30, %v2296_v45 }
0x1020   : > { %v2308_v40 = vmul.f32 1.442695, %v2302_v46 }
0x1022   : > { %4084 = vpow2.f32 %v2308_v40 }
0x1028   : > { %v4848_v47 = vpop.eup %4084 }
0x1029   : > { %v2318_v48 = vsel %vm621_vm2, %v4848_v47, 0.0 }
0x102a   : > { %2319 = vadd.xlane.f32.xlu2 %v2318_v48 }
0x1030   : > { %v2391_v38 = vpop.permute.xlu0 %2390 }
0x1031   : > { %3921 = vmatpush.msk.msra.mxu2 %vm730_vm3, %v2391_v38 }
0x1033   : > { %3927 = vmatpush.msk.msrb.mxu2 %vm730_vm3, %v2478_v49  ;;  %v2293_v50 = vpop.xlane.xlu2 %2292 }
0x1034   : > { %v2301_v51 = vsub.f32 %v2285_v27, %v2293_v50 }
0x1036   : > { %v2306_v11 = vmul.f32 1.442695, %v2301_v51 }
0x1038   : > { %4086 = vpow2.f32 %v2306_v11  ;;  %v2607_v52 = vpop.permute.xlu0 %2606 }
0x1039   : > { %3935 = vmatpush.xpose.msk.msrb.mxu3 %vm508_vm1, %v2607_v52 }
0x103b   : > { %v2575_v53 = vpop.permute.xlu2 %2574 }
0x103c   : > { %3936 = vmatmul.msk.f32.vlgmr.msrb.gmra.mxu3 %vm508_vm1, %v2603_v3 }
0x103d   : > { %v2299_v6 = vpop.xlane.xlu1 %2298 }
0x103e   : > { %v4856_v54 = vpop.eup %4086  ;;  %v2303_v9 = vsub.f32 %v2287_v39, %v2299_v6 }
0x103f   : > { %v2315_v19 = vsel %vm621_vm2, %v4856_v54, 0.0 }
0x1040   : > { %v2310_v7 = vmul.f32 1.442695, %v2303_v9  ;;  %2316 = vadd.xlane.f32.xlu1 %v2315_v19  ;;  %v4860_v10 = vpop.permute.xlu0 %2570 }
0x1042   : > { %4088 = vpow2.f32 %v2310_v7 }
0x1043   : > { %v2449_v12 = vpop.permute.xlu2 %2448 }
0x1044   : > { %3925 = vmatpush.msk.msrb.mxu1 %vm730_vm3, %v2449_v12 }
0x1048   : > { %v4863_v57 = vpop.eup %4088  ;;  %v2420_v31 = vpop.permute.xlu0 %2419 }
0x1049   : > { %3923 = vmatpush.msk.msra.mxu0 %vm730_vm3, %v2420_v31  ;;  %v2321_v58 = vsel %vm621_vm2, %v4863_v57, 0.0 }
0x104a   : > { %2322 = vadd.xlane.f32.xlu2 %v2321_v58 }
0x1050   : > { %v2543_v59 = vpop.permute.xlu0 %2542 }
0x1051   : > { %3931 = vmatpush.xpose.msk.msra.mxu1 %vm508_vm1, %v2543_v59 }
0x1055   : > { %v2511_v60 = vpop.permute.xlu1 %2510 }
0x1056   : > { %3929 = vmatpush.xpose.msk.msrb.mxu0 %vm508_vm1, %v2511_v60 }
0x1059   : > { %2538 = vrot.lane.b32.xlu1 %v4805_v4, %s4198_s29 }
0x1062   : > { %2506 = vrot.lane.b32.xlu2 %v4801_v62, %s4198_s29 }
0x108d   : > { %v2314_v61 = vpop.xlane.xlu1 %2313 }
0x108e   : > { %4090 = vrcp.f32 %v2314_v61  ;;  %v2335_v13 = vand.u32 2147483648, %v2314_v61  ;;  %v2333_v16 = vand.u32 2147483647, %v2314_v61  ;;  %vm2329_vm11 = vweird.f32 %v2314_v61 }
0x1090   : > { %v2336_v18 = vor.u32 1.1754944e-38, %v2335_v13  ;;  %vm2334_vm13 = vcmp.eq.f32.partialorder %v2333_v16, 8.507059e+37 }
0x1094   : > { %v4091_v0 = vpop.eup %4090 }
0x1095   : > { %v2325_v63 = vmul.f32 %v4091_v0, %v2314_v61  ;;  %vm2330_vm10 = vweird.f32 %v4091_v0 }
0x1096   : > { %vm2331_vm12 = vmor %vm2329_vm11, %vm2330_vm10 }
0x1097   : > { %v2326_v5 = vsub.f32 1.0, %v2325_v63 }
0x1099   : > { %v2327_v15 = vmul.f32 %v4091_v0, %v2326_v5 }
0x109b   : > { %v2328_v17 = vadd.f32 %v4091_v0, %v2327_v15 }
0x109d   : > { %v2332_v2 = vsel %vm2331_vm12, %v4091_v0, %v2328_v17  ;;  %v2320_v22 = vpop.xlane.xlu2 %2319 }
0x109e   : > { %v2337_v4 = vsel %vm2334_vm13, %v2336_v18, %v2332_v2  ;;  %4092 = vrcp.f32 %v2320_v22  ;;  %v2365_v28 = vand.u32 2147483648, %v2320_v22  ;;  %v2363_v32 = vand.u32 2147483647, %v2320_v22 }
0x109f   : > { %v2384_v24 = vmul.f32 %v4083_v44, %v2337_v4  ;;  %vm2359_vm15 = vweird.f32 %v2320_v22 }
0x10a0   : > { %v2366_v27 = vor.u32 1.1754944e-38, %v2365_v28  ;;  %vm2364_vm5 = vcmp.eq.f32.partialorder %v2363_v32, 8.507059e+37  ;;  %v2824_v28 = vld.sshfl [vmem:[#allocation1] sm:$0xff pattern:$0x73625140] }
0x10a1   : > { %3922 = vmatmul.msk.f32.vlgmr.msra.gmra.mxu2 %vm726_vm8, %v2384_v24 }
0x10a2   : > { %3933 = vmatpush.xpose.msk.msra.mxu2 %vm508_vm1, %v2575_v53 }
0x10a4   : > { %v4093_v62 = vpop.eup %4092 }
0x10a5   : > { %v2355_v25 = vmul.f32 %v4093_v62, %v2320_v22  ;;  %vm2360_vm14 = vweird.f32 %v4093_v62 }
0x10a6   : > { %vm2361_vm4 = vmor %vm2359_vm15, %vm2360_vm14 }
0x10a7   : > { %v2356_v26 = vsub.f32 1.0, %v2355_v25 }
0x10a9   : > { %v2357_v30 = vmul.f32 %v4093_v62, %v2356_v26 }
0x10ab   : > { %v2358_v34 = vadd.f32 %v4093_v62, %v2357_v30 }
0x10ad   : > { %v2362_v35 = vsel %vm2361_vm4, %v4093_v62, %v2358_v34 }
0x10ae   : > { %v2367_v37 = vsel %vm2364_vm5, %v2366_v27, %v2362_v35 }
0x10af   : > { %v2386_v39 = vmul.f32 %v4848_v47, %v2367_v37 }
0x10b1   : > { %3926 = vmatmul.msk.f32.vlgmr.msrb.gmra.mxu1 %vm726_vm8, %v2386_v39 }
0x10b3   : > { %v2317_v29 = vpop.xlane.xlu1 %2316 }
0x10b4   : > { %4094 = vrcp.f32 %v2317_v29  ;;  %v2350_v43 = vand.u32 2147483648, %v2317_v29  ;;  %v2348_v46 = vand.u32 2147483647, %v2317_v29  ;;  %vm2344_vm7 = vweird.f32 %v2317_v29 }
0x10b6   : > { %v2351_v38 = vor.u32 1.1754944e-38, %v2350_v43  ;;  %vm2349_vm10 = vcmp.eq.f32.partialorder %v2348_v46, 8.507059e+37 }
0x10ba   : > { %v4095_v41 = vpop.eup %4094 }
0x10bb   : > { %v2340_v36 = vmul.f32 %v4095_v41, %v2317_v29  ;;  %vm2345_vm6 = vweird.f32 %v4095_v41 }
0x10bc   : > { %vm2346_vm9 = vmor %vm2344_vm7, %vm2345_vm6 }
0x10bd   : > { %v2341_v42 = vsub.f32 1.0, %v2340_v36  ;;  %v2323_v44 = vpop.xlane.xlu2 %2322 }
0x10be   : > { %4096 = vrcp.f32 %v2323_v44  ;;  %v2380_v6 = vand.u32 2147483648, %v2323_v44  ;;  %v2378_v19 = vand.u32 2147483647, %v2323_v44  ;;  %vm2374_vm12 = vweird.f32 %v2323_v44 }
0x10bf   : > { %v2342_v45 = vmul.f32 %v4095_v41, %v2341_v42  ;;  %v2629_v40 = vpop.f32.mrf.mxu3 }
0x10c0   : > { %v2635_v48 = vmul.f32 0.35355338, %v2629_v40  ;;  %v2381_v31 = vor.u32 1.1754944e-38, %v2380_v6  ;;  %vm2379_vm14 = vcmp.eq.f32.partialorder %v2378_v19, 8.507059e+37 }
0x10c1   : > { %v2343_v49 = vadd.f32 %v4095_v41, %v2342_v45 }
0x10c2   : > { %v2645_v47 = vsel %vm621_vm2, %v2635_v48, -inf }
0x10c3   : > { %v2347_v50 = vsel %vm2346_vm9, %v4095_v41, %v2343_v49  ;;  %2646 = vmax.xlane.f32.xlu2 %v2645_v47 }
0x10c4   : > { %v4097_v51 = vpop.eup %4096  ;;  %v2352_v3 = vsel %vm2349_vm10, %v2351_v38, %v2347_v50 }
0x10c5   : > { %v2370_v11 = vmul.f32 %v4097_v51, %v2323_v44  ;;  %v2385_v52 = vmul.f32 %v4856_v54, %v2352_v3  ;;  %vm2375_vm11 = vweird.f32 %v4097_v51  ;;  %v2507_v60 = vpop.permute.xlu2 %2506 }
0x10c6   : > { %vm2376_vm13 = vmor %vm2374_vm12, %vm2375_vm11 }
0x10c7   : > { %v2371_v53 = vsub.f32 1.0, %v2370_v11  ;;  %3924 = vmatmul.msk.f32.vlgmr.msra.gmra.mxu0 %vm726_vm8, %v2385_v52 }
0x10c9   : > { %v2372_v9 = vmul.f32 %v4097_v51, %v2371_v53 }
0x10cb   : > { %v2373_v7 = vadd.f32 %v4097_v51, %v2372_v9  ;;  %v2539_v12 = vpop.permute.xlu1 %2538 }
0x10cc   : > { %3932 = vmatmul.msk.f32.vlgmr.msra.gmra.mxu1 %vm508_vm1, %v2539_v12 }
0x10cd   : > { %v2377_v58 = vsel %vm2376_vm13, %v4097_v51, %v2373_v7 }
0x10ce   : > { %v2382_v59 = vsel %vm2379_vm14, %v2381_v31, %v2377_v58 }
0x10cf   : > { %3930 = vmatmul.msk.f32.vlgmr.msrb.gmra.mxu0 %vm508_vm1, %v2507_v60  ;;  %v2387_v54 = vmul.f32 %v4863_v57, %v2382_v59 }
0x10d1   : > { %3928 = vmatmul.msk.f32.vlgmr.msrb.gmra.mxu2 %vm726_vm8, %v2387_v54 }
0x10d9   : > { %3934 = vmatmul.msk.f32.vlgmr.msra.gmra.mxu2 %vm508_vm1, %v4860_v10 }
0x1124   : > { %v4891_v17 = vpop.f32.mrf.mxu2 }
0x112e   : > { %v4887_v61 = vpop.f32.mrf.mxu1 }
0x1136   : > { %v2647_v0 = vpop.xlane.xlu2 %2646 }
0x1137   : > { %v2651_v5 = vsub.f32 %v2635_v48, %v2647_v0 }
0x1139   : > { %v2658_v15 = vmul.f32 1.442695, %v2651_v5 }
0x113b   : > { %4098 = vpow2.f32 %v2658_v15 }
0x1141   : > { %v4099_v10 = vpop.eup %4098 }
0x1142   : > { %v2669_v24 = vsel %vm621_vm2, %v4099_v10, 0.0 }
0x1144   : > { %v4889_v63 = vpop.f32.mrf.mxu0 }
0x1149   : > { %v2565_v13 = vpop.f32.mrf.mxu1 }
0x114a   : > { %v2633_v16 = vmul.f32 0.35355338, %v2565_v13 }
0x114c   : > { %v2533_v18 = vpop.f32.mrf.mxu0  ;;  %v2639_v2 = vsel %vm621_vm2, %v2633_v16, -inf }
0x114d   : > { %v2632_v57 = vmul.f32 0.35355338, %v2533_v18  ;;  %2640 = vmax.xlane.f32.xlu0 %v2639_v2 }
0x114f   : > { %v2636_v22 = vsel %vm621_vm2, %v2632_v57, -inf }
0x1150   : > { %2637 = vmax.xlane.f32.xlu1 %v2636_v22 }
0x1154   : > { %v4895_v4 = vpop.f32.mrf.mxu2 }
0x1158   : > { %2670 = vadd.xlane.f32.xlu1 %v2669_v24 }
0x115c   : > { %v2597_v62 = vpop.f32.mrf.mxu2 }
0x115d   : > { %v2634_v25 = vmul.f32 0.35355338, %v2597_v62 }
0x115f   : > { %v2642_v26 = vsel %vm621_vm2, %v2634_v25, -inf }
0x1160   : > { %2643 = vmax.xlane.f32.xlu0 %v2642_v26 }
0x1171   : > { %2796 = vrot.lane.b32.xlu1 %v4832_v23, %s4199_s30 }
0x1174   : > { %2825 = vrot.lane.b32.xlu0 %v2824_v28, %s4199_s30 }
0x11c0   : > { %v2641_v30 = vpop.xlane.xlu0 %2640 }
0x11c1   : > { %v2649_v32 = vsub.f32 %v2633_v16, %v2641_v30  ;;  %v4156_v30 = vld [vmem:[%s5206_s3] sm:$0xff] }
0x11c3   : > { %v2654_v34 = vmul.f32 1.442695, %v2649_v32  ;;  %v2638_v27 = vpop.xlane.xlu1 %2637 }
0x11c4   : > { %v2648_v35 = vsub.f32 %v2632_v57, %v2638_v27 }
0x11c5   : > { %4100 = vpow2.f32 %v2654_v34 }
0x11c6   : > { %v2652_v37 = vmul.f32 1.442695, %v2648_v35 }
0x11c8   : > { %4102 = vpow2.f32 %v2652_v37 }
0x11cb   : > { %v4902_v39 = vpop.eup %4100  ;;  %v2671_v29 = vpop.xlane.xlu1 %2670 }
0x11cc   : > { %4104 = vrcp.f32 %v2671_v29  ;;  %v2663_v41 = vsel %vm621_vm2, %v4902_v39, 0.0  ;;  %v2728_v38 = vand.u32 2147483648, %v2671_v29  ;;  %vm2722_vm4 = vweird.f32 %v2671_v29 }
0x11cd   : > { %2664 = vadd.xlane.f32.xlu2 %v2663_v41  ;;  %v2726_v50 = vand.u32 2147483647, %v2671_v29 }
0x11ce   : > { %v4906_v36 = vpop.eup %4102  ;;  %v2729_v11 = vor.u32 1.1754944e-38, %v2728_v38 }
0x11cf   : > { %v2660_v23 = vsel %vm621_vm2, %v4906_v36, 0.0  ;;  %vm2727_vm6 = vcmp.eq.f32.partialorder %v2726_v50, 8.507059e+37 }
0x11d0   : > { %2661 = vadd.xlane.f32.xlu0 %v2660_v23 }
0x11d2   : > { %v4105_v42 = vpop.eup %4104 }
0x11d3   : > { %v2718_v44 = vmul.f32 %v4105_v42, %v2671_v29  ;;  %v2644_v43 = vpop.xlane.xlu0 %2643  ;;  %vm2723_vm15 = vweird.f32 %v4105_v42  ;;  %v4157_v29 = vld [vmem:[%s5206_s3 + $0x8] sm:$0xff] }
0x11d4   : > { %v2650_v45 = vsub.f32 %v2634_v25, %v2644_v43  ;;  %vm2724_vm5 = vmor %vm2722_vm4, %vm2723_vm15 }
0x11d5   : > { %v2719_v46 = vsub.f32 1.0, %v2718_v44 }
0x11d6   : > { %v2656_v40 = vmul.f32 1.442695, %v2650_v45 }
0x11d7   : > { %v2720_v48 = vmul.f32 %v4105_v42, %v2719_v46 }
0x11d8   : > { %4106 = vpow2.f32 %v2656_v40 }
0x11d9   : > { %v2721_v49 = vadd.f32 %v4105_v42, %v2720_v48 }
0x11db   : > { %v2725_v3 = vsel %vm2724_vm5, %v4105_v42, %v2721_v49 }
0x11dc   : > { %v2730_v52 = vsel %vm2727_vm6, %v2729_v11, %v2725_v3 }
0x11dd   : > { %v2735_v9 = vmul.f32 %v4099_v10, %v2730_v52 }
0x11de   : > { %v4910_v47 = vpop.eup %4106 }
0x11df   : > { %v2666_v51 = vsel %vm621_vm2, %v4910_v47, 0.0 }
0x11e0   : > { %2667 = vadd.xlane.f32.xlu2 %v2666_v51 }
0x11e3   : > { %v2797_v53 = vpop.permute.xlu1 %2796 }
0x11e4   : > { %3941 = vmatpush.msk.msrb.mxu2 %vm730_vm3, %v2797_v53  ;;  %2767 = vrot.lane.b32.xlu0 %v4826_v21, %s4199_s30 }
0x11e6   : > { %v2826_v6 = vpop.permute.xlu0 %2825 }
0x11e7   : > { %3943 = vmatpush.msk.msra.mxu3 %vm730_vm3, %v2826_v6 }
0x11e8   : > { %3944 = vmatmul.msk.f32.vlgmr.msra.gmra.mxu3 %vm726_vm8, %v2735_v9 }
0x11f8   : > { %2738 = vrot.lane.b32.xlu2 %v4823_v20, %s4199_s30  ;;  %s5232_s30 = smov 112  }
0x1240   : > { %v2665_v19 = vpop.xlane.xlu2 %2664 }
0x1241   : > { %4108 = vrcp.f32 %v2665_v19  ;;  %v2698_v21 = vand.u32 2147483648, %v2665_v19  ;;  %v2696_v5 = vand.u32 2147483647, %v2665_v19  ;;  %vm2692_vm9 = vweird.f32 %v2665_v19 }
0x1243   : > { %v2662_v7 = vpop.xlane.xlu0 %2661  ;;  %v2699_v20 = vor.u32 1.1754944e-38, %v2698_v21  ;;  %vm2697_vm12 = vcmp.eq.f32.partialorder %v2696_v5, 8.507059e+37 }
0x1244   : > { %4110 = vrcp.f32 %v2662_v7  ;;  %v2683_v2 = vand.u32 2147483648, %v2662_v7  ;;  %vm2677_vm13 = vweird.f32 %v2662_v7  ;;  %v2681_v22 = vand.u32 2147483647, %v2662_v7 }
0x1246   : > { %v2684_v62 = vor.u32 1.1754944e-38, %v2683_v2  ;;  %vm2682_vm15 = vcmp.eq.f32.partialorder %v2681_v22, 8.507059e+37 }
0x1247   : > { %v4109_v12 = vpop.eup %4108 }
0x1248   : > { %v2688_v31 = vmul.f32 %v4109_v12, %v2665_v19  ;;  %vm2693_vm7 = vweird.f32 %v4109_v12 }
0x1249   : > { %vm2694_vm10 = vmor %vm2692_vm9, %vm2693_vm7 }
0x124a   : > { %v4111_v58 = vpop.eup %4110  ;;  %v2689_v59 = vsub.f32 1.0, %v2688_v31 }
0x124b   : > { %v2673_v60 = vmul.f32 %v4111_v58, %v2662_v7  ;;  %vm2678_vm11 = vweird.f32 %v4111_v58 }
0x124c   : > { %v2690_v54 = vmul.f32 %v4109_v12, %v2689_v59  ;;  %vm2679_vm14 = vmor %vm2677_vm13, %vm2678_vm11 }
0x124d   : > { %v2674_v0 = vsub.f32 1.0, %v2673_v60 }
0x124e   : > { %v2691_v13 = vadd.f32 %v4109_v12, %v2690_v54 }
0x124f   : > { %v2675_v15 = vmul.f32 %v4111_v58, %v2674_v0 }
0x1250   : > { %v2695_v16 = vsel %vm2694_vm10, %v4109_v12, %v2691_v13 }
0x1251   : > { %v2676_v18 = vadd.f32 %v4111_v58, %v2675_v15  ;;  %v2700_v57 = vsel %vm2697_vm12, %v2699_v20, %v2695_v16 }
0x1252   : > { %v2733_v26 = vmul.f32 %v4902_v39, %v2700_v57 }
0x1253   : > { %v2668_v10 = vpop.xlane.xlu2 %2667  ;;  %v2680_v24 = vsel %vm2679_vm14, %v4111_v58, %v2676_v18 }
0x1254   : > { %4112 = vrcp.f32 %v2668_v10  ;;  %v2685_v28 = vsel %vm2682_vm15, %v2684_v62, %v2680_v24  ;;  %v2713_v39 = vand.u32 2147483648, %v2668_v10  ;;  %v2711_v23 = vand.u32 2147483647, %v2668_v10 }
0x1255   : > { %v2732_v35 = vmul.f32 %v4906_v36, %v2685_v28  ;;  %vm2707_vm5 = vweird.f32 %v2668_v10 }
0x1256   : > { %v2768_v25 = vpop.permute.xlu0 %2767  ;;  %v2714_v44 = vor.u32 1.1754944e-38, %v2713_v39  ;;  %vm2712_vm7 = vcmp.eq.f32.partialorder %v2711_v23, 8.507059e+37 }
0x1257   : > { %3939 = vmatpush.msk.msrb.mxu1 %vm730_vm3, %v2768_v25 }
0x1258   : > { %3940 = vmatmul.msk.f32.vlgmr.msrb.gmra.mxu1 %vm726_vm8, %v2733_v26 }
0x1259   : > { %2915 = vmatpush.msra.mxu1 %v4156_v30 }
0x125a   : > { %v4113_v32 = vpop.eup %4112 }
0x125b   : > { %v2703_v34 = vmul.f32 %v4113_v32, %v2668_v10  ;;  %v2739_v27 = vpop.permute.xlu2 %2738  ;;  %vm2708_vm4 = vweird.f32 %v4113_v32 }
0x125c   : > { %3937 = vmatpush.msk.msra.mxu0 %vm730_vm3, %v2739_v27  ;;  %vm2709_vm6 = vmor %vm2707_vm5, %vm2708_vm4 }
0x125d   : > { %v2704_v37 = vsub.f32 1.0, %v2703_v34  ;;  %3938 = vmatmul.msk.f32.vlgmr.msra.gmra.mxu0 %vm726_vm8, %v2732_v35 }
0x125e   : > { %2881 = vmatpush.msrb.mxu0 %v4157_v29 }
0x125f   : > { %v2705_v41 = vmul.f32 %v4113_v32, %v2704_v37 }
0x1261   : > { %v2706_v42 = vadd.f32 %v4113_v32, %v2705_v41 }
0x1263   : > { %v2710_v43 = vsel %vm2709_vm6, %v4113_v32, %v2706_v42  ;;  %v4158_v42 = vld [vmem:[%s5206_s3 + $0x10] sm:$0xff] }
0x1264   : > { %v2715_v36 = vsel %vm2712_vm7, %v2714_v44, %v2710_v43 }
0x1265   : > { %v2734_v45 = vmul.f32 %v4910_v47, %v2715_v36 }
0x1267   : > { %3942 = vmatmul.msk.f32.vlgmr.msrb.gmra.mxu2 %vm726_vm8, %v2734_v45 }
0x126b   : > { %v2849_v46 = vpop.f32.mrf.mxu3 }
0x126c   : > { %2862 = vst [vmem:[#allocation1 + $0x3] ss:$4 sm:$0xff] %v2849_v46 }
0x12d5   : > { %v2791_v40 = vpop.f32.mrf.mxu1 }
0x12d6   : > { %2858 = vst [vmem:[#allocation1 + $0x1] ss:$4 sm:$0xff] %v2791_v40 }
0x12da   : > { %v2762_v48 = vpop.f32.mrf.mxu0 }
0x12db   : > { %2856 = vst [vmem:[#allocation1] ss:$4 sm:$0xff] %v2762_v48 }
0x12ea   : > { %v2820_v49 = vpop.f32.mrf.mxu2 }
0x12eb   : > { %2860 = vst [vmem:[#allocation1 + $0x2] ss:$4 sm:$0xff] %v2820_v49 }
0x12f2   : > { %v2863_v38 = vld.sshfl [vmem:[#allocation1] sm:$0xff pattern:$0x73625140] }
0x12f3   : > { %3945 = vmatmul.msk.f32.vlgmr.msrb.gmra.mxu0 %vm508_vm1, %v2863_v38  ;;  %2890 = vst [vmem:[#allocation1] ss:$4 sm:$0xff] %v4891_v17 }
0x12f4   : > { %2892 = vst [vmem:[#allocation1 + $0x1] ss:$4 sm:$0xff] %v4889_v63 }
0x12f5   : > { %2894 = vst [vmem:[#allocation1 + $0x2] ss:$4 sm:$0xff] %v4887_v61 }
0x12f6   : > { %2896 = vst [vmem:[#allocation1 + $0x3] ss:$4 sm:$0xff] %v4895_v4 }
0x12fd   : > { %v2897_v47 = vld.sshfl [vmem:[#allocation1] sm:$0xff pattern:$0x73625140] }
0x12fe   : > { %3946 = vmatmul.msk.f32.vlgmr.msra.gmra.mxu1 %vm508_vm1, %v2897_v47  ;;  %2920 = vst [vmem:[#allocation1] ss:$4 sm:$0xff] %v4776_v55 }
0x1305   : > { %v2921_v50 = vld.sshfl [vmem:[#allocation1] sm:$0xff pattern:$0x73625140] }
0x1306   : > { %2922 = vrot.lane.b32.xlu0 %v2921_v50, %s5232_s30  ;;  %2924 = vst [vmem:[#allocation1] ss:$4 sm:$0xff] %v4776_v55 }
0x130d   : > { %v2925_v51 = vld.sshfl [vmem:[#allocation1] sm:$0xff pattern:$0x73625140] }
0x130e   : > { %2926 = vrot.lane.b32.xlu1 %v2925_v51, %s5233_s22  ;;  %2952 = vst [vmem:[#allocation1] ss:$4 sm:$0xff] %v4780_v8 }
0x1315   : > { %v2953_v63 = vld.sshfl [vmem:[#allocation1] sm:$0xff pattern:$0x73625140] }
0x1316   : > { %2954 = vrot.lane.b32.xlu1 %v2953_v63, %s5232_s30  ;;  %2956 = vst [vmem:[#allocation1] ss:$4 sm:$0xff] %v4780_v8 }
0x131d   : > { %v2957_v61 = vld.sshfl [vmem:[#allocation1] sm:$0xff pattern:$0x73625140] }
0x131e   : > { %2958 = vrot.lane.b32.xlu2 %v2957_v61, %s5233_s22  ;;  %2984 = vst [vmem:[#allocation1] ss:$4 sm:$0xff] %v4785_v56 }
0x1325   : > { %v2985_v17 = vld.sshfl [vmem:[#allocation1] sm:$0xff pattern:$0x73625140] }
0x1326   : > { %2986 = vrot.lane.b32.xlu1 %v2985_v17, %s5232_s30  ;;  %2988 = vst [vmem:[#allocation1] ss:$4 sm:$0xff] %v4785_v56 }
0x132d   : > { %v2989_v4 = vld.sshfl [vmem:[#allocation1] sm:$0xff pattern:$0x73625140] }
0x132e   : > { %2990 = vrot.lane.b32.xlu2 %v2989_v4, %s5233_s22  ;;  %3016 = vst [vmem:[#allocation1] ss:$4 sm:$0xff] %v4790_v33 }
0x1335   : > { %v3017_v3 = vld.sshfl [vmem:[#allocation1] sm:$0xff pattern:$0x73625140] }
0x1336   : > { %3018 = vrot.lane.b32.xlu2 %v3017_v3, %s5232_s30  ;;  %3020 = vst [vmem:[#allocation1] ss:$4 sm:$0xff] %v4790_v33 }
0x133d   : > { %v3021_v11 = vld.sshfl [vmem:[#allocation1] sm:$0xff pattern:$0x73625140] }
0x133e   : > { %3022 = vrot.lane.b32.xlu0 %v3021_v11, %s5233_s22  ;;  %3152 = vst [vmem:[#allocation1] ss:$4 sm:$0xff] %v4776_v55 }
0x1345   : > { %v3153_v52 = vld.sshfl [vmem:[#allocation1] sm:$0xff pattern:$0x73625140] }
0x1346   : > { %3181 = vst [vmem:[#allocation1] ss:$4 sm:$0xff] %v4780_v8 }
0x134d   : > { %v4959_v53 = vld.sshfl [vmem:[#allocation1] sm:$0xff pattern:$0x73625140] }
0x134e   : > { %3210 = vst [vmem:[#allocation1] ss:$4 sm:$0xff] %v4785_v56 }
0x1355   : > { %v4962_v6 = vld.sshfl [vmem:[#allocation1] sm:$0xff pattern:$0x73625140] }
0x1356   : > { %3239 = vst [vmem:[#allocation1] ss:$4 sm:$0xff] %v4790_v33 }
0x135d   : > { %v3240_v36 = vld.sshfl [vmem:[#allocation1] sm:$0xff pattern:$0x73625140] }
0x1370   : > { %v4974_v15 = vpop.f32.mrf.mxu0 }
0x1378   : > { %v2959_v9 = vpop.permute.xlu2 %2958  ;;  %v2923_v7 = vpop.permute.xlu0 %2922 }
0x1379   : > { %3949 = vmatpush.xpose.msk.msrb.mxu3 %vm508_vm1, %v2959_v9 }
0x137b   : > { %v4978_v57 = vpop.f32.mrf.mxu1 }
0x1380   : > { %v2927_v19 = vpop.permute.xlu1 %2926 }
0x1381   : > { %3947 = vmatpush.xpose.msk.msra.mxu2 %vm508_vm1, %v2927_v19 }
0x1384   : > { %3948 = vmatmul.msk.f32.vlgmr.msra.gmra.mxu2 %vm508_vm1, %v2923_v7 }
0x1388   : > { %v2955_v12 = vpop.permute.xlu1 %2954  ;;  %v2991_v31 = vpop.permute.xlu2 %2990 }
0x1389   : > { %3950 = vmatmul.msk.f32.vlgmr.msrb.gmra.mxu3 %vm508_vm1, %v2955_v12  ;;  %3951 = vmatpush.xpose.msk.msra.mxu0 %vm508_vm1, %v2991_v31 }
0x1390   : > { %v3019_v60 = vpop.permute.xlu2 %3018 }
0x1398   : > { %v2987_v58 = vpop.permute.xlu1 %2986 }
0x1399   : > { %3952 = vmatmul.msk.f32.vlgmr.msra.gmra.mxu0 %vm508_vm1, %v2987_v58 }
0x13b0   : > { %v3023_v59 = vpop.permute.xlu0 %3022 }
0x13b1   : > { %3953 = vmatpush.xpose.msk.msrb.mxu1 %vm508_vm1, %v3023_v59 }
0x13b4   : > { %3954 = vmatmul.msk.f32.vlgmr.msrb.gmra.mxu1 %vm508_vm1, %v3019_v60 }
0x1407   : > { %v2949_v54 = vpop.f32.mrf.mxu2 }
0x1408   : > { %v3048_v21 = vmul.f32 0.35355338, %v2949_v54 }
0x140a   : > { %v3052_v0 = vsel %vm621_vm2, %v3048_v21, -inf }
0x140b   : > { %3053 = vmax.xlane.f32.xlu0 %v3052_v0 }
0x140c   : > { %v2981_v5 = vpop.f32.mrf.mxu3 }
0x140d   : > { %v3049_v13 = vmul.f32 0.35355338, %v2981_v5 }
0x140f   : > { %v3055_v16 = vsel %vm621_vm2, %v3049_v13, -inf }
0x1410   : > { %3056 = vmax.xlane.f32.xlu1 %v3055_v16 }
0x1416   : > { %v3013_v20 = vpop.f32.mrf.mxu0 }
0x1417   : > { %v3050_v18 = vmul.f32 0.35355338, %v3013_v20 }
0x1419   : > { %v3058_v2 = vsel %vm621_vm2, %v3050_v18, -inf }
0x141a   : > { %3059 = vmax.xlane.f32.xlu2 %v3058_v2 }
0x1431   : > { %v3045_v22 = vpop.f32.mrf.mxu1 }
0x1432   : > { %v3051_v10 = vmul.f32 0.35355338, %v3045_v22  ;;  %3154 = vrot.lane.b32.xlu2 %v3153_v52, %s5234_s15 }
0x1434   : > { %v3061_v24 = vsel %vm621_vm2, %v3051_v10, -inf }
0x1435   : > { %3062 = vmax.xlane.f32.xlu0 %v3061_v24 }
0x147e   : > { %v3054_v62 = vpop.xlane.xlu0 %3053 }
0x147f   : > { %v3064_v25 = vsub.f32 %v3048_v21, %v3054_v62 }
0x1481   : > { %v3068_v26 = vmul.f32 1.442695, %v3064_v25 }
0x1483   : > { %4114 = vpow2.f32 %v3068_v26  ;;  %v3057_v28 = vpop.xlane.xlu1 %3056 }
0x1484   : > { %v3065_v30 = vsub.f32 %v3049_v13, %v3057_v28 }
0x1486   : > { %v3070_v32 = vmul.f32 1.442695, %v3065_v30 }
0x1488   : > { %4116 = vpow2.f32 %v3070_v32 }
0x1489   : > { %v4115_v34 = vpop.eup %4114 }
0x148a   : > { %v3076_v27 = vsel %vm621_vm2, %v4115_v34, 0.0 }
0x148b   : > { %3077 = vadd.xlane.f32.xlu1 %v3076_v27 }
0x148d   : > { %v3060_v35 = vpop.xlane.xlu2 %3059 }
0x148e   : > { %v4117_v37 = vpop.eup %4116  ;;  %v3066_v39 = vsub.f32 %v3050_v18, %v3060_v35 }
0x148f   : > { %v3079_v29 = vsel %vm621_vm2, %v4117_v37, 0.0 }
0x1490   : > { %v3072_v41 = vmul.f32 1.442695, %v3066_v39  ;;  %3080 = vadd.xlane.f32.xlu2 %v3079_v29 }
0x1492   : > { %4118 = vpow2.f32 %v3072_v41 }
0x1495   : > { %v3155_v23 = vpop.permute.xlu2 %3154 }
0x1496   : > { %3955 = vmatpush.msk.msrb.mxu2 %vm730_vm3, %v3155_v23 }
0x1498   : > { %3297 = vmatpush.msra.mxu2 %v4158_v42  ;;  %v4988_v44 = vpop.eup %4118 }
0x1499   : > { %v3082_v43 = vsel %vm621_vm2, %v4988_v44, 0.0 }
0x149a   : > { %3083 = vadd.xlane.f32.xlu0 %v3082_v43 }
0x14a8   : > { %v3063_v45 = vpop.xlane.xlu0 %3062  ;;  %3241 = vrot.lane.b32.xlu2 %v3240_v36, %s5234_s15 }
0x14a9   : > { %v3067_v46 = vsub.f32 %v3051_v10, %v3063_v45 }
0x14ab   : > { %v3074_v40 = vmul.f32 1.442695, %v3067_v46 }
0x14ad   : > { %4120 = vpow2.f32 %v3074_v40 }
0x14ae   : > { %3183 = vrot.lane.b32.xlu0 %v4959_v53, %s5234_s15 }
0x14b3   : > { %v4995_v48 = vpop.eup %4120 }
0x14b4   : > { %v3085_v49 = vsel %vm621_vm2, %v4995_v48, 0.0 }
0x14b5   : > { %3086 = vadd.xlane.f32.xlu1 %v3085_v49 }
0x14ce   : > { %3212 = vrot.lane.b32.xlu1 %v4962_v6, %s5234_s15  ;;  %s5238_s15 = sshll.u32 %s5240_s26, 3 }
0x14fe   : > { %v3078_v38 = vpop.xlane.xlu1 %3077 }
0x14ff   : > { %4122 = vrcp.f32 %v3078_v38  ;;  %v3099_v61 = vand.u32 2147483648, %v3078_v38  ;;  %v3097_v3 = vand.u32 2147483647, %v3078_v38  ;;  %vm3093_vm10 = vweird.f32 %v3078_v38 }
0x1501   : > { %v3100_v6 = vor.u32 1.1754944e-38, %v3099_v61  ;;  %vm3098_vm12 = vcmp.eq.f32.partialorder %v3097_v3, 8.507059e+37 }
0x1503   : > { %v3081_v47 = vpop.xlane.xlu2 %3080 }
0x1504   : > { %4124 = vrcp.f32 %v3081_v47  ;;  %v3114_v59 = vand.u32 2147483648, %v3081_v47  ;;  %vm3108_vm14 = vweird.f32 %v3081_v47  ;;  %v3112_v60 = vand.u32 2147483647, %v3081_v47 }
0x1505   : > { %v4123_v50 = vpop.eup %4122 }
0x1506   : > { %v3089_v51 = vmul.f32 %v4123_v50, %v3078_v38  ;;  %vm3094_vm9 = vweird.f32 %v4123_v50  ;;  %v3115_v0 = vor.u32 1.1754944e-38, %v3114_v59  ;;  %vm3113_vm4 = vcmp.eq.f32.partialorder %v3112_v60, 8.507059e+37 }
0x1507   : > { %vm3095_vm11 = vmor %vm3093_vm10, %vm3094_vm9 }
0x1508   : > { %v3090_v63 = vsub.f32 1.0, %v3089_v51 }
0x150a   : > { %v4125_v17 = vpop.eup %4124  ;;  %v3091_v4 = vmul.f32 %v4123_v50, %v3090_v63 }
0x150b   : > { %v3104_v11 = vmul.f32 %v4125_v17, %v3081_v47  ;;  %v3242_v52 = vpop.permute.xlu2 %3241  ;;  %vm3109_vm13 = vweird.f32 %v4125_v17 }
0x150c   : > { %v3092_v53 = vadd.f32 %v4123_v50, %v3091_v4  ;;  %3961 = vmatpush.msk.msra.mxu1 %vm730_vm3, %v3242_v52  ;;  %vm3110_vm15 = vmor %vm3108_vm14, %vm3109_vm13 }
0x150d   : > { %v3105_v19 = vsub.f32 1.0, %v3104_v11  ;;  %v3084_v54 = vpop.xlane.xlu0 %3083 }
0x150e   : > { %v3096_v9 = vsel %vm3095_vm11, %v4123_v50, %v3092_v53  ;;  %4126 = vrcp.f32 %v3084_v54  ;;  %v3129_v27 = vand.u32 2147483648, %v3084_v54  ;;  %vm3123_vm10 = vweird.f32 %v3084_v54 }
0x150f   : > { %v3101_v7 = vsel %vm3098_vm12, %v3100_v6, %v3096_v9  ;;  %v3106_v31 = vmul.f32 %v4125_v17, %v3105_v19 }
0x1510   : > { %v3148_v12 = vmul.f32 %v4115_v34, %v3101_v7  ;;  %v3130_v42 = vor.u32 1.1754944e-38, %v3129_v27 }
0x1511   : > { %v3107_v58 = vadd.f32 %v4125_v17, %v3106_v31 }
0x1512   : > { %3956 = vmatmul.msk.f32.vlgmr.msrb.gmra.mxu2 %vm726_vm8, %v3148_v12 }
0x1513   : > { %v3111_v21 = vsel %vm3110_vm15, %v4125_v17, %v3107_v58 }
0x1514   : > { %v3116_v5 = vsel %vm3113_vm4, %v3115_v0, %v3111_v21  ;;  %v4127_v20 = vpop.eup %4126 }
0x1515   : > { %v3149_v16 = vmul.f32 %v4117_v37, %v3116_v5  ;;  %v3119_v2 = vmul.f32 %v4127_v20, %v3084_v54  ;;  %vm3124_vm6 = vweird.f32 %v4127_v20  ;;  %v3127_v37 = vand.u32 2147483647, %v3084_v54 }
0x1516   : > { %vm3125_vm12 = vmor %vm3123_vm10, %vm3124_vm6 }
0x1517   : > { %v3120_v22 = vsub.f32 1.0, %v3119_v2  ;;  %vm3128_vm13 = vcmp.eq.f32.partialorder %v3127_v37, 8.507059e+37 }
0x1519   : > { %v3121_v62 = vmul.f32 %v4127_v20, %v3120_v22 }
0x151b   : > { %v3122_v32 = vadd.f32 %v4127_v20, %v3121_v62 }
0x151d   : > { %v3126_v41 = vsel %vm3125_vm12, %v4127_v20, %v3122_v32 }
0x151e   : > { %v3131_v43 = vsel %vm3128_vm13, %v3130_v42, %v3126_v41 }
0x151f   : > { %v3150_v45 = vmul.f32 %v4988_v44, %v3131_v43 }
0x1520   : > { %v3184_v13 = vpop.permute.xlu0 %3183 }
0x1521   : > { %3957 = vmatpush.msk.msra.mxu3 %vm730_vm3, %v3184_v13 }
0x1522   : > { %3958 = vmatmul.msk.f32.vlgmr.msra.gmra.mxu3 %vm726_vm8, %v3149_v16 }
0x1528   : > { %v3087_v18 = vpop.xlane.xlu1 %3086 }
0x1529   : > { %4128 = vrcp.f32 %v3087_v18  ;;  %v3144_v26 = vand.u32 2147483648, %v3087_v18  ;;  %v3142_v30 = vand.u32 2147483647, %v3087_v18  ;;  %vm3138_vm7 = vweird.f32 %v3087_v18 }
0x152b   : > { %v3145_v35 = vor.u32 1.1754944e-38, %v3144_v26  ;;  %vm3143_vm11 = vcmp.eq.f32.partialorder %v3142_v30, 8.507059e+37 }
0x152f   : > { %v4129_v10 = vpop.eup %4128 }
0x1530   : > { %v3134_v24 = vmul.f32 %v4129_v10, %v3087_v18  ;;  %vm3139_vm5 = vweird.f32 %v4129_v10 }
0x1531   : > { %vm3140_vm9 = vmor %vm3138_vm7, %vm3139_vm5 }
0x1532   : > { %v3135_v25 = vsub.f32 1.0, %v3134_v24 }
0x1534   : > { %v3136_v28 = vmul.f32 %v4129_v10, %v3135_v25 }
0x1536   : > { %v3137_v34 = vadd.f32 %v4129_v10, %v3136_v28 }
0x1538   : > { %v3141_v39 = vsel %vm3140_vm9, %v4129_v10, %v3137_v34 }
0x1539   : > { %v3146_v29 = vsel %vm3143_vm11, %v3145_v35, %v3141_v39 }
0x153a   : > { %v3151_v23 = vmul.f32 %v4995_v48, %v3146_v29 }
0x153c   : > { %3962 = vmatmul.msk.f32.vlgmr.msra.gmra.mxu1 %vm726_vm8, %v3151_v23 }
0x1540   : > { %v3213_v36 = vpop.permute.xlu1 %3212 }
0x1541   : > { %3959 = vmatpush.msk.msrb.mxu0 %vm730_vm3, %v3213_v36 }
0x1542   : > { %3960 = vmatmul.msk.f32.vlgmr.msrb.gmra.mxu0 %vm726_vm8, %v3150_v45 }
0x1595   : > { %v3178_v46 = vpop.f32.mrf.mxu2 }
0x1596   : > { %3272 = vst [vmem:[#allocation1] ss:$4 sm:$0xff] %v3178_v46 }
0x15a5   : > { %v3207_v40 = vpop.f32.mrf.mxu3 }
0x15a6   : > { %3274 = vst [vmem:[#allocation1 + $0x1] ss:$4 sm:$0xff] %v3207_v40 }
0x15b9   : > { %v3265_v49 = vpop.f32.mrf.mxu1 }
0x15ba   : > { %3278 = vst [vmem:[#allocation1 + $0x3] ss:$4 sm:$0xff] %v3265_v49 }
0x15bf   : > { %v3236_v38 = vpop.f32.mrf.mxu0 }
0x15c0   : > { %3276 = vst [vmem:[#allocation1 + $0x2] ss:$4 sm:$0xff] %v3236_v38 }
0x15c7   : > { %v3279_v48 = vld.sshfl [vmem:[#allocation1] sm:$0xff pattern:$0x73625140] }
0x15c8   : > { %3963 = vmatmul.msk.f32.vlgmr.msra.gmra.mxu2 %vm508_vm1, %v3279_v48  ;;  %3303 = vst [vmem:[#allocation1] ss:$4 sm:$0xff] %v4776_v55 }
0x15cf   : > { %v3304_v47 = vld.sshfl [vmem:[#allocation1] sm:$0xff pattern:$0x73625140] }
0x15d0   : > { %3307 = vst [vmem:[#allocation1] ss:$4 sm:$0xff] %v4776_v55 }
0x15d7   : > { %v3308_v44 = vld.sshfl [vmem:[#allocation1] sm:$0xff pattern:$0x73625140] }
0x15d8   : > { %3309 = vrot.lane.b32.xlu0 %v3308_v44, %s5235_s16  ;;  %3335 = vst [vmem:[#allocation1] ss:$4 sm:$0xff] %v4780_v8 }
0x15df   : > { %v3336_v50 = vld.sshfl [vmem:[#allocation1] sm:$0xff pattern:$0x73625140] }
0x15e0   : > { %3339 = vst [vmem:[#allocation1] ss:$4 sm:$0xff] %v4780_v8  ;;  %3305 = vrot.lane.b32.xlu0 %v3304_v47, %s5236_s17 }
0x15e7   : > { %v3340_v51 = vld.sshfl [vmem:[#allocation1] sm:$0xff pattern:$0x73625140] }
0x15e8   : > { %3367 = vst [vmem:[#allocation1] ss:$4 sm:$0xff] %v4785_v56 }
0x15ef   : > { %v3368_v63 = vld.sshfl [vmem:[#allocation1] sm:$0xff pattern:$0x73625140] }
0x15f0   : > { %3371 = vst [vmem:[#allocation1] ss:$4 sm:$0xff] %v4785_v56 }
0x15f7   : > { %v3372_v61 = vld.sshfl [vmem:[#allocation1] sm:$0xff pattern:$0x73625140] }
0x15f8   : > { %3373 = vrot.lane.b32.xlu0 %v3372_v61, %s5235_s16  ;;  %3399 = vst [vmem:[#allocation1] ss:$4 sm:$0xff] %v4790_v33 }
0x15ff   : > { %v3400_v17 = vld.sshfl [vmem:[#allocation1] sm:$0xff pattern:$0x73625140] }
0x1600   : > { %3401 = vrot.lane.b32.xlu1 %v3400_v17, %s5236_s17  ;;  %3403 = vst [vmem:[#allocation1] ss:$4 sm:$0xff] %v4790_v33 }
0x1607   : > { %v3404_v4 = vld.sshfl [vmem:[#allocation1] sm:$0xff pattern:$0x73625140] }
0x1608   : > { %3337 = vrot.lane.b32.xlu1 %v3336_v50, %s5236_s17  ;;  %3405 = vrot.lane.b32.xlu2 %v3404_v4, %s5235_s16  ;;  %3535 = vst [vmem:[#allocation1] ss:$4 sm:$0xff] %v4776_v55 }
0x160f   : > { %v5026_v3 = vld.sshfl [vmem:[#allocation1] sm:$0xff pattern:$0x73625140] }
0x1610   : > { %3564 = vst [vmem:[#allocation1] ss:$4 sm:$0xff] %v4780_v8  ;;  %3341 = vrot.lane.b32.xlu2 %v3340_v51, %s5235_s16  ;;  %s435_s16 = scalar_lea.vmem %s5216_s13, %s5238_s15 }
0x1617   : > { %v5030_v11 = vld.sshfl [vmem:[#allocation1] sm:$0xff pattern:$0x73625140] }
0x1618   : > { %3369 = vrot.lane.b32.xlu2 %v3368_v63, %s5236_s17  ;;  %3593 = vst [vmem:[#allocation1] ss:$4 sm:$0xff] %v4785_v56 }
0x161f   : > { %v5034_v52 = vld.sshfl [vmem:[#allocation1] sm:$0xff pattern:$0x73625140] }
0x1620   : > { %3622 = vst [vmem:[#allocation1] ss:$4 sm:$0xff] %v4790_v33 }
0x1627   : > { %v3623_v43 = vld.sshfl [vmem:[#allocation1] sm:$0xff pattern:$0x73625140] }
0x164a   : > { %v3310_v53 = vpop.permute.xlu0 %3309 }
0x164b   : > { %3964 = vmatpush.xpose.msk.msrb.mxu3 %vm508_vm1, %v3310_v53  ;;  %v5046_v58 = vpop.f32.mrf.mxu2 }
0x1652   : > { %v3306_v55 = vpop.permute.xlu0 %3305 }
0x1653   : > { %3965 = vmatmul.msk.f32.vlgmr.msrb.gmra.mxu3 %vm508_vm1, %v3306_v55 }
0x1662   : > { %v3406_v6 = vpop.permute.xlu2 %3405 }
0x1663   : > { %3970 = vmatpush.xpose.msk.msrb.mxu2 %vm508_vm1, %v3406_v6 }
0x166a   : > { %v3374_v8 = vpop.permute.xlu0 %3373  ;;  %v3342_v9 = vpop.permute.xlu2 %3341 }
0x166b   : > { %3966 = vmatpush.xpose.msk.msra.mxu0 %vm508_vm1, %v3342_v9  ;;  %3968 = vmatpush.xpose.msk.msrb.mxu1 %vm508_vm1, %v3374_v8 }
0x1672   : > { %v3402_v56 = vpop.permute.xlu1 %3401  ;;  %v3370_v19 = vpop.permute.xlu2 %3369 }
0x1673   : > { %3969 = vmatmul.msk.f32.vlgmr.msrb.gmra.mxu1 %vm508_vm1, %v3370_v19  ;;  %3971 = vmatmul.msk.f32.vlgmr.msrb.gmra.mxu2 %vm508_vm1, %v3402_v56  ;;  %v4159_v19 = vld [vmem:[%s5206_s3 + $0x18] sm:$0xff] }
0x167a   : > { %v3338_v33 = vpop.permute.xlu1 %3337 }
0x167b   : > { %3967 = vmatmul.msk.f32.vlgmr.msra.gmra.mxu0 %vm508_vm1, %v3338_v33 }
0x16d6   : > { %v3332_v7 = vpop.f32.mrf.mxu3 }
0x16d7   : > { %v3431_v12 = vmul.f32 0.35355338, %v3332_v7 }
0x16d9   : > { %v3435_v31 = vsel %vm621_vm2, %v3431_v12, -inf }
0x16da   : > { %3436 = vmax.xlane.f32.xlu0 %v3435_v31 }
0x16f0   : > { %v3396_v59 = vpop.f32.mrf.mxu1 }
0x16f1   : > { %v3433_v60 = vmul.f32 0.35355338, %v3396_v59 }
0x16f3   : > { %v3441_v54 = vsel %vm621_vm2, %v3433_v60, -inf }
0x16f4   : > { %3442 = vmax.xlane.f32.xlu0 %v3441_v54 }
0x16f6   : > { %v3428_v21 = vpop.f32.mrf.mxu2 }
0x16f7   : > { %v3434_v0 = vmul.f32 0.35355338, %v3428_v21 }
0x16f8   : > { %v3364_v5 = vpop.f32.mrf.mxu0 }
0x16f9   : > { %v3432_v13 = vmul.f32 0.35355338, %v3364_v5  ;;  %v3444_v16 = vsel %vm621_vm2, %v3434_v0, -inf }
0x16fa   : > { %3445 = vmax.xlane.f32.xlu1 %v3444_v16 }
0x16fb   : > { %v3438_v20 = vsel %vm621_vm2, %v3432_v13, -inf }
0x16fc   : > { %3439 = vmax.xlane.f32.xlu2 %v3438_v20 }
0x174d   : > { %v3437_v18 = vpop.xlane.xlu0 %3436 }
0x174e   : > { %v3447_v2 = vsub.f32 %v3431_v12, %v3437_v18 }
0x1750   : > { %v3451_v22 = vmul.f32 1.442695, %v3447_v2 }
0x1752   : > { %4130 = vpow2.f32 %v3451_v22 }
0x1758   : > { %v4131_v10 = vpop.eup %4130 }
0x1759   : > { %v3459_v24 = vsel %vm621_vm2, %v4131_v10, 0.0 }
0x175a   : > { %3460 = vadd.xlane.f32.xlu1 %v3459_v24 }
0x1767   : > { %v3443_v62 = vpop.xlane.xlu0 %3442 }
0x1768   : > { %v3449_v25 = vsub.f32 %v3433_v60, %v3443_v62 }
0x176a   : > { %v3455_v26 = vmul.f32 1.442695, %v3449_v25 }
0x176c   : > { %4132 = vpow2.f32 %v3455_v26  ;;  %v4160_v26 = vld [vmem:[%s5208_s5 + $0x18] sm:$0xff] }
0x176d   : > { %v3446_v28 = vpop.xlane.xlu1 %3445 }
0x176e   : > { %v3450_v30 = vsub.f32 %v3434_v0, %v3446_v28 }
0x176f   : > { %v3440_v32 = vpop.xlane.xlu2 %3439 }
0x1770   : > { %v3457_v34 = vmul.f32 1.442695, %v3450_v30  ;;  %v3448_v27 = vsub.f32 %v3432_v13, %v3440_v32 }
0x1772   : > { %v5052_v35 = vpop.eup %4132  ;;  %4134 = vpow2.f32 %v3457_v34  ;;  %v3453_v37 = vmul.f32 1.442695, %v3448_v27  ;;  %v4161_v27 = vld [vmem:[%s5208_s5 + $0x10] sm:$0xff] }
0x1773   : > { %v3465_v39 = vsel %vm621_vm2, %v5052_v35, 0.0 }
0x1774   : > { %4136 = vpow2.f32 %v3453_v37  ;;  %3466 = vadd.xlane.f32.xlu1 %v3465_v39  ;;  %v4162_v39 = vld [vmem:[%s5208_s5 + $0x8] sm:$0xff] }
0x1778   : > { %v5056_v29 = vpop.eup %4134 }
0x1779   : > { %v3468_v41 = vsel %vm621_vm2, %v5056_v29, 0.0 }
0x177a   : > { %v5060_v23 = vpop.eup %4136  ;;  %3469 = vadd.xlane.f32.xlu2 %v3468_v41  ;;  %v4163_v41 = vld [vmem:[%s5208_s5] sm:$0xff] }
0x177b   : > { %v3462_v42 = vsel %vm621_vm2, %v5060_v23, 0.0 }
0x177c   : > { %3463 = vadd.xlane.f32.xlu0 %v3462_v42 }
0x178d   : > { %3566 = vrot.lane.b32.xlu1 %v5030_v11, %s5237_s21 }
0x1790   : > { %3624 = vrot.lane.b32.xlu0 %v3623_v43, %s5237_s21  ;;  %v4164_v43 = vld [vmem:[%s5210_s7 + $0x78] sm:$0xff] }
0x1792   : > { %3537 = vrot.lane.b32.xlu2 %v5026_v3, %s5237_s21 }
0x1798   : > { %3595 = vrot.lane.b32.xlu0 %v5034_v52, %s5237_s21 }
0x17cd   : > { %v3461_v36 = vpop.xlane.xlu1 %3460 }
0x17ce   : > { %4138 = vrcp.f32 %v3461_v36  ;;  %v3482_v47 = vand.u32 2147483648, %v3461_v36  ;;  %vm3476_vm14 = vweird.f32 %v3461_v36  ;;  %v3480_v44 = vand.u32 2147483647, %v3461_v36 }
0x17d0   : > { %v3483_v61 = vor.u32 1.1754944e-38, %v3482_v47  ;;  %vm3481_vm4 = vcmp.eq.f32.partialorder %v3480_v44, 8.507059e+37  ;;  %v4173_v47 = vld [vmem:[%s5210_s7 + $0x30] sm:$0xff]  ;;  %v4174_v44 = vld [vmem:[%s5210_s7 + $0x28] sm:$0xff] }
0x17d4   : > { %v4139_v45 = vpop.eup %4138 }
0x17d5   : > { %v3472_v46 = vmul.f32 %v4139_v45, %v3461_v36  ;;  %vm3477_vm2 = vweird.f32 %v4139_v45  ;;  %v4165_v36 = vld [vmem:[%s5210_s7 + $0x70] sm:$0xff] }
0x17d6   : > { %vm3478_vm15 = vmor %vm3476_vm14, %vm3477_vm2 }
0x17d7   : > { %v3473_v40 = vsub.f32 1.0, %v3472_v46  ;;  %v4168_v46 = vld [vmem:[%s5210_s7 + $0x58] sm:$0xff] }
0x17d9   : > { %v3474_v49 = vmul.f32 %v4139_v45, %v3473_v40  ;;  %v4169_v40 = vld [vmem:[%s5210_s7 + $0x50] sm:$0xff] }
0x17db   : > { %v3475_v48 = vadd.f32 %v4139_v45, %v3474_v49  ;;  %v4170_v49 = vld [vmem:[%s5210_s7 + $0x48] sm:$0xff] }
0x17dd   : > { %v3479_v51 = vsel %vm3478_vm15, %v4139_v45, %v3475_v48  ;;  %v4166_v45 = vld [vmem:[%s5210_s7 + $0x68] sm:$0xff]  ;;  %v4172_v48 = vld [vmem:[%s5210_s7 + $0x38] sm:$0xff] }
0x17de   : > { %v3484_v4 = vsel %vm3481_vm4, %v3483_v61, %v3479_v51  ;;  %v4176_v51 = vld [vmem:[%s5210_s7 + $0x18] sm:$0xff]  ;;  %v4178_v61 = vld [vmem:[%s5210_s7 + $0x8] sm:$0xff] }
0x17df   : > { %v3531_v55 = vmul.f32 %v4131_v10, %v3484_v4 }
0x17e7   : > { %v5071_v38 = vpop.xlane.xlu1 %3466 }
0x17e8   : > { %4140 = vrcp.f32 %v5071_v38  ;;  %v3512_v62 = vand.u32 2147483648, %v5071_v38  ;;  %vm3506_vm14 = vweird.f32 %v5071_v38  ;;  %v3510_v28 = vand.u32 2147483647, %v5071_v38 }
0x17ea   : > { %v3513_v37 = vor.u32 1.1754944e-38, %v3512_v62  ;;  %vm3511_vm4 = vcmp.eq.f32.partialorder %v3510_v28, 8.507059e+37 }
0x17ed   : > { %v3470_v50 = vpop.xlane.xlu2 %3469 }
0x17ee   : > { %4142 = vrcp.f32 %v3470_v50  ;;  %v5074_v17 = vpop.eup %4140  ;;  %v3527_v7 = vand.u32 2147483648, %v3470_v50  ;;  %vm3521_vm6 = vweird.f32 %v3470_v50  ;;  %v3525_v31 = vand.u32 2147483647, %v3470_v50 }
0x17ef   : > { %v3464_v63 = vpop.xlane.xlu0 %3463  ;;  %v3502_v11 = vmul.f32 %v5074_v17, %v5071_v38  ;;  %vm3507_vm2 = vweird.f32 %v5074_v17  ;;  %v4171_v38 = vld [vmem:[%s5210_s7 + $0x40] sm:$0xff] }
0x17f0   : > { %4144 = vrcp.f32 %v3464_v63  ;;  %v3497_v59 = vand.u32 2147483648, %v3464_v63  ;;  %v3495_v21 = vand.u32 2147483647, %v3464_v63  ;;  %v3528_v13 = vor.u32 1.1754944e-38, %v3527_v7  ;;  %vm3508_vm15 = vmor %vm3506_vm14, %vm3507_vm2 }
0x17f1   : > { %v3503_v56 = vsub.f32 1.0, %v3502_v11  ;;  %vm3491_vm10 = vweird.f32 %v3464_v63  ;;  %vm3526_vm11 = vcmp.eq.f32.partialorder %v3525_v31, 8.507059e+37 }
0x17f2   : > { %v3498_v20 = vor.u32 1.1754944e-38, %v3497_v59  ;;  %vm3496_vm13 = vcmp.eq.f32.partialorder %v3495_v21, 8.507059e+37 }
0x17f3   : > { %v3504_v0 = vmul.f32 %v5074_v17, %v3503_v56  ;;  %v4180_v56 = vld [vmem:[%s5207_s4] ss:$0 sm:$0xff] }
0x17f4   : > { %v4143_v3 = vpop.eup %4142 }
0x17f5   : > { %v3517_v52 = vmul.f32 %v4143_v3, %v3470_v50  ;;  %v3538_v53 = vpop.permute.xlu2 %3537  ;;  %vm3522_vm5 = vweird.f32 %v4143_v3  ;;  %v3505_v10 = vadd.f32 %v5074_v17, %v3504_v0  ;;  %v4175_v50 = vld [vmem:[%s5210_s7 + $0x20] sm:$0xff] }
0x17f6   : > { %v4145_v6 = vpop.eup %4144  ;;  %3972 = vmatpush.msk.msra.mxu3 %vm730_vm3, %v3538_v53  ;;  %vm3523_vm9 = vmor %vm3521_vm6, %vm3522_vm5 }
0x17f7   : > { %v3518_v8 = vsub.f32 1.0, %v3517_v52  ;;  %v3487_v9 = vmul.f32 %v4145_v6, %v3464_v63  ;;  %3973 = vmatmul.msk.f32.vlgmr.msra.gmra.mxu3 %vm726_vm8, %v3531_v55  ;;  %vm3492_vm7 = vweird.f32 %v4145_v6  ;;  %v3509_v34 = vsel %vm3508_vm15, %v5074_v17, %v3505_v10  ;;  %v4177_v63 = vld [vmem:[%s5210_s7 + $0x10] sm:$0xff]  ;;  %v4179_v17 = vld [vmem:[%s5210_s7] sm:$0xff] }
0x17f8   : > { %3680 = vmatpush.msrb.mxu3 %v4159_v19  ;;  %vm3493_vm12 = vmor %vm3491_vm10, %vm3492_vm7  ;;  %v2918_v55 = vadd.f32 %v4978_v57, %v4974_v15  ;;  %v4182_v10 = vld [vmem:[%s5213_s10] ss:$0 sm:$0xff] }
0x17f9   : > { %v3519_v33 = vmul.f32 %v4143_v3, %v3518_v8  ;;  %v3488_v12 = vsub.f32 1.0, %v3487_v9 }
0x17fb   : > { %v3520_v60 = vadd.f32 %v4143_v3, %v3519_v33  ;;  %v3489_v54 = vmul.f32 %v4145_v6, %v3488_v12 }
0x17fd   : > { %v3524_v5 = vsel %vm3523_vm9, %v4143_v3, %v3520_v60  ;;  %v3490_v16 = vadd.f32 %v4145_v6, %v3489_v54 }
0x17fe   : > { %v3529_v18 = vsel %vm3526_vm11, %v3528_v13, %v3524_v5 }
0x17ff   : > { %v3494_v2 = vsel %vm3493_vm12, %v4145_v6, %v3490_v16  ;;  %v3567_v22 = vpop.permute.xlu1 %3566  ;;  %v3534_v32 = vmul.f32 %v5056_v29, %v3529_v18  ;;  %v3514_v29 = vsel %vm3511_vm4, %v3513_v37, %v3509_v34  ;;  %v3302_v6 = vadd.f32 %v5046_v58, %v2918_v55 }
0x1800   : > { %v3499_v24 = vsel %vm3496_vm13, %v3498_v20, %v3494_v2  ;;  %3974 = vmatpush.msk.msrb.mxu0 %vm730_vm3, %v3567_v22  ;;  %v3533_v42 = vmul.f32 %v5052_v35, %v3514_v29  ;;  %v4167_v35 = vld [vmem:[%s5210_s7 + $0x60] sm:$0xff] }
0x1801   : > { %v3532_v25 = vmul.f32 %v5060_v23, %v3499_v24  ;;  %v4181_v2 = vld [vmem:[%s5212_s9] ss:$0 sm:$0xff] }
0x1802   : > { %3727 = vmatpush.msra.mxu0 %v4160_v26  ;;  %v3625_v30 = vpop.permute.xlu0 %3624 }
0x1803   : > { %3975 = vmatmul.msk.f32.vlgmr.msrb.gmra.mxu0 %vm726_vm8, %v3532_v25  ;;  %3978 = vmatpush.msk.msra.mxu2 %vm730_vm3, %v3625_v30  ;;  %v4183_v25 = vld [vmem:[%s5209_s6] ss:$0 sm:$0xff] }
0x1804   : > { %3979 = vmatmul.msk.f32.vlgmr.msra.gmra.mxu2 %vm726_vm8, %v3534_v32  ;;  %3728 = vmatpush.msra.mxu0 %v4161_v27  ;;  %v4184_v32 = vld [vmem:[%s5211_s8] ss:$0 sm:$0xff] }
0x1806   : > { %3729 = vmatpush.msra.mxu0 %v4162_v39 }
0x1808   : > { %3730 = vmatpush.msra.mxu0 %v4163_v41 }
0x180a   : > { %v3596_v23 = vpop.permute.xlu0 %3595 }
0x180b   : > { %3976 = vmatpush.msk.msra.mxu1 %vm730_vm3, %v3596_v23 }
0x180c   : > { %3977 = vmatmul.msk.f32.vlgmr.msra.gmra.mxu1 %vm726_vm8, %v3533_v42 }
0x180d   : > { %3736 = vmatpush.msrb.mxu1 %v4164_v43 }
0x180f   : > { %3737 = vmatpush.msrb.mxu1 %v4165_v36 }
0x1811   : > { %3738 = vmatpush.msrb.mxu1 %v4166_v45 }
0x1813   : > { %3739 = vmatpush.msrb.mxu1 %v4167_v35 }
0x1815   : > { %3740 = vmatpush.msrb.mxu1 %v4168_v46 }
0x1817   : > { %3741 = vmatpush.msrb.mxu1 %v4169_v40 }
0x1819   : > { %3742 = vmatpush.msrb.mxu1 %v4170_v49 }
0x181b   : > { %3743 = vmatpush.msrb.mxu1 %v4171_v38 }
0x181d   : > { %3744 = vmatpush.msrb.mxu1 %v4172_v48 }
0x181f   : > { %3745 = vmatpush.msrb.mxu1 %v4173_v47 }
0x1821   : > { %3746 = vmatpush.msrb.mxu1 %v4174_v44 }
0x1823   : > { %3747 = vmatpush.msrb.mxu1 %v4175_v50  ;;  %v4185_v50 = vld [vmem:[%s5214_s11] ss:$0 sm:$0xff] }
0x1825   : > { %3748 = vmatpush.msrb.mxu1 %v4176_v51 }
0x1827   : > { %3749 = vmatpush.msrb.mxu1 %v4177_v63 }
0x1829   : > { %3750 = vmatpush.msrb.mxu1 %v4178_v61 }
0x182b   : > { %3751 = vmatpush.msrb.mxu1 %v4179_v17 }
0x187a   : > { %v3561_v4 = vpop.f32.mrf.mxu3 }
0x187b   : > { %3655 = vst [vmem:[#allocation1] ss:$4 sm:$0xff] %v3561_v4 }
0x1880   : > { %v3590_v3 = vpop.f32.mrf.mxu0 }
0x1881   : > { %3657 = vst [vmem:[#allocation1 + $0x1] ss:$4 sm:$0xff] %v3590_v3 }
0x1887   : > { %v3648_v11 = vpop.f32.mrf.mxu2 }
0x1888   : > { %3661 = vst [vmem:[#allocation1 + $0x3] ss:$4 sm:$0xff] %v3648_v11 }
0x1889   : > { %v3619_v52 = vpop.f32.mrf.mxu1 }
0x188a   : > { %3659 = vst [vmem:[#allocation1 + $0x2] ss:$4 sm:$0xff] %v3619_v52 }
0x1891   : > { %v3662_v53 = vld.sshfl [vmem:[#allocation1] sm:$0xff pattern:$0x73625140] }
0x1892   : > { %3980 = vmatmul.msk.f32.vlgmr.msrb.gmra.mxu3 %vm508_vm1, %v3662_v53 }
0x1915   : > { %v3682_v8 = vpop.f32.mrf.mxu3 }
0x1916   : > { %v3685_v9 = vadd.f32 %v3682_v8, %v3302_v6 }
0x1918   : > { %v3686_v19 = vadd.f32 %v4180_v56, %v3685_v9 }
0x191a   : > { %v3687_v33 = vadd.f32 %v3686_v19, %v4769_v14 }
0x191c   : > { %v3688_v7 = vsel %vm476_vm0, %v3687_v33, 0.0 }
0x191d   : > { %3689 = vadd.xlane.f32.xlu2 %v3688_v7 }
0x1990   : > { %v3690_v12 = vpop.xlane.xlu2 %3689 }
0x1991   : > { %v3691_v31 = vmul.f32 %v3690_v12, %v4681_v1 }
0x1993   : > { %v3692_v59 = vsub.f32 %v3687_v33, %v3691_v31 }
0x1995   : > { %v3693_v60 = vmul.f32 %v3692_v59, %v3692_v59 }
0x1997   : > { %v3694_v15 = vsel %vm476_vm0, %v3693_v60, 0.0 }
0x1998   : > { %3695 = vadd.xlane.f32.xlu1 %v3694_v15 }
0x1a0b   : > { %v3696_v57 = vpop.xlane.xlu1 %3695 }
0x1a0c   : > { %v3697_v58 = vmul.f32 %v3696_v57, %v4681_v1 }
0x1a0e   : > { %v3698_v54 = vadd.f32 1e-05, %v3697_v58 }
0x1a10   : > { %4146 = vrsqrt.f32 %v3698_v54  ;;  %vm3705_vm3 = vweird.f32 %v3698_v54 }
0x1a16   : > { %v4147_v21 = vpop.eup %4146 }
0x1a17   : > { %v3700_v0 = vmul.f32 %v4147_v21, %v3698_v54  ;;  %vm3706_vm1 = vweird.f32 %v4147_v21 }
0x1a18   : > { %vm3707_vm8 = vmor %vm3705_vm3, %vm3706_vm1 }
0x1a19   : > { %v3701_v5 = vmul.f32 %v4147_v21, %v3700_v0 }
0x1a1b   : > { %v3702_v14 = vmul.f32 0.5, %v3701_v5 }
0x1a1d   : > { %v3703_v13 = vsub.f32 1.5, %v3702_v14 }
0x1a1f   : > { %v3704_v16 = vmul.f32 %v4147_v21, %v3703_v13 }
0x1a21   : > { %v3708_v20 = vsel %vm3707_vm8, %v4147_v21, %v3704_v16 }
0x1a22   : > { %v3709_v18 = vmul.f32 %v3708_v20, %v3692_v59 }
0x1a24   : > { %v3710_v22 = vmul.f32 %v4181_v2, %v3709_v18 }
0x1a26   : > { %v3711_v24 = vadd.f32 %v4182_v10, %v3710_v22 }
0x1a28   : > { %3981 = vmatmul.msk.f32.vlgmr.msra.gmra.mxu0 %vm476_vm0, %v3711_v24 }
0x1aa5   : > { %v3732_v62 = vpop.f32.mrf.mxu0 }
0x1aa6   : > { %v3733_v26 = vadd.f32 %v4183_v25, %v3732_v62 }
0x1aa8   : > { %v3735_v28 = vmax.f32 %v3733_v26, 0.0 }
0x1aaa   : > { %3752 = vmatmul.f32.vlgmr.msrb.gmra.mxu1 %v3735_v28 }
0x1b27   : > { %v3753_v30 = vpop.f32.mrf.mxu1 }
0x1b28   : > { %v3754_v34 = vadd.f32 %v4184_v32, %v3753_v30 }
0x1b2a   : > { %v3756_v27 = vadd.f32 %v3754_v34, %v3711_v24 }
0x1b2c   : > { %v3757_v37 = vsel %vm476_vm0, %v3756_v27, 0.0 }
0x1b2d   : > { %3758 = vadd.xlane.f32.xlu0 %v3757_v37 }
0x1ba0   : > { %v3759_v39 = vpop.xlane.xlu0 %3758 }
0x1ba1   : > { %v3760_v29 = vmul.f32 %v3759_v39, %v4681_v1 }
0x1ba3   : > { %v3761_v41 = vsub.f32 %v3756_v27, %v3760_v29 }
0x1ba5   : > { %v3762_v23 = vmul.f32 %v3761_v41, %v3761_v41 }
0x1ba7   : > { %v3763_v42 = vsel %vm476_vm0, %v3762_v23, 0.0 }
0x1ba8   : > { %3764 = vadd.xlane.f32.xlu2 %v3763_v42 }
0x1c1b   : > { %v3765_v43 = vpop.xlane.xlu2 %3764 }
0x1c1c   : > { %v3766_v36 = vmul.f32 %v3765_v43, %v4681_v1  ;;  %v4186_v1 = vld [vmem:[%s5215_s12] ss:$0 sm:$0xff] }
0x1c1e   : > { %v3767_v45 = vadd.f32 1e-05, %v3766_v36 }
0x1c20   : > { %4148 = vrsqrt.f32 %v3767_v45  ;;  %vm3774_vm6 = vweird.f32 %v3767_v45 }
0x1c26   : > { %v4149_v35 = vpop.eup %4148 }
0x1c27   : > { %v3769_v46 = vmul.f32 %v4149_v35, %v3767_v45  ;;  %vm3775_vm5 = vweird.f32 %v4149_v35 }
0x1c28   : > { %vm3776_vm7 = vmor %vm3774_vm6, %vm3775_vm5 }
0x1c29   : > { %v3770_v40 = vmul.f32 %v4149_v35, %v3769_v46 }
0x1c2b   : > { %v3771_v49 = vmul.f32 0.5, %v3770_v40 }
0x1c2d   : > { %v3772_v38 = vsub.f32 1.5, %v3771_v49 }
0x1c2f   : > { %v3773_v48 = vmul.f32 %v4149_v35, %v3772_v38 }
0x1c31   : > { %v3777_v47 = vsel %vm3776_vm7, %v4149_v35, %v3773_v48 }
0x1c32   : > { %v3778_v44 = vmul.f32 %v3777_v47, %v3761_v41 }
0x1c34   : > { %v3779_v51 = vmul.f32 %v4185_v50, %v3778_v44 }
0x1c36   : > { %v3780_v63 = vadd.f32 %v4186_v1, %v3779_v51 }
0x1c38   : > { %3781 = vst.msk [vmem:[%s435_s16] sm:$0xff] %vm476_vm0, %v3780_v63 }
0x1c39 PF: > { %s23_s25 = sadd.s32 1, %s4193_s25  }
0x1c3a   : > { %p20_p4 = scmp.ge.s32.totalorder %s23_s25, 4  }
0x1c3c   :  { %22 = sbr.rel (!%p20_p4) target bundleno = 1 (0x1), region = 126 }

</bundles_post_ra>
